<compile_context>
chip_gen: v5e
topology: v5e:2x2
jax: 0.10.0
libtpu: 0.0.40
codegen_flags: <defaults>
</compile_context>

<pallas_src>
import functools

import jax
import jax.numpy as jnp
from jax.experimental import pallas as pl
from jax.experimental.pallas import tpu as pltpu

BN_EPS = 1e-5


# -----------------------------------------------------------------------------
# Phase 1 kernel: 3x3 conv as 9 shifted MXU matmuls on a halo row-tile,
#                 plus per-tile BatchNorm partial statistics.
# -----------------------------------------------------------------------------
def _conv_stats_kernel(x_ref, w_ref, y_ref, ps_ref):
    # x_ref : (1, 1, TH+2, W+2, Cin)  bf16 halo-extended NHWC row tile
    # w_ref : (9, Cin, Cout)          bf16 conv taps, tap index = dy*3 + dx
    # y_ref : (1, 1, TH*W, Cout)      f32 pre-BN conv output for this tile
    # ps_ref: (1, 1, 2, Cout)         f32 per-tile [sum, sum_of_squares]
    th = x_ref.shape[2] - 2
    wpix = x_ref.shape[3] - 2
    cin = x_ref.shape[4]
    cout = y_ref.shape[3]
    npix = th * wpix

    xt = x_ref[0, 0]                                   # (TH+2, W+2, Cin) bf16

    acc = jnp.zeros((npix, cout), jnp.float32)
    for dy in range(3):
        for dx in range(3):
            xs = xt[dy:dy + th, dx:dx + wpix, :].reshape(npix, cin)
            acc = acc + jnp.dot(xs, w_ref[dy * 3 + dx],
                                preferred_element_type=jnp.float32)
    # NOTE: no conv-bias add here.  Training-mode BatchNorm subtracts the
    # batch mean, which cancels a per-channel bias exactly.

    y_ref[0, 0] = acc

    # Per-tile channel statistics via a ones-vector matmul: keeps the
    # cross-sublane reduction on the (otherwise idle) MXU instead of the XLU;
    # the tiny global reduction over tiles happens in the wrapper.
    ones = jnp.ones((1, npix), jnp.float32)
    ps_ref[0, 0, 0:1, :] = jnp.dot(ones, acc, preferred_element_type=jnp.float32)
    ps_ref[0, 0, 1:2, :] = jnp.dot(ones, acc * acc,
                                   preferred_element_type=jnp.float32)


# -----------------------------------------------------------------------------
# Phase 2 kernel: fused (y - mean)*gamma*rsqrt(var+eps) + beta as ONE FMA with
#                 precomputed scale/shift, then ReLU.  Lane-dense layout.
# -----------------------------------------------------------------------------
def _bn_relu_kernel(y_ref, scale_ref, shift_ref, o_ref):
    # y_ref     : (TR, W*Cout) f32
    # scale_ref : (1, W*Cout)  f32   gamma * rsqrt(var + eps), tiled over W
    # shift_ref : (1, W*Cout)  f32   beta - mean * scale,       tiled over W
    # o_ref     : (TR, W*Cout) bf16
    o_ref[...] = jnp.maximum(
        y_ref[...] * scale_ref[...] + shift_ref[...], 0.0
    ).astype(o_ref.dtype)


# -----------------------------------------------------------------------------
# Tiling / VMEM helpers
# -----------------------------------------------------------------------------
def _pick_row_tile(H, W, cin, cout, requested=None):
    """Largest divisor of H whose phase-1 tile working set fits the budget."""
    cap = H if requested is None else max(1, min(H, int(requested)))
    # ~4 MiB per buffer set: with double-buffered inputs/outputs this stays
    # far below v7x's 32 MiB scoped / 64 MiB physical VMEM (and below v5e's
    # 16 MiB scoped default).
    budget = 4 * 1024 * 1024
    best = 1
    for th in range(1, cap + 1):
        if H % th:
            continue
        need = ((th + 2) * (W + 2) * cin * 2     # bf16 halo tile
                + 2 * th * W * cout * 4)         # f32 acc + y tile
        if need <= budget:
            best = th
    return best


def _pick_phase2_rows(R, target=1024):
    """Largest multiple-of-8 divisor of R up to `target` (else the full R)."""
    best = None
    for tr in range(8, min(R, target) + 1, 8):
        if R % tr == 0:
            best = tr
    return best if best is not None else R


def _vmem_limit(working_set_bytes):
    # Explicit scoped-VMEM request, sized against v7x (smallest physical VMEM).
    return int(min(48 * 1024 * 1024, max(16 * 1024 * 1024, 4 * working_set_bytes)))


# -----------------------------------------------------------------------------
# One Block (Conv3x3 pad=1 [bias folded away] + BN(train) + ReLU), NHWC bf16.
# -----------------------------------------------------------------------------
def block_forward_nhwc(x_nhwc, w_oihw, gamma, beta, *, block_rows=None):
    N, H, W, Cin = x_nhwc.shape
    Cout = w_oihw.shape[0]

    th = _pick_row_tile(H, W, Cin, Cout, block_rows)
    nh = H // th

    # Halo-extended row tiles: only a (th+2)/th duplication of the activation
    # (vs the 9x HBM im2col this replaces).  The 3x3 neighborhoods themselves
    # are generated inside the kernel from this tile.
    xp = jnp.pad(x_nhwc.astype(jnp.bfloat16), ((0, 0), (1, 1), (1, 1), (0, 0)))
    rows = jnp.arange(nh)[:, None] * th + jnp.arange(th + 2)[None, :]
    xh = xp[:, rows]                                   # (N, nh, th+2, W+2, Cin)

    # (Cout, Cin, Ky, Kx) -> (Ky, Kx, Cin, Cout) -> (9, Cin, Cout), bf16 for MXU.
    w9 = jnp.transpose(w_oihw, (2, 3, 1, 0)).reshape(9, Cin, Cout).astype(jnp.bfloat16)

    x_tile_b = (th + 2) * (W + 2) * Cin * 2
    y_tile_b = th * W * Cout * 4
    p1_work = 2 * (x_tile_b + 2 * y_tile_b) + w9.size * 2

    # TODO(synk): the f32 pre-BN `y` intermediate could be stored in bf16 and
    # phase 2 fused into the NEXT Block's phase 1 to cut another HBM round
    # trip; kept as two calls with f32 `y` here for numerical clarity.
    y, ps = pl.pallas_call(
        _conv_stats_kernel,
        out_shape=(
            jax.ShapeDtypeStruct((N, nh, th * W, Cout), jnp.float32),
            jax.ShapeDtypeStruct((N, nh, 2, Cout), jnp.float32),
        ),
        grid=(N, nh),
        in_specs=[
            pl.BlockSpec((1, 1, th + 2, W + 2, Cin), lambda n, h: (n, h, 0, 0, 0)),
            pl.BlockSpec((9, Cin, Cout), lambda n, h: (0, 0, 0)),
        ],
        out_specs=(
            pl.BlockSpec((1, 1, th * W, Cout), lambda n, h: (n, h, 0, 0)),
            pl.BlockSpec((1, 1, 2, Cout), lambda n, h: (n, h, 0, 0)),
        ),
        compiler_params=pltpu.CompilerParams(
            dimension_semantics=("parallel", "parallel"),
            vmem_limit_bytes=_vmem_limit(p1_work),
        ),
        cost_estimate=pl.CostEstimate(
            flops=2 * N * H * W * 9 * Cin * Cout,
            transcendentals=0,
            bytes_accessed=(xh.size * 2 + w9.size * 2
                            + N * H * W * Cout * 4 + N * nh * 2 * Cout * 4),
        ),
    )(xh, w9)

    # Finalize BN statistics (tiny (Cout,) vectors; plain XLA).
    m_total = float(N * H * W)
    s = jnp.sum(ps[:, :, 0, :], axis=(0, 1))
    ss = jnp.sum(ps[:, :, 1, :], axis=(0, 1))
    mean = s / m_total
    var = jnp.maximum(ss / m_total - mean * mean, 0.0)
    scale = gamma.astype(jnp.float32) * jax.lax.rsqrt(var + BN_EPS)
    shift = beta.astype(jnp.float32) - mean * scale

    # Lane-dense phase 2: view y as (N*H, W*Cout) (free, contiguous reshape)
    # so loads and the bf16 activation store use full 128-lane vectors even
    # when Cout is small.
    R = N * H
    WC = W * Cout
    y2 = y.reshape(R, WC)
    scale_row = jnp.tile(scale, (W,)).reshape(1, WC)
    shift_row = jnp.tile(shift, (W,)).reshape(1, WC)

    tr = _pick_phase2_rows(R)
    out2 = pl.pallas_call(
        _bn_relu_kernel,
        out_shape=jax.ShapeDtypeStruct((R, WC), jnp.bfloat16),
        grid=(R // tr,),
        in_specs=[
            pl.BlockSpec((tr, WC), lambda i: (i, 0)),
            pl.BlockSpec((1, WC), lambda i: (0, 0)),
            pl.BlockSpec((1, WC), lambda i: (0, 0)),
        ],
        out_specs=pl.BlockSpec((tr, WC), lambda i: (i, 0)),
        compiler_params=pltpu.CompilerParams(
            dimension_semantics=("parallel",),
            vmem_limit_bytes=_vmem_limit(2 * tr * WC * (4 + 2)),
        ),
        cost_estimate=pl.CostEstimate(
            flops=2 * R * WC,
            transcendentals=0,
            bytes_accessed=R * WC * 4 + R * WC * 2 + 2 * WC * 4,
        ),
    )(y2, scale_row, shift_row)

    return out2.reshape(N, H, W, Cout)


# -----------------------------------------------------------------------------
# Parameters / Layer forward / reference
# -----------------------------------------------------------------------------
def init_layer_params(key, in_channels, layer_list):
    params = []
    c_in = in_channels
    for c_out in layer_list:
        key, kw, kb, kg, kbe = jax.random.split(key, 5)
        fan_in = c_in * 9
        bound = 1.0 / jnp.sqrt(fan_in)
        w = jax.random.uniform(kw, (c_out, c_in, 3, 3), jnp.float32, -bound, bound)
        b = jax.random.uniform(kb, (c_out,), jnp.float32, -bound, bound)
        gamma = 1.0 + 0.1 * jax.random.normal(kg, (c_out,), jnp.float32)
        beta = 0.1 * jax.random.normal(kbe, (c_out,), jnp.float32)
        params.append((w, b, gamma, beta))
        c_in = c_out
    return params


@functools.partial(jax.jit, static_argnames=("block_rows",))
def layer_forward(x_nchw, params, block_rows=None):
    """Layer.forward: sequential Blocks.  NCHW in / NCHW out like PyTorch."""
    x = jnp.transpose(x_nchw, (0, 2, 3, 1)).astype(jnp.bfloat16)   # NCHW -> NHWC
    for (w, _b, gamma, beta) in params:
        # _b (conv bias) is cancelled exactly by training-mode BN mean subtraction.
        x = block_forward_nhwc(x, w, gamma, beta, block_rows=block_rows)
    return jnp.transpose(x, (0, 3, 1, 2)).astype(jnp.float32)      # NHWC -> NCHW


def _reference_layer(x_nchw, params):
    """Pure-JAX f32 reference (lax conv + bias + training-mode BN + ReLU)."""
    x = x_nchw
    for (w, b, gamma, beta) in params:
        y = jax.lax.conv_general_dilated(
            x, w, window_strides=(1, 1), padding=((1, 1), (1, 1)),
            dimension_numbers=("NCHW", "OIHW", "NCHW"),
        ) + b[None, :, None, None]
        mean = jnp.mean(y, axis=(0, 2, 3), keepdims=True)
        var = jnp.mean((y - mean) ** 2, axis=(0, 2, 3), keepdims=True)
        yn = (y - mean) * jax.lax.rsqrt(var + BN_EPS)
        yn = yn * gamma[None, :, None, None] + beta[None, :, None, None]
        x = jnp.maximum(yn, 0.0)
    return x


if __name__ == "__main__":
    key = jax.random.PRNGKey(0)
    k_x, k_p = jax.random.split(key)

    in_channels = 4
    layer_list = [8, 8]          # Layer(4, [8, 8])
    N, H, W = 2, 16, 16

    x = jax.random.normal(k_x, (N, in_channels, H, W), jnp.float32)
    params = init_layer_params(k_p, in_channels, layer_list)

    # block_rows=8 -> two row tiles per image: phase-1 grid is (2, 2), so the
    # tiled/pipelined path is actually exercised at this small size.
    out = layer_forward(x, params, block_rows=8)
    out = jax.block_until_ready(out)

    ref = _reference_layer(x, params)
    assert out.shape == (N, layer_list[-1], H, W)
    max_err = jnp.max(jnp.abs(out - ref))
    assert jnp.allclose(out, ref, rtol=5e-2, atol=5e-2), (
        f"mismatch vs reference, max abs err = {max_err}")

    print("KERNEL_OK")
</pallas_src>

<mosaic_0001>
module attributes {stable_mosaic.version = 11 : i64} {
  func.func @_bn_relu_kernel(%arg0: i32, %arg1: memref<32x128xf32, #tpu.memory_space<vmem>>, %arg2: memref<1x128xf32, #tpu.memory_space<vmem>>, %arg3: memref<1x128xf32, #tpu.memory_space<vmem>>, %arg4: memref<32x128xbf16, #tpu.memory_space<vmem>>) attributes {dimension_semantics = [#tpu.dimension_semantics<parallel>], iteration_bounds = array<i64: 1>, scalar_prefetch = 0 : i64, scratch_operands = 0 : i64, tpu.core_type = #tpu.core_type<tc>, window_params = [{transform_indices = @transform_0, window_bounds = array<i64: 32, 128>}, {pipeline_mode = #tpu.pipeline_mode<synchronous>, transform_indices = @transform_1, window_bounds = array<i64: 1, 128>}, {pipeline_mode = #tpu.pipeline_mode<synchronous>, transform_indices = @transform_2, window_bounds = array<i64: 1, 128>}, {transform_indices = @transform_3, window_bounds = array<i64: 32, 128>}]} {
    %c0 = arith.constant 0 : index
    %c0_0 = arith.constant 0 : index
    %0 = vector.load %arg1[%c0, %c0_0] : memref<32x128xf32, #tpu.memory_space<vmem>>, vector<32x128xf32>
    %c0_1 = arith.constant 0 : index
    %c0_2 = arith.constant 0 : index
    %1 = vector.load %arg2[%c0_1, %c0_2] : memref<1x128xf32, #tpu.memory_space<vmem>>, vector<1x128xf32>
    %2 = vector.broadcast %1 : vector<1x128xf32> to vector<32x128xf32>
    %3 = arith.mulf %0, %2 : vector<32x128xf32>
    %c0_3 = arith.constant 0 : index
    %c0_4 = arith.constant 0 : index
    %4 = vector.load %arg3[%c0_3, %c0_4] : memref<1x128xf32, #tpu.memory_space<vmem>>, vector<1x128xf32>
    %5 = vector.broadcast %4 : vector<1x128xf32> to vector<32x128xf32>
    %6 = arith.addf %3, %5 : vector<32x128xf32>
    %cst = arith.constant 0.000000e+00 : f32
    %7 = vector.broadcast %cst : f32 to vector<32x128xf32>
    %8 = arith.maximumf %6, %7 : vector<32x128xf32>
    %9 = arith.truncf %8 : vector<32x128xf32> to vector<32x128xbf16>
    %c0_5 = arith.constant 0 : index
    %c0_6 = arith.constant 0 : index
    %10 = vector.load %arg4[%c0_5, %c0_6] : memref<32x128xbf16, #tpu.memory_space<vmem>>, vector<32x128xbf16>
    tpu.vector_store %arg4[%c0_5, %c0_6], %9 {strides = array<i32>} : memref<32x128xbf16, #tpu.memory_space<vmem>>, vector<32x128xbf16>,
    return
  }
  func.func @transform_0(%arg0: i32) -> (i32, i32) {
    %c0_i32 = arith.constant 0 : i32
    %c0_i32_0 = arith.constant 0 : i32
    return %arg0, %c0_i32 : i32, i32
  }
  func.func @transform_1(%arg0: i32) -> (i32, i32) {
    %c0_i32 = arith.constant 0 : i32
    %c0_i32_0 = arith.constant 0 : i32
    %c0_i32_1 = arith.constant 0 : i32
    return %c0_i32, %c0_i32_0 : i32, i32
  }
  func.func @transform_2(%arg0: i32) -> (i32, i32) {
    %c0_i32 = arith.constant 0 : i32
    %c0_i32_0 = arith.constant 0 : i32
    %c0_i32_1 = arith.constant 0 : i32
    return %c0_i32, %c0_i32_0 : i32, i32
  }
  func.func @transform_3(%arg0: i32) -> (i32, i32) {
    %c0_i32 = arith.constant 0 : i32
    %c0_i32_0 = arith.constant 0 : i32
    return %arg0, %c0_i32 : i32, i32
  }
}

module attributes {stable_mosaic.version = 11 : i64} {
  func.func @_conv_stats_kernel(%arg0: i32, %arg1: i32, %arg2: memref<1x1x10x18x4xbf16, #tpu.memory_space<vmem>>, %arg3: memref<9x4x8xbf16, #tpu.memory_space<vmem>>, %arg4: memref<1x1x128x8xf32, #tpu.memory_space<vmem>>, %arg5: memref<1x1x2x8xf32, #tpu.memory_space<vmem>>) attributes {dimension_semantics = [#tpu.dimension_semantics<parallel>, #tpu.dimension_semantics<parallel>], iteration_bounds = array<i64: 2, 2>, scalar_prefetch = 0 : i64, scratch_operands = 0 : i64, tpu.core_type = #tpu.core_type<tc>, window_params = [{transform_indices = @transform_0, window_bounds = array<i64: 1, 1, 10, 18, 4>}, {pipeline_mode = #tpu.pipeline_mode<synchronous>, transform_indices = @transform_1, window_bounds = array<i64: 9, 4, 8>}, {transform_indices = @transform_2, window_bounds = array<i64: 1, 1, 128, 8>}, {transform_indices = @transform_3, window_bounds = array<i64: 1, 1, 2, 8>}]} {
    %c0 = arith.constant 0 : index
    %c0_0 = arith.constant 0 : index
    %c0_1 = arith.constant 0 : index
    %c0_2 = arith.constant 0 : index
    %c0_3 = arith.constant 0 : index
    %0 = vector.load %arg2[%c0, %c0_0, %c0_1, %c0_2, %c0_3] : memref<1x1x10x18x4xbf16, #tpu.memory_space<vmem>>, vector<1x1x10x18x4xbf16>
    %1 = vector.shape_cast %0 : vector<1x1x10x18x4xbf16> to vector<10x18x4xbf16>
    %cst = arith.constant 0.000000e+00 : f32
    %2 = vector.broadcast %cst : f32 to vector<128x8xf32>
    %3 = vector.extract_strided_slice %1 {offsets = [0, 0, 0], sizes = [8, 16, 4], strides = [1, 1, 1]} : vector<10x18x4xbf16> to vector<8x16x4xbf16>
    %4 = vector.shape_cast %3 : vector<8x16x4xbf16> to vector<128x4xbf16>
    %c0_4 = arith.constant 0 : index
    %c0_5 = arith.constant 0 : index
    %c0_6 = arith.constant 0 : index
    %5 = vector.load %arg3[%c0_4, %c0_5, %c0_6] : memref<9x4x8xbf16, #tpu.memory_space<vmem>>, vector<1x4x8xbf16>
    %6 = vector.shape_cast %5 : vector<1x4x8xbf16> to vector<4x8xbf16>
    %cst_7 = arith.constant dense<0.000000e+00> : vector<128x8xf32>
    %7 = tpu.matmul %4, %6, %cst_7 {dimension_numbers = #tpu.dot_dimension_numbers<[1], [0], [0], [1], [0, 0, 1, 1], [], []>} : vector<128x4xbf16>, vector<4x8xbf16>, vector<128x8xf32> -> vector<128x8xf32>
    %8 = arith.addf %2, %7 : vector<128x8xf32>
    %9 = vector.extract_strided_slice %1 {offsets = [0, 1, 0], sizes = [8, 16, 4], strides = [1, 1, 1]} : vector<10x18x4xbf16> to vector<8x16x4xbf16>
    %10 = vector.shape_cast %9 : vector<8x16x4xbf16> to vector<128x4xbf16>
    %c1 = arith.constant 1 : index
    %c0_8 = arith.constant 0 : index
    %c0_9 = arith.constant 0 : index
    %11 = vector.load %arg3[%c1, %c0_8, %c0_9] : memref<9x4x8xbf16, #tpu.memory_space<vmem>>, vector<1x4x8xbf16>
    %12 = vector.shape_cast %11 : vector<1x4x8xbf16> to vector<4x8xbf16>
    %cst_10 = arith.constant dense<0.000000e+00> : vector<128x8xf32>
    %13 = tpu.matmul %10, %12, %cst_10 {dimension_numbers = #tpu.dot_dimension_numbers<[1], [0], [0], [1], [0, 0, 1, 1], [], []>} : vector<128x4xbf16>, vector<4x8xbf16>, vector<128x8xf32> -> vector<128x8xf32>
    %14 = arith.addf %8, %13 : vector<128x8xf32>
    %15 = vector.extract_strided_slice %1 {offsets = [0, 2, 0], sizes = [8, 16, 4], strides = [1, 1, 1]} : vector<10x18x4xbf16> to vector<8x16x4xbf16>
    %16 = vector.shape_cast %15 : vector<8x16x4xbf16> to vector<128x4xbf16>
    %c2 = arith.constant 2 : index
    %c0_11 = arith.constant 0 : index
    %c0_12 = arith.constant 0 : index
    %17 = vector.load %arg3[%c2, %c0_11, %c0_12] : memref<9x4x8xbf16, #tpu.memory_space<vmem>>, vector<1x4x8xbf16>
    %18 = vector.shape_cast %17 : vector<1x4x8xbf16> to vector<4x8xbf16>
    %cst_13 = arith.constant dense<0.000000e+00> : vector<128x8xf32>
    %19 = tpu.matmul %16, %18, %cst_13 {dimension_numbers = #tpu.dot_dimension_numbers<[1], [0], [0], [1], [0, 0, 1, 1], [], []>} : vector<128x4xbf16>, vector<4x8xbf16>, vector<128x8xf32> -> vector<128x8xf32>
    %20 = arith.addf %14, %19 : vector<128x8xf32>
    %21 = vector.extract_strided_slice %1 {offsets = [1, 0, 0], sizes = [8, 16, 4], strides = [1, 1, 1]} : vector<10x18x4xbf16> to vector<8x16x4xbf16>
    %22 = vector.shape_cast %21 : vector<8x16x4xbf16> to vector<128x4xbf16>
    %c3 = arith.constant 3 : index
    %c0_14 = arith.constant 0 : index
    %c0_15 = arith.constant 0 : index
    %23 = vector.load %arg3[%c3, %c0_14, %c0_15] : memref<9x4x8xbf16, #tpu.memory_space<vmem>>, vector<1x4x8xbf16>
    %24 = vector.shape_cast %23 : vector<1x4x8xbf16> to vector<4x8xbf16>
    %cst_16 = arith.constant dense<0.000000e+00> : vector<128x8xf32>
    %25 = tpu.matmul %22, %24, %cst_16 {dimension_numbers = #tpu.dot_dimension_numbers<[1], [0], [0], [1], [0, 0, 1, 1], [], []>} : vector<128x4xbf16>, vector<4x8xbf16>, vector<128x8xf32> -> vector<128x8xf32>
    %26 = arith.addf %20, %25 : vector<128x8xf32>
    %27 = vector.extract_strided_slice %1 {offsets = [1, 1, 0], sizes = [8, 16, 4], strides = [1, 1, 1]} : vector<10x18x4xbf16> to vector<8x16x4xbf16>
    %28 = vector.shape_cast %27 : vector<8x16x4xbf16> to vector<128x4xbf16>
    %c4 = arith.constant 4 : index
    %c0_17 = arith.constant 0 : index
    %c0_18 = arith.constant 0 : index
    %29 = vector.load %arg3[%c4, %c0_17, %c0_18] : memref<9x4x8xbf16, #tpu.memory_space<vmem>>, vector<1x4x8xbf16>
    %30 = vector.shape_cast %29 : vector<1x4x8xbf16> to vector<4x8xbf16>
    %cst_19 = arith.constant dense<0.000000e+00> : vector<128x8xf32>
    %31 = tpu.matmul %28, %30, %cst_19 {dimension_numbers = #tpu.dot_dimension_numbers<[1], [0], [0], [1], [0, 0, 1, 1], [], []>} : vector<128x4xbf16>, vector<4x8xbf16>, vector<128x8xf32> -> vector<128x8xf32>
    %32 = arith.addf %26, %31 : vector<128x8xf32>
    %33 = vector.extract_strided_slice %1 {offsets = [1, 2, 0], sizes = [8, 16, 4], strides = [1, 1, 1]} : vector<10x18x4xbf16> to vector<8x16x4xbf16>
    %34 = vector.shape_cast %33 : vector<8x16x4xbf16> to vector<128x4xbf16>
    %c5 = arith.constant 5 : index
    %c0_20 = arith.constant 0 : index
    %c0_21 = arith.constant 0 : index
    %35 = vector.load %arg3[%c5, %c0_20, %c0_21] : memref<9x4x8xbf16, #tpu.memory_space<vmem>>, vector<1x4x8xbf16>
    %36 = vector.shape_cast %35 : vector<1x4x8xbf16> to vector<4x8xbf16>
    %cst_22 = arith.constant dense<0.000000e+00> : vector<128x8xf32>
    %37 = tpu.matmul %34, %36, %cst_22 {dimension_numbers = #tpu.dot_dimension_numbers<[1], [0], [0], [1], [0, 0, 1, 1], [], []>} : vector<128x4xbf16>, vector<4x8xbf16>, vector<128x8xf32> -> vector<128x8xf32>
    %38 = arith.addf %32, %37 : vector<128x8xf32>
    %39 = vector.extract_strided_slice %1 {offsets = [2, 0, 0], sizes = [8, 16, 4], strides = [1, 1, 1]} : vector<10x18x4xbf16> to vector<8x16x4xbf16>
    %40 = vector.shape_cast %39 : vector<8x16x4xbf16> to vector<128x4xbf16>
    %c6 = arith.constant 6 : index
    %c0_23 = arith.constant 0 : index
    %c0_24 = arith.constant 0 : index
    %41 = vector.load %arg3[%c6, %c0_23, %c0_24] : memref<9x4x8xbf16, #tpu.memory_space<vmem>>, vector<1x4x8xbf16>
    %42 = vector.shape_cast %41 : vector<1x4x8xbf16> to vector<4x8xbf16>
    %cst_25 = arith.constant dense<0.000000e+00> : vector<128x8xf32>
    %43 = tpu.matmul %40, %42, %cst_25 {dimension_numbers = #tpu.dot_dimension_numbers<[1], [0], [0], [1], [0, 0, 1, 1], [], []>} : vector<128x4xbf16>, vector<4x8xbf16>, vector<128x8xf32> -> vector<128x8xf32>
    %44 = arith.addf %38, %43 : vector<128x8xf32>
    %45 = vector.extract_strided_slice %1 {offsets = [2, 1, 0], sizes = [8, 16, 4], strides = [1, 1, 1]} : vector<10x18x4xbf16> to vector<8x16x4xbf16>
    %46 = vector.shape_cast %45 : vector<8x16x4xbf16> to vector<128x4xbf16>
    %c7 = arith.constant 7 : index
    %c0_26 = arith.constant 0 : index
    %c0_27 = arith.constant 0 : index
    %47 = vector.load %arg3[%c7, %c0_26, %c0_27] : memref<9x4x8xbf16, #tpu.memory_space<vmem>>, vector<1x4x8xbf16>
    %48 = vector.shape_cast %47 : vector<1x4x8xbf16> to vector<4x8xbf16>
    %cst_28 = arith.constant dense<0.000000e+00> : vector<128x8xf32>
    %49 = tpu.matmul %46, %48, %cst_28 {dimension_numbers = #tpu.dot_dimension_numbers<[1], [0], [0], [1], [0, 0, 1, 1], [], []>} : vector<128x4xbf16>, vector<4x8xbf16>, vector<128x8xf32> -> vector<128x8xf32>
    %50 = arith.addf %44, %49 : vector<128x8xf32>
    %51 = vector.extract_strided_slice %1 {offsets = [2, 2, 0], sizes = [8, 16, 4], strides = [1, 1, 1]} : vector<10x18x4xbf16> to vector<8x16x4xbf16>
    %52 = vector.shape_cast %51 : vector<8x16x4xbf16> to vector<128x4xbf16>
    %c8 = arith.constant 8 : index
    %c0_29 = arith.constant 0 : index
    %c0_30 = arith.constant 0 : index
    %53 = vector.load %arg3[%c8, %c0_29, %c0_30] : memref<9x4x8xbf16, #tpu.memory_space<vmem>>, vector<1x4x8xbf16>
    %54 = vector.shape_cast %53 : vector<1x4x8xbf16> to vector<4x8xbf16>
    %cst_31 = arith.constant dense<0.000000e+00> : vector<128x8xf32>
    %55 = tpu.matmul %52, %54, %cst_31 {dimension_numbers = #tpu.dot_dimension_numbers<[1], [0], [0], [1], [0, 0, 1, 1], [], []>} : vector<128x4xbf16>, vector<4x8xbf16>, vector<128x8xf32> -> vector<128x8xf32>
    %56 = arith.addf %50, %55 : vector<128x8xf32>
    %c0_32 = arith.constant 0 : index
    %c0_33 = arith.constant 0 : index
    %c0_34 = arith.constant 0 : index
    %c0_35 = arith.constant 0 : index
    %57 = vector.load %arg4[%c0_32, %c0_33, %c0_34, %c0_35] : memref<1x1x128x8xf32, #tpu.memory_space<vmem>>, vector<1x1x128x8xf32>
    %58 = vector.shape_cast %57 : vector<1x1x128x8xf32> to vector<128x8xf32>
    %59 = vector.shape_cast %56 : vector<128x8xf32> to vector<1x1x128x8xf32>
    tpu.vector_store %arg4[%c0_32, %c0_33, %c0_34, %c0_35], %59 {strides = array<i32>} : memref<1x1x128x8xf32, #tpu.memory_space<vmem>>, vector<1x1x128x8xf32>,
    %cst_36 = arith.constant 1.000000e+00 : f32
    %60 = vector.broadcast %cst_36 : f32 to vector<1x128xf32>
    %cst_37 = arith.constant dense<0.000000e+00> : vector<1x8xf32>
    %61 = tpu.matmul %60, %56, %cst_37 {dimension_numbers = #tpu.dot_dimension_numbers<[1], [0], [0], [1], [0, 0, 1, 1], [], []>} : vector<1x128xf32>, vector<128x8xf32>, vector<1x8xf32> -> vector<1x8xf32>
    %c0_38 = arith.constant 0 : index
    %c0_39 = arith.constant 0 : index
    %c0_40 = arith.constant 0 : index
    %c0_41 = arith.constant 0 : index
    %62 = vector.load %arg5[%c0_38, %c0_39, %c0_40, %c0_41] : memref<1x1x2x8xf32, #tpu.memory_space<vmem>>, vector<1x1x1x8xf32>
    %63 = vector.shape_cast %62 : vector<1x1x1x8xf32> to vector<1x8xf32>
    %64 = vector.shape_cast %61 : vector<1x8xf32> to vector<1x1x1x8xf32>
    tpu.vector_store %arg5[%c0_38, %c0_39, %c0_40, %c0_41], %64 {strides = array<i32>} : memref<1x1x2x8xf32, #tpu.memory_space<vmem>>, vector<1x1x1x8xf32>,
    %65 = arith.mulf %56, %56 : vector<128x8xf32>
    %cst_42 = arith.constant dense<0.000000e+00> : vector<1x8xf32>
    %66 = tpu.matmul %60, %65, %cst_42 {dimension_numbers = #tpu.dot_dimension_numbers<[1], [0], [0], [1], [0, 0, 1, 1], [], []>} : vector<1x128xf32>, vector<128x8xf32>, vector<1x8xf32> -> vector<1x8xf32>
    %c0_43 = arith.constant 0 : index
    %c0_44 = arith.constant 0 : index
    %c1_45 = arith.constant 1 : index
    %c0_46 = arith.constant 0 : index
    %67 = vector.load %arg5[%c0_43, %c0_44, %c1_45, %c0_46] : memref<1x1x2x8xf32, #tpu.memory_space<vmem>>, vector<1x1x1x8xf32>
    %68 = vector.shape_cast %67 : vector<1x1x1x8xf32> to vector<1x8xf32>
    %69 = vector.shape_cast %66 : vector<1x8xf32> to vector<1x1x1x8xf32>
    tpu.vector_store %arg5[%c0_43, %c0_44, %c1_45, %c0_46], %69 {strides = array<i32>} : memref<1x1x2x8xf32, #tpu.memory_space<vmem>>, vector<1x1x1x8xf32>,
    return
  }
  func.func @transform_0(%arg0: i32, %arg1: i32) -> (i32, i32, i32, i32, i32) {
    %c0_i32 = arith.constant 0 : i32
    %c0_i32_0 = arith.constant 0 : i32
    %c0_i32_1 = arith.constant 0 : i32
    %c0_i32_2 = arith.constant 0 : i32
    return %arg0, %arg1, %c0_i32, %c0_i32_0, %c0_i32_1 : i32, i32, i32, i32, i32
  }
  func.func @transform_1(%arg0: i32, %arg1: i32) -> (i32, i32, i32) {
    %c0_i32 = arith.constant 0 : i32
    %c0_i32_0 = arith.constant 0 : i32
    %c0_i32_1 = arith.constant 0 : i32
    %c0_i32_2 = arith.constant 0 : i32
    return %c0_i32, %c0_i32_0, %c0_i32_1 : i32, i32, i32
  }
  func.func @transform_2(%arg0: i32, %arg1: i32) -> (i32, i32, i32, i32) {
    %c0_i32 = arith.constant 0 : i32
    %c0_i32_0 = arith.constant 0 : i32
    %c0_i32_1 = arith.constant 0 : i32
    return %arg0, %arg1, %c0_i32, %c0_i32_0 : i32, i32, i32, i32
  }
  func.func @transform_3(%arg0: i32, %arg1: i32) -> (i32, i32, i32, i32) {
    %c0_i32 = arith.constant 0 : i32
    %c0_i32_0 = arith.constant 0 : i32
    %c0_i32_1 = arith.constant 0 : i32
    return %arg0, %arg1, %c0_i32, %c0_i32_0 : i32, i32, i32, i32
  }
}

module attributes {stable_mosaic.version = 11 : i64} {
  func.func @_conv_stats_kernel(%arg0: i32, %arg1: i32, %arg2: memref<1x1x10x18x8xbf16, #tpu.memory_space<vmem>>, %arg3: memref<9x8x8xbf16, #tpu.memory_space<vmem>>, %arg4: memref<1x1x128x8xf32, #tpu.memory_space<vmem>>, %arg5: memref<1x1x2x8xf32, #tpu.memory_space<vmem>>) attributes {dimension_semantics = [#tpu.dimension_semantics<parallel>, #tpu.dimension_semantics<parallel>], iteration_bounds = array<i64: 2, 2>, scalar_prefetch = 0 : i64, scratch_operands = 0 : i64, tpu.core_type = #tpu.core_type<tc>, window_params = [{transform_indices = @transform_0, window_bounds = array<i64: 1, 1, 10, 18, 8>}, {pipeline_mode = #tpu.pipeline_mode<synchronous>, transform_indices = @transform_1, window_bounds = array<i64: 9, 8, 8>}, {transform_indices = @transform_2, window_bounds = array<i64: 1, 1, 128, 8>}, {transform_indices = @transform_3, window_bounds = array<i64: 1, 1, 2, 8>}]} {
    %c0 = arith.constant 0 : index
    %c0_0 = arith.constant 0 : index
    %c0_1 = arith.constant 0 : index
    %c0_2 = arith.constant 0 : index
    %c0_3 = arith.constant 0 : index
    %0 = vector.load %arg2[%c0, %c0_0, %c0_1, %c0_2, %c0_3] : memref<1x1x10x18x8xbf16, #tpu.memory_space<vmem>>, vector<1x1x10x18x8xbf16>
    %1 = vector.shape_cast %0 : vector<1x1x10x18x8xbf16> to vector<10x18x8xbf16>
    %cst = arith.constant 0.000000e+00 : f32
    %2 = vector.broadcast %cst : f32 to vector<128x8xf32>
    %3 = vector.extract_strided_slice %1 {offsets = [0, 0, 0], sizes = [8, 16, 8], strides = [1, 1, 1]} : vector<10x18x8xbf16> to vector<8x16x8xbf16>
    %4 = vector.shape_cast %3 : vector<8x16x8xbf16> to vector<128x8xbf16>
    %c0_4 = arith.constant 0 : index
    %c0_5 = arith.constant 0 : index
    %c0_6 = arith.constant 0 : index
    %5 = vector.load %arg3[%c0_4, %c0_5, %c0_6] : memref<9x8x8xbf16, #tpu.memory_space<vmem>>, vector<1x8x8xbf16>
    %6 = vector.shape_cast %5 : vector<1x8x8xbf16> to vector<8x8xbf16>
    %cst_7 = arith.constant dense<0.000000e+00> : vector<128x8xf32>
    %7 = tpu.matmul %4, %6, %cst_7 {dimension_numbers = #tpu.dot_dimension_numbers<[1], [0], [0], [1], [0, 0, 1, 1], [], []>} : vector<128x8xbf16>, vector<8x8xbf16>, vector<128x8xf32> -> vector<128x8xf32>
    %8 = arith.addf %2, %7 : vector<128x8xf32>
    %9 = vector.extract_strided_slice %1 {offsets = [0, 1, 0], sizes = [8, 16, 8], strides = [1, 1, 1]} : vector<10x18x8xbf16> to vector<8x16x8xbf16>
    %10 = vector.shape_cast %9 : vector<8x16x8xbf16> to vector<128x8xbf16>
    %c1 = arith.constant 1 : index
    %c0_8 = arith.constant 0 : index
    %c0_9 = arith.constant 0 : index
    %11 = vector.load %arg3[%c1, %c0_8, %c0_9] : memref<9x8x8xbf16, #tpu.memory_space<vmem>>, vector<1x8x8xbf16>
    %12 = vector.shape_cast %11 : vector<1x8x8xbf16> to vector<8x8xbf16>
    %cst_10 = arith.constant dense<0.000000e+00> : vector<128x8xf32>
    %13 = tpu.matmul %10, %12, %cst_10 {dimension_numbers = #tpu.dot_dimension_numbers<[1], [0], [0], [1], [0, 0, 1, 1], [], []>} : vector<128x8xbf16>, vector<8x8xbf16>, vector<128x8xf32> -> vector<128x8xf32>
    %14 = arith.addf %8, %13 : vector<128x8xf32>
    %15 = vector.extract_strided_slice %1 {offsets = [0, 2, 0], sizes = [8, 16, 8], strides = [1, 1, 1]} : vector<10x18x8xbf16> to vector<8x16x8xbf16>
    %16 = vector.shape_cast %15 : vector<8x16x8xbf16> to vector<128x8xbf16>
    %c2 = arith.constant 2 : index
    %c0_11 = arith.constant 0 : index
    %c0_12 = arith.constant 0 : index
    %17 = vector.load %arg3[%c2, %c0_11, %c0_12] : memref<9x8x8xbf16, #tpu.memory_space<vmem>>, vector<1x8x8xbf16>
    %18 = vector.shape_cast %17 : vector<1x8x8xbf16> to vector<8x8xbf16>
    %cst_13 = arith.constant dense<0.000000e+00> : vector<128x8xf32>
    %19 = tpu.matmul %16, %18, %cst_13 {dimension_numbers = #tpu.dot_dimension_numbers<[1], [0], [0], [1], [0, 0, 1, 1], [], []>} : vector<128x8xbf16>, vector<8x8xbf16>, vector<128x8xf32> -> vector<128x8xf32>
    %20 = arith.addf %14, %19 : vector<128x8xf32>
    %21 = vector.extract_strided_slice %1 {offsets = [1, 0, 0], sizes = [8, 16, 8], strides = [1, 1, 1]} : vector<10x18x8xbf16> to vector<8x16x8xbf16>
    %22 = vector.shape_cast %21 : vector<8x16x8xbf16> to vector<128x8xbf16>
    %c3 = arith.constant 3 : index
    %c0_14 = arith.constant 0 : index
    %c0_15 = arith.constant 0 : index
    %23 = vector.load %arg3[%c3, %c0_14, %c0_15] : memref<9x8x8xbf16, #tpu.memory_space<vmem>>, vector<1x8x8xbf16>
    %24 = vector.shape_cast %23 : vector<1x8x8xbf16> to vector<8x8xbf16>
    %cst_16 = arith.constant dense<0.000000e+00> : vector<128x8xf32>
    %25 = tpu.matmul %22, %24, %cst_16 {dimension_numbers = #tpu.dot_dimension_numbers<[1], [0], [0], [1], [0, 0, 1, 1], [], []>} : vector<128x8xbf16>, vector<8x8xbf16>, vector<128x8xf32> -> vector<128x8xf32>
    %26 = arith.addf %20, %25 : vector<128x8xf32>
    %27 = vector.extract_strided_slice %1 {offsets = [1, 1, 0], sizes = [8, 16, 8], strides = [1, 1, 1]} : vector<10x18x8xbf16> to vector<8x16x8xbf16>
    %28 = vector.shape_cast %27 : vector<8x16x8xbf16> to vector<128x8xbf16>
    %c4 = arith.constant 4 : index
    %c0_17 = arith.constant 0 : index
    %c0_18 = arith.constant 0 : index
    %29 = vector.load %arg3[%c4, %c0_17, %c0_18] : memref<9x8x8xbf16, #tpu.memory_space<vmem>>, vector<1x8x8xbf16>
    %30 = vector.shape_cast %29 : vector<1x8x8xbf16> to vector<8x8xbf16>
    %cst_19 = arith.constant dense<0.000000e+00> : vector<128x8xf32>
    %31 = tpu.matmul %28, %30, %cst_19 {dimension_numbers = #tpu.dot_dimension_numbers<[1], [0], [0], [1], [0, 0, 1, 1], [], []>} : vector<128x8xbf16>, vector<8x8xbf16>, vector<128x8xf32> -> vector<128x8xf32>
    %32 = arith.addf %26, %31 : vector<128x8xf32>
    %33 = vector.extract_strided_slice %1 {offsets = [1, 2, 0], sizes = [8, 16, 8], strides = [1, 1, 1]} : vector<10x18x8xbf16> to vector<8x16x8xbf16>
    %34 = vector.shape_cast %33 : vector<8x16x8xbf16> to vector<128x8xbf16>
    %c5 = arith.constant 5 : index
    %c0_20 = arith.constant 0 : index
    %c0_21 = arith.constant 0 : index
    %35 = vector.load %arg3[%c5, %c0_20, %c0_21] : memref<9x8x8xbf16, #tpu.memory_space<vmem>>, vector<1x8x8xbf16>
    %36 = vector.shape_cast %35 : vector<1x8x8xbf16> to vector<8x8xbf16>
    %cst_22 = arith.constant dense<0.000000e+00> : vector<128x8xf32>
    %37 = tpu.matmul %34, %36, %cst_22 {dimension_numbers = #tpu.dot_dimension_numbers<[1], [0], [0], [1], [0, 0, 1, 1], [], []>} : vector<128x8xbf16>, vector<8x8xbf16>, vector<128x8xf32> -> vector<128x8xf32>
    %38 = arith.addf %32, %37 : vector<128x8xf32>
    %39 = vector.extract_strided_slice %1 {offsets = [2, 0, 0], sizes = [8, 16, 8], strides = [1, 1, 1]} : vector<10x18x8xbf16> to vector<8x16x8xbf16>
    %40 = vector.shape_cast %39 : vector<8x16x8xbf16> to vector<128x8xbf16>
    %c6 = arith.constant 6 : index
    %c0_23 = arith.constant 0 : index
    %c0_24 = arith.constant 0 : index
    %41 = vector.load %arg3[%c6, %c0_23, %c0_24] : memref<9x8x8xbf16, #tpu.memory_space<vmem>>, vector<1x8x8xbf16>
    %42 = vector.shape_cast %41 : vector<1x8x8xbf16> to vector<8x8xbf16>
    %cst_25 = arith.constant dense<0.000000e+00> : vector<128x8xf32>
    %43 = tpu.matmul %40, %42, %cst_25 {dimension_numbers = #tpu.dot_dimension_numbers<[1], [0], [0], [1], [0, 0, 1, 1], [], []>} : vector<128x8xbf16>, vector<8x8xbf16>, vector<128x8xf32> -> vector<128x8xf32>
    %44 = arith.addf %38, %43 : vector<128x8xf32>
    %45 = vector.extract_strided_slice %1 {offsets = [2, 1, 0], sizes = [8, 16, 8], strides = [1, 1, 1]} : vector<10x18x8xbf16> to vector<8x16x8xbf16>
    %46 = vector.shape_cast %45 : vector<8x16x8xbf16> to vector<128x8xbf16>
    %c7 = arith.constant 7 : index
    %c0_26 = arith.constant 0 : index
    %c0_27 = arith.constant 0 : index
    %47 = vector.load %arg3[%c7, %c0_26, %c0_27] : memref<9x8x8xbf16, #tpu.memory_space<vmem>>, vector<1x8x8xbf16>
    %48 = vector.shape_cast %47 : vector<1x8x8xbf16> to vector<8x8xbf16>
    %cst_28 = arith.constant dense<0.000000e+00> : vector<128x8xf32>
    %49 = tpu.matmul %46, %48, %cst_28 {dimension_numbers = #tpu.dot_dimension_numbers<[1], [0], [0], [1], [0, 0, 1, 1], [], []>} : vector<128x8xbf16>, vector<8x8xbf16>, vector<128x8xf32> -> vector<128x8xf32>
    %50 = arith.addf %44, %49 : vector<128x8xf32>
    %51 = vector.extract_strided_slice %1 {offsets = [2, 2, 0], sizes = [8, 16, 8], strides = [1, 1, 1]} : vector<10x18x8xbf16> to vector<8x16x8xbf16>
    %52 = vector.shape_cast %51 : vector<8x16x8xbf16> to vector<128x8xbf16>
    %c8 = arith.constant 8 : index
    %c0_29 = arith.constant 0 : index
    %c0_30 = arith.constant 0 : index
    %53 = vector.load %arg3[%c8, %c0_29, %c0_30] : memref<9x8x8xbf16, #tpu.memory_space<vmem>>, vector<1x8x8xbf16>
    %54 = vector.shape_cast %53 : vector<1x8x8xbf16> to vector<8x8xbf16>
    %cst_31 = arith.constant dense<0.000000e+00> : vector<128x8xf32>
    %55 = tpu.matmul %52, %54, %cst_31 {dimension_numbers = #tpu.dot_dimension_numbers<[1], [0], [0], [1], [0, 0, 1, 1], [], []>} : vector<128x8xbf16>, vector<8x8xbf16>, vector<128x8xf32> -> vector<128x8xf32>
    %56 = arith.addf %50, %55 : vector<128x8xf32>
    %c0_32 = arith.constant 0 : index
    %c0_33 = arith.constant 0 : index
    %c0_34 = arith.constant 0 : index
    %c0_35 = arith.constant 0 : index
    %57 = vector.load %arg4[%c0_32, %c0_33, %c0_34, %c0_35] : memref<1x1x128x8xf32, #tpu.memory_space<vmem>>, vector<1x1x128x8xf32>
    %58 = vector.shape_cast %57 : vector<1x1x128x8xf32> to vector<128x8xf32>
    %59 = vector.shape_cast %56 : vector<128x8xf32> to vector<1x1x128x8xf32>
    tpu.vector_store %arg4[%c0_32, %c0_33, %c0_34, %c0_35], %59 {strides = array<i32>} : memref<1x1x128x8xf32, #tpu.memory_space<vmem>>, vector<1x1x128x8xf32>,
    %cst_36 = arith.constant 1.000000e+00 : f32
    %60 = vector.broadcast %cst_36 : f32 to vector<1x128xf32>
    %cst_37 = arith.constant dense<0.000000e+00> : vector<1x8xf32>
    %61 = tpu.matmul %60, %56, %cst_37 {dimension_numbers = #tpu.dot_dimension_numbers<[1], [0], [0], [1], [0, 0, 1, 1], [], []>} : vector<1x128xf32>, vector<128x8xf32>, vector<1x8xf32> -> vector<1x8xf32>
    %c0_38 = arith.constant 0 : index
    %c0_39 = arith.constant 0 : index
    %c0_40 = arith.constant 0 : index
    %c0_41 = arith.constant 0 : index
    %62 = vector.load %arg5[%c0_38, %c0_39, %c0_40, %c0_41] : memref<1x1x2x8xf32, #tpu.memory_space<vmem>>, vector<1x1x1x8xf32>
    %63 = vector.shape_cast %62 : vector<1x1x1x8xf32> to vector<1x8xf32>
    %64 = vector.shape_cast %61 : vector<1x8xf32> to vector<1x1x1x8xf32>
    tpu.vector_store %arg5[%c0_38, %c0_39, %c0_40, %c0_41], %64 {strides = array<i32>} : memref<1x1x2x8xf32, #tpu.memory_space<vmem>>, vector<1x1x1x8xf32>,
    %65 = arith.mulf %56, %56 : vector<128x8xf32>
    %cst_42 = arith.constant dense<0.000000e+00> : vector<1x8xf32>
    %66 = tpu.matmul %60, %65, %cst_42 {dimension_numbers = #tpu.dot_dimension_numbers<[1], [0], [0], [1], [0, 0, 1, 1], [], []>} : vector<1x128xf32>, vector<128x8xf32>, vector<1x8xf32> -> vector<1x8xf32>
    %c0_43 = arith.constant 0 : index
    %c0_44 = arith.constant 0 : index
    %c1_45 = arith.constant 1 : index
    %c0_46 = arith.constant 0 : index
    %67 = vector.load %arg5[%c0_43, %c0_44, %c1_45, %c0_46] : memref<1x1x2x8xf32, #tpu.memory_space<vmem>>, vector<1x1x1x8xf32>
    %68 = vector.shape_cast %67 : vector<1x1x1x8xf32> to vector<1x8xf32>
    %69 = vector.shape_cast %66 : vector<1x8xf32> to vector<1x1x1x8xf32>
    tpu.vector_store %arg5[%c0_43, %c0_44, %c1_45, %c0_46], %69 {strides = array<i32>} : memref<1x1x2x8xf32, #tpu.memory_space<vmem>>, vector<1x1x1x8xf32>,
    return
  }
  func.func @transform_0(%arg0: i32, %arg1: i32) -> (i32, i32, i32, i32, i32) {
    %c0_i32 = arith.constant 0 : i32
    %c0_i32_0 = arith.constant 0 : i32
    %c0_i32_1 = arith.constant 0 : i32
    %c0_i32_2 = arith.constant 0 : i32
    return %arg0, %arg1, %c0_i32, %c0_i32_0, %c0_i32_1 : i32, i32, i32, i32, i32
  }
  func.func @transform_1(%arg0: i32, %arg1: i32) -> (i32, i32, i32) {
    %c0_i32 = arith.constant 0 : i32
    %c0_i32_0 = arith.constant 0 : i32
    %c0_i32_1 = arith.constant 0 : i32
    %c0_i32_2 = arith.constant 0 : i32
    return %c0_i32, %c0_i32_0, %c0_i32_1 : i32, i32, i32
  }
  func.func @transform_2(%arg0: i32, %arg1: i32) -> (i32, i32, i32, i32) {
    %c0_i32 = arith.constant 0 : i32
    %c0_i32_0 = arith.constant 0 : i32
    %c0_i32_1 = arith.constant 0 : i32
    return %arg0, %arg1, %c0_i32, %c0_i32_0 : i32, i32, i32, i32
  }
  func.func @transform_3(%arg0: i32, %arg1: i32) -> (i32, i32, i32, i32) {
    %c0_i32 = arith.constant 0 : i32
    %c0_i32_0 = arith.constant 0 : i32
    %c0_i32_1 = arith.constant 0 : i32
    return %arg0, %arg1, %c0_i32, %c0_i32_0 : i32, i32, i32, i32
  }
}

</mosaic_0001>

<bundles_post_ra>
// kernel: tile.23
= control target key start
LH: loop header
LB: loop body
LE: loop exit
PB: predicated region body
PF: predicated region fallthrough
CT: control target
= control target key end

     0   :  { %s28_s0 = inlined_call_operand.vmem [shape: f32[8], index: 0, kind: input, shape index: {}]   ;;  %s29_s1 = inlined_call_operand.vmem [shape: f32[16,8], index: 1, kind: output, shape index: {}]  }
   0x1   :  { %v4_v0 = vld [vmem:[%s28_s0] ss:$0 sm:$0xff] }
   0x2   :  { %5 = vst [vmem:[%s29_s1] sm:$0xff] %v4_v0 }
   0x3   :  { %8 = vst [vmem:[%s29_s1 + $0x8] sm:$0xff] %v4_v0 }

// kernel: tile.24
= control target key start
LH: loop header
LB: loop body
LE: loop exit
PB: predicated region body
PF: predicated region fallthrough
CT: control target
= control target key end

     0   :  { %s131_s10 = smov 120   ;;  %s132_s11 = smov 104   ;;  %vm3_vm0 = vcmask 64512   ;;  %vm9_vm1 = vcmask 1048512   ;;  %vm15_vm2 = vcmask 982912   ;;  %vm21_vm3 = vcmask 917312   ;;  %s207_s0 = inlined_call_operand.vmem [shape: f32[16,8], index: 0, kind: input, shape index: {}]   ;;  %s208_s1 = inlined_call_operand.vmem [shape: f32[1,128], index: 1, kind: output, shape index: {}]  }
   0x1   :  { %v101_v0 = vld [vmem:[%s207_s0 + $0xf] sm:$0x1]   ;;  %v103_v1 = vld [vmem:[%s207_s0 + $0xd] sm:$0x1]   ;;  %v105_v2 = vld [vmem:[%s207_s0 + $0xb] sm:$0x1]  }
   0x2   :  { %7 = vrot.lane.b32.xlu0 %v101_v0, %s131_s10  ;;  %19 = vrot.lane.b32.xlu1 %v103_v1, %s132_s11  ;;  %s133_s14 = smov 88   ;;  %v102_v3 = vld [vmem:[%s207_s0 + $0xe] sm:$0x1]   ;;  %v104_v4 = vld [vmem:[%s207_s0 + $0xc] sm:$0x1]   ;;  %s134_s19 = smov 112  }
   0x3   :  { %31 = vrot.lane.b32.xlu2 %v105_v2, %s133_s14  ;;  %s135_s20 = smov 96   ;;  %v106_v5 = vld [vmem:[%s207_s0 + $0xa] sm:$0x1]   ;;  %s136_s23 = smov 80   ;;  %v107_v6 = vld [vmem:[%s207_s0 + $0x9] sm:$0x1]  }
   0x4   :  { %v108_v7 = vld [vmem:[%s207_s0 + $0x8] sm:$0x1]   ;;  %s137_s28 = smov 72   ;;  %s138_s29 = smov 64   ;;  %v109_v8 = vld [vmem:[%s207_s0 + $0x7] sm:$0x1]  }
   0x5   :  { %s139_s3 = smov 56   ;;  %v110_v9 = vld [vmem:[%s207_s0 + $0x6] sm:$0x1]   ;;  %v111_v10 = vld [vmem:[%s207_s0 + $0x5] sm:$0x1]   ;;  %s140_s8 = smov 48  }
   0x6   :  { %s141_s9 = smov 40   ;;  %v112_v11 = vld [vmem:[%s207_s0 + $0x4] sm:$0x1]   ;;  %s142_s12 = smov 32   ;;  %v113_v12 = vld [vmem:[%s207_s0 + $0x3] sm:$0x1]  }
   0x7   :  { %v114_v13 = vld [vmem:[%s207_s0 + $0x2] sm:$0x1]   ;;  %s143_s17 = smov 24   ;;  %s144_s18 = smov 16   ;;  %v115_v14 = vld [vmem:[%s207_s0 + $0x1] sm:$0x1]  }
   0x8   :  { %s145_s21 = smov 8   ;;  %v2_v15 = vld [vmem:[%s207_s0] sm:$0x1]   ;;  %vm27_vm4 = vcmask 851712   ;;  %vm33_vm5 = vcmask 786112   ;;  %vm39_vm6 = vcmask 720512  }
   0x9   :  { %4 = vst.msk [vmem:[#allocation0] sm:$0x1] %vm3_vm0, %v2_v15   ;;  %vm45_vm7 = vcmask 654912   ;;  %vm51_vm8 = vcmask 589312   ;;  %vm57_vm9 = vcmask 523712   ;;  %vm63_vm10 = vcmask 458112  }
   0xa   :  { %13 = vrot.lane.b32.xlu0 %v102_v3, %s134_s19  ;;  %25 = vrot.lane.b32.xlu1 %v104_v4, %s135_s20  ;;  %vm69_vm11 = vcmask 392512   ;;  %vm75_vm12 = vcmask 326912   ;;  %vm81_vm13 = vcmask 261312   ;;  %vm87_vm14 = vcmask 195712  }
   0xb   :  { %37 = vrot.lane.b32.xlu2 %v106_v5, %s136_s23  ;;  %vm93_vm15 = vcmask 130112  }
  0x12   :  { %43 = vrot.lane.b32.xlu0 %v107_v6, %s137_s28  ;;  %49 = vrot.lane.b32.xlu1 %v108_v7, %s138_s29 }
  0x13   :  { %55 = vrot.lane.b32.xlu2 %v109_v8, %s139_s3 }
  0x1a   :  { %61 = vrot.lane.b32.xlu0 %v110_v9, %s140_s8  ;;  %67 = vrot.lane.b32.xlu1 %v111_v10, %s141_s9 }
  0x1b   :  { %73 = vrot.lane.b32.xlu2 %v112_v11, %s142_s12 }
  0x22   :  { %79 = vrot.lane.b32.xlu0 %v113_v12, %s143_s17  ;;  %85 = vrot.lane.b32.xlu1 %v114_v13, %s144_s18 }
  0x23   :  { %91 = vrot.lane.b32.xlu2 %v115_v14, %s145_s21 }
  0x5d   :  { %v32_v16 = vpop.permute.xlu2 %31  }
  0x65   :  { %v38_v17 = vpop.permute.xlu2 %37  }
  0x6d   :  { %v56_v18 = vpop.permute.xlu2 %55  }
  0x74   :  { %v8_v19 = vpop.permute.xlu0 %7   ;;  %v20_v20 = vpop.permute.xlu1 %19  }
  0x75   :  { %10 = vst.msk [vmem:[#allocation0] sm:$0x1] %vm9_vm1, %v8_v19   ;;  %v74_v21 = vpop.permute.xlu2 %73  }
  0x7c   :  { %v14_v22 = vpop.permute.xlu0 %13   ;;  %v26_v23 = vpop.permute.xlu1 %25  }
  0x7d   :  { %16 = vst.msk [vmem:[#allocation0] sm:$0x1] %vm15_vm2, %v14_v22   ;;  %v92_v24 = vpop.permute.xlu2 %91  }
  0x7e   :  { %22 = vst.msk [vmem:[#allocation0] sm:$0x1] %vm21_vm3, %v20_v20  }
  0x7f   :  { %28 = vst.msk [vmem:[#allocation0] sm:$0x1] %vm27_vm4, %v26_v23  }
  0x80   :  { %34 = vst.msk [vmem:[#allocation0] sm:$0x1] %vm33_vm5, %v32_v16  }
  0x81   :  { %40 = vst.msk [vmem:[#allocation0] sm:$0x1] %vm39_vm6, %v38_v17  }
  0x84   :  { %v44_v25 = vpop.permute.xlu0 %43   ;;  %v50_v26 = vpop.permute.xlu1 %49  }
  0x85   :  { %46 = vst.msk [vmem:[#allocation0] sm:$0x1] %vm45_vm7, %v44_v25  }
  0x86   :  { %52 = vst.msk [vmem:[#allocation0] sm:$0x1] %vm51_vm8, %v50_v26  }
  0x87   :  { %58 = vst.msk [vmem:[#allocation0] sm:$0x1] %vm57_vm9, %v56_v18  }
  0x8c   :  { %v62_v27 = vpop.permute.xlu0 %61   ;;  %v68_v28 = vpop.permute.xlu1 %67  }
  0x8d   :  { %64 = vst.msk [vmem:[#allocation0] sm:$0x1] %vm63_vm10, %v62_v27  }
  0x8e   :  { %70 = vst.msk [vmem:[#allocation0] sm:$0x1] %vm69_vm11, %v68_v28  }
  0x8f   :  { %76 = vst.msk [vmem:[#allocation0] sm:$0x1] %vm75_vm12, %v74_v21  }
  0x94   :  { %v80_v29 = vpop.permute.xlu0 %79   ;;  %v86_v30 = vpop.permute.xlu1 %85  }
  0x95   :  { %82 = vst.msk [vmem:[#allocation0] sm:$0x1] %vm81_vm13, %v80_v29  }
  0x96   :  { %88 = vst.msk [vmem:[#allocation0] sm:$0x1] %vm87_vm14, %v86_v30  }
  0x97   :  { %94 = vst.msk [vmem:[#allocation0] sm:$0x1] %vm93_vm15, %v92_v24  }
  0x9e   :  { %v97_v31 = vld [vmem:[#allocation0] sm:$0x1] }
  0x9f   :  { %100 = vst [vmem:[%s208_s1] sm:$0x1] %v97_v31 }

// kernel: layer_forward.5
= control target key start
LH: loop header
LB: loop body
LE: loop exit
PB: predicated region body
PF: predicated region fallthrough
CT: control target
= control target key end

     0   :  { %s107_s0 = inlined_call_operand.vmem [shape: f32[32,128], index: 0, kind: input, shape index: {}]   ;;  %s108_s1 = inlined_call_operand.vmem [shape: f32[1,128], index: 1, kind: input, shape index: {}]   ;;  %s109_s2 = inlined_call_operand.vmem [shape: f32[1,128], index: 2, kind: input, shape index: {}]   ;;  %s110_s3 = inlined_call_operand.vmem [shape: bf16[32,128], index: 3, kind: output, shape index: {}]  }
   0x1   :  { %v14_v0 = vld [vmem:[%s107_s0] sm:$0xff]  ;;  %v15_v1 = vld [vmem:[%s107_s0 + $0x8] sm:$0xff]  ;;  %v16_v4 = vld [vmem:[%s107_s0 + $0x10] sm:$0xff] }
   0x2   :  { %v61_v2 = vld [vmem:[%s108_s1] ss:$0 sm:$0xff]  ;;  %v17_v5 = vld [vmem:[%s107_s0 + $0x18] sm:$0xff] }
   0x3   :  { %v62_v3 = vld [vmem:[%s109_s2] ss:$0 sm:$0xff]  ;;  %v22_v6 = vmul.f32 %v61_v2, %v14_v0  ;;  %v23_v7 = vmul.f32 %v61_v2, %v15_v1  ;;  %v24_v8 = vmul.f32 %v61_v2, %v16_v4  ;;  %v25_v9 = vmul.f32 %v61_v2, %v17_v5 }
   0x5   :  { %v30_v10 = vadd.f32 %v62_v3, %v22_v6  ;;  %v31_v11 = vadd.f32 %v62_v3, %v23_v7  ;;  %v32_v12 = vadd.f32 %v62_v3, %v24_v8  ;;  %v33_v13 = vadd.f32 %v62_v3, %v25_v9 }
   0x7   :  { %v34_v14 = vmax.f32 %v30_v10, 0.0  ;;  %v35_v15 = vmax.f32 %v31_v11, 0.0  ;;  %v36_v16 = vmax.f32 %v32_v12, 0.0  ;;  %v37_v17 = vmax.f32 %v33_v13, 0.0 }
   0x9   :  { %v53_v18 = vpack.c.bf16 %v35_v15, %v34_v14  ;;  %v58_v19 = vpack.c.bf16 %v37_v17, %v36_v16 }
   0xb   :  { %54 = vst [vmem:[%s110_s3] sm:$0xff] %v53_v18  }
   0xc   :  { %60 = vst [vmem:[%s110_s3 + $0x8] sm:$0xff] %v58_v19  }

// kernel: layer_forward.4
= control target key start
LH: loop header
LB: loop body
LE: loop exit
PB: predicated region body
PF: predicated region fallthrough
CT: control target
= control target key end

     0   :  { %s1862_s12 = smov 0   ;;  %s1864_s13 = smov 0   ;;  %s2576_s0 = inlined_call_operand.vmem [shape: bf16[2,2,10,18,4], index: 0, kind: input, shape index: {}]   ;;  %s2577_s1 = inlined_call_operand.vmem [shape: bf16[9,4,8], index: 1, kind: input, shape index: {}]   ;;  %s2578_s2 = inlined_call_operand.vmem [shape: f32[2,2,128,8], index: 2, kind: output, shape index: {0}]   ;;  %s2579_s3 = inlined_call_operand.vmem [shape: f32[2,2,2,8], index: 3, kind: output, shape index: {1}]  }
   0x1   :  { %s1866_s14 = smov 0   ;;  %s1868_s15 = smov 0  }
   0x2   :  { %s1870_s16 = smov 0  }
   0x3 LB: > { %s23_s17 = sadd.s32 1, %s1831_s14  ;;  %s26_s18 = sadd.s32 1, %s1835_s15  ;;  %s1839_s16 = sphi %s1870_s16, %s14_s16   ;;  %s1835_s15 = sphi %s1868_s15, %s2587_s15   ;;  %s1831_s14 = sphi %s1866_s14, %s2586_s14   ;;  %s1827_s13 = sphi %s1864_s13, %s2585_s13   ;;  %s1823_s12 = sphi %s1862_s12, %s2584_s12  }
   0x4   : > { %p24_p0 = scmp.ge.s32.totalorder %s23_s17, 2  ;;  %p1606_p1 = scmp.ge.s32.totalorder %s1839_s16, 1 }
   0x5   : > { %p162_p2 = scmp.lt.s32.totalorder %s1839_s16, 5 }
   0x6   : > { %s2589_s17 = smov (%p24_p0, %s23_s17), 0  ;;  %s2591_s18 = smov (!%p24_p0, %s26_s18), %s1835_s15 }
   0x7   : > { %p163_p3 = pnand %p1606_p1, %p162_p2  ;;  %p28_p4 = scmp.ge.s32.totalorder %s2591_s18, 2 }
   0x8   : > { %p202_p5 = scmp.lt.s32.totalorder (!%p163_p3), %s1827_s13, 1  ;;  %p204_p6 = scmp.lt.s32.totalorder (!%p163_p3), %s1823_s12, 1 }
   0x9   : > { %s2593_s18 = smov (%p28_p4, %s2591_s18), 0  ;;  %166 = sbr.rel (%p163_p3) target bundleno = 641 (0x281), region = 28 }
   0xe   : > { %v1613_v0 = vld [vmem:[%s2577_s1 + $0x2] sm:$0x3]  ;;  %vm506_vm0 = vcmask 1041408   ;;  %s2595_s13 = smov (!%p202_p5, %s1827_s13), 1  ;;  %s2597_s12 = smov (!%p204_p6, %s1823_s12), 1  ;;  %vm481_vm3 = vcmask 31744  }
   0xf   : > { %v508_v1 = vsel %vm506_vm0, %v1613_v0, 0  ;;  %s1759_s21 = smul.u32 60, %s2595_s13  ;;  %vm260_vm1 = vsmask.f32 3328  ;;  %vm261_vm2 = vsmask.f32 7440 }
  0x10   : > { %1755 = vmatpush.bf16.msra.mxu1 %v508_v1  ;;  %1756 = vmatpush.bf16.msra.mxu2 %v508_v1  ;;  %s1758_s22 = smul.u32 30, %s2597_s12  ;;  %vm1943_vm4 = vmor %vm260_vm1, %vm261_vm2  ;;  %vm683_vm5 = vcmask 1042432   ;;  %vm684_vm6 = vcmask 1046532   ;;  %s1609_s25 = sshll.u32 %s2595_s13, 5  ;;  %vm1384_vm8 = vcmask 64512   ;;  %vm1421_vm9 = vcmask 57344  }
  0x11   : > { %1757 = vmatpush.bf16.msra.mxu3 %v508_v1  ;;  %517 = vmatpush.bf16.msra.mxu0 %v508_v1  ;;  %vm2093_vm7 = vmor %vm683_vm5, %vm684_vm6  ;;  %s1611_s4 = sshll.u32 %s2595_s13, 1 }
  0x12   : > { %s208_s23 = sadd.s32 %s1759_s21, %s1758_s22  ;;  %s225_s5 = sadd.s32 %s1611_s4, %s2597_s12 }
  0x13   : > { %s1607_s24 = sshll.u32 %s208_s23, 2  ;;  %s1612_s6 = sshll.u32 %s225_s5, 1 }
  0x14   : > { %s1905_s27 = scalar_lea.vmem %s2576_s0, %s1607_s24  ;;  %s1608_s24 = sshll.u32 %s2597_s12, 4 }
  0x15   : > { %v1908_v2 = vld [vmem:[%s1905_s27 + $0xc] sm:$0xf]  ;;  %v1911_v3 = vld [vmem:[%s1905_s27 + $0x10] sm:$0xf]  ;;  %v1914_v4 = vld [vmem:[%s1905_s27 + $0x14] sm:$0x1]  ;;  %s217_s26 = sadd.s32 %s1609_s25, %s1608_s24  ;;  %s227_s9 = scalar_lea.vmem %s2579_s3, %s1612_s6 }
  0x16   : > { %v288_v5 = vshrl.u32 %v1908_v2, 16  ;;  %v291_v6 = vshll.u32 %v1908_v2, 16  ;;  %v297_v7 = vshll.u32 %v1911_v3, 16  ;;  %v301_v8 = vshrl.u32 %v1911_v3, 16  ;;  %v1921_v9 = vld [vmem:[%s1905_s27 + $0x24] sm:$0xf] }
  0x17   : > { %v307_v10 = vshll.u32 %v1914_v4, 16  ;;  %v1925_v11 = vld [vmem:[%s1905_s27 + $0x28] sm:$0xf]  ;;  %v1928_v12 = vld [vmem:[%s1905_s27 + $0x2c] sm:$0x1]  ;;  %v336_v13 = vshrl.u32 %v1921_v9, 16 }
  0x18   : > { %v290_v14 = vrot.slane %v288_v5, 4  ;;  %v293_v15 = vrot.slane %v291_v6, 5  ;;  %v299_v16 = vrot.slane %v297_v7, 5  ;;  %v303_v17 = vrot.slane %v301_v8, 4  ;;  %v1932_v18 = vld [vmem:[%s1905_s27 + $0x3c] sm:$0xf] }
  0x19   : > { %v309_v19 = vrot.slane %v307_v10, 5  ;;  %v338_v20 = vrot.slane %v336_v13, 4  ;;  %v339_v21 = vshll.u32 %v1921_v9, 16  ;;  %v345_v22 = vshll.u32 %v1925_v11, 16  ;;  %v1939_v27 = vld [vmem:[%s1905_s27 + $0x40] sm:$0xf] }
  0x1a   : > { %v294_v23 = vor.u32 %v293_v15, %v290_v14  ;;  %v304_v24 = vor.u32 %v303_v17, %v299_v16  ;;  %v349_v25 = vshrl.u32 %v1925_v11, 16  ;;  %v355_v26 = vshll.u32 %v1928_v12, 16  ;;  %v1950_v38 = vld [vmem:[%s1905_s27 + $0x44] sm:$0x1]  ;;  %v1959_v46 = vld [vmem:[%s1905_s27 + $0x18] sm:$0xf] }
  0x1b   : > { %v341_v29 = vrot.slane %v339_v21, 5  ;;  %v347_v30 = vrot.slane %v345_v22, 5  ;;  %v384_v31 = vshrl.u32 %v1932_v18, 16  ;;  %v387_v32 = vshll.u32 %v1932_v18, 16  ;;  %v1967_v58 = vld [vmem:[%s1905_s27 + $0x1c] sm:$0xf] }
  0x1c   : > { %v295_v33 = vrot.slane %v294_v23, 4  ;;  %v305_v34 = vrot.slane %v304_v24, 4  ;;  %v351_v35 = vrot.slane %v349_v25, 4  ;;  %v357_v36 = vrot.slane %v355_v26, 5  ;;  %v1973_v0 = vld [vmem:[%s1905_s27 + $0x20] sm:$0x1] }
  0x1d   : > { %v342_v37 = vor.u32 %v341_v29, %v338_v20  ;;  %v386_v39 = vrot.slane %v384_v31, 4  ;;  %v389_v40 = vrot.slane %v387_v32, 5  ;;  %v393_v41 = vshll.u32 %v1939_v27, 16  ;;  %v1976_v1 = vld [vmem:[%s1905_s27 + $0x30] sm:$0xf] }
  0x1e   : > { %v300_v42 = vsel %vm1943_vm4, %v295_v33, %v299_v16  ;;  %v310_v43 = vsel %vm1943_vm4, %v305_v34, %v309_v19  ;;  %v352_v44 = vor.u32 %v351_v35, %v347_v30  ;;  %v397_v45 = vshrl.u32 %v1939_v27, 16  ;;  %v1986_v16 = vld [vmem:[%s1905_s27 + $0x34] sm:$0xf]  ;;  %v1992_v21 = vld [vmem:[%s1905_s27 + $0x38] sm:$0x1] }
  0x1f   : > { %v459_v47 = vunpack.c.l.b16 %v300_v42  ;;  %v460_v48 = vunpack.c.l.b16 %v310_v43  ;;  %v343_v49 = vrot.slane %v342_v37, 4  ;;  %v390_v50 = vor.u32 %v389_v40, %v386_v39  ;;  %v1999_v29 = vld [vmem:[%s1905_s27 + $0x48] sm:$0xf]  ;;  %v2009_v42 = vld [vmem:[%s1905_s27 + $0x4c] sm:$0xf] }
  0x20   : > { %v353_v51 = vrot.slane %v352_v44, 4  ;;  %v395_v52 = vrot.slane %v393_v41, 5  ;;  %v399_v53 = vrot.slane %v397_v45, 4  ;;  %v403_v54 = vshll.u32 %v1950_v38, 16 }
  0x21   : > { %v1962_v55 = vpack.c.b16 %v460_v48, %v459_v47  ;;  %v348_v56 = vsel %vm1943_vm4, %v343_v49, %v347_v30  ;;  %v391_v57 = vrot.slane %v390_v50, 4  ;;  %v312_v59 = vshrl.u32 %v1959_v46, 16  ;;  %v2013_v49 = vld [vmem:[%s1905_s27 + $0x50] sm:$0x1] }
  0x22   : > { %v358_v60 = vsel %vm1943_vm4, %v353_v51, %v357_v36  ;;  %v463_v61 = vunpack.c.l.b16 %v348_v56  ;;  %v400_v62 = vor.u32 %v399_v53, %v395_v52  ;;  %v405_v63 = vrot.slane %v403_v54, 5  ;;  %v259_v54 = vld [vmem:[%s2577_s1] sm:$0x3] }
  0x23   : > { %1615 = vmatmul.msk.bf16.vlgmr.msra.gmra.mxu1 %vm481_vm3, %v1962_v55  ;;  %v464_v5 = vunpack.c.l.b16 %v358_v60  ;;  %v396_v6 = vsel %vm1943_vm4, %v391_v57, %v395_v52  ;;  %v314_v7 = vrot.slane %v312_v59, 4  ;;  %v315_v8 = vshll.u32 %v1959_v46, 16 }
  0x24   : > { %v401_v10 = vrot.slane %v400_v62, 4  ;;  %v467_v13 = vunpack.c.l.b16 %v396_v6  ;;  %v321_v14 = vshll.u32 %v1967_v58, 16  ;;  %v325_v15 = vshrl.u32 %v1967_v58, 16  ;;  %v1670_v6 = vld [vmem:[%s2577_s1 + $0x4] sm:$0x3] }
  0x25   : > { %v1988_v17 = vpack.c.b16 %v464_v5, %v463_v61  ;;  %v317_v19 = vrot.slane %v315_v8, 5  ;;  %v331_v20 = vshll.u32 %v1973_v0, 16  ;;  %v360_v22 = vshrl.u32 %v1976_v1, 16 }
  0x26   : > { %v406_v23 = vsel %vm1943_vm4, %v401_v10, %v405_v63  ;;  %v323_v24 = vrot.slane %v321_v14, 5  ;;  %v327_v25 = vrot.slane %v325_v15, 4  ;;  %v363_v26 = vshll.u32 %v1976_v1, 16  ;;  %v2035_v14 = vld [vmem:[%s1905_s27] sm:$0xf] }
  0x27   : > { %1617 = vmatmul.msk.bf16.vlgmr.msra.gmra.mxu2 %vm481_vm3, %v1988_v17  ;;  %v468_v30 = vunpack.c.l.b16 %v406_v23  ;;  %v318_v31 = vor.u32 %v317_v19, %v314_v7  ;;  %v333_v32 = vrot.slane %v331_v20, 5  ;;  %v362_v33 = vrot.slane %v360_v22, 4  ;;  %v2040_v23 = vld [vmem:[%s1905_s27 + $0x4] sm:$0xf] }
  0x28   : > { %v328_v34 = vor.u32 %v327_v25, %v323_v24  ;;  %v365_v35 = vrot.slane %v363_v26, 5  ;;  %v369_v36 = vshll.u32 %v1986_v16, 16  ;;  %v373_v37 = vshrl.u32 %v1986_v16, 16 }
  0x29   : > { %v2005_v39 = vpack.c.b16 %v468_v30, %v467_v13  ;;  %v319_v40 = vrot.slane %v318_v31, 4  ;;  %v379_v41 = vshll.u32 %v1992_v21, 16  ;;  %v408_v43 = vshrl.u32 %v1999_v29, 16 }
  0x2a   : > { %v329_v44 = vrot.slane %v328_v34, 4  ;;  %v366_v45 = vor.u32 %v365_v35, %v362_v33  ;;  %v371_v47 = vrot.slane %v369_v36, 5  ;;  %v375_v48 = vrot.slane %v373_v37, 4 }
  0x2b   : > { %1619 = vmatmul.msk.bf16.vlgmr.msra.gmra.mxu3 %vm481_vm3, %v2005_v39  ;;  %v324_v50 = vsel %vm1943_vm4, %v319_v40, %v323_v24  ;;  %v381_v51 = vrot.slane %v379_v41, 5  ;;  %v410_v52 = vrot.slane %v408_v43, 4  ;;  %v411_v53 = vshll.u32 %v1999_v29, 16  ;;  %v2043_v24 = vld [vmem:[%s1905_s27 + $0x8] sm:$0x1] }
  0x2c   : > { %v334_v56 = vsel %vm1943_vm4, %v329_v44, %v333_v32  ;;  %v461_v57 = vunpack.c.l.b16 %v324_v50  ;;  %v367_v59 = vrot.slane %v366_v45, 4  ;;  %v376_v60 = vor.u32 %v375_v48, %v371_v47  ;;  %v2054_v43 = vld [vmem:[%s1905_s27 + $0x54] sm:$0xf]  ;;  %v2063_v50 = vld [vmem:[%s1905_s27 + $0x58] sm:$0xf] }
  0x2d   : > { %v462_v61 = vunpack.c.l.b16 %v334_v56  ;;  %v413_v62 = vrot.slane %v411_v53, 5  ;;  %v417_v63 = vshll.u32 %v2009_v42, 16  ;;  %v421_v5 = vshrl.u32 %v2009_v42, 16 }
  0x2e   : > { %v372_v7 = vsel %vm1943_vm4, %v367_v59, %v371_v47  ;;  %v377_v8 = vrot.slane %v376_v60, 4  ;;  %v427_v10 = vshll.u32 %v2013_v49, 16  ;;  %v624_v13 = vsel %vm506_vm0, %v259_v54, 0  ;;  %v2067_v60 = vld [vmem:[%s1905_s27 + $0x5c] sm:$0x1] }
  0x2f   : > { %v2037_v15 = vpack.c.b16 %v462_v61, %v461_v57  ;;  %v465_v19 = vunpack.c.l.b16 %v372_v7  ;;  %v414_v20 = vor.u32 %v413_v62, %v410_v52  ;;  %v419_v22 = vrot.slane %v417_v63, 5  ;;  %633 = vmatpush.bf16.msrb.mxu1 %v624_v13 }
  0x30   : > { %v382_v25 = vsel %vm1943_vm4, %v377_v8, %v381_v51  ;;  %v423_v26 = vrot.slane %v421_v5, 4  ;;  %v429_v30 = vrot.slane %v427_v10, 5  ;;  %v793_v31 = vsel %vm506_vm0, %v1670_v6, 0 }
  0x31   : > { %v466_v32 = vunpack.c.l.b16 %v382_v25  ;;  %v415_v33 = vrot.slane %v414_v20, 4  ;;  %802 = vmatpush.bf16.msrb.mxu2 %v793_v31  ;;  %v264_v34 = vshrl.u32 %v2035_v14, 16  ;;  %v267_v35 = vshll.u32 %v2035_v14, 16  ;;  %v1679_v31 = vld [vmem:[%s2577_s1 + $0x6] sm:$0x3] }
  0x32   : > { %v424_v36 = vor.u32 %v423_v26, %v419_v22  ;;  %v273_v37 = vshll.u32 %v2040_v23, 16  ;;  %v277_v40 = vshrl.u32 %v2040_v23, 16  ;;  %v283_v41 = vshll.u32 %v2043_v24, 16 }
  0x33   : > { %1616 = vmatmul.msk.bf16.gmra.mxu1 %vm481_vm3, %v2037_v15  ;;  %v2058_v44 = vpack.c.b16 %v466_v32, %v465_v19  ;;  %v420_v45 = vsel %vm1943_vm4, %v415_v33, %v419_v22  ;;  %v266_v47 = vrot.slane %v264_v34, 4  ;;  %v269_v48 = vrot.slane %v267_v35, 5  ;;  %v1692_v32 = vld [vmem:[%s2577_s1 + $0x8] sm:$0x3] }
  0x34   : > { %v425_v51 = vrot.slane %v424_v36, 4  ;;  %v469_v52 = vunpack.c.l.b16 %v420_v45  ;;  %v275_v53 = vrot.slane %v273_v37, 5  ;;  %v279_v54 = vrot.slane %v277_v40, 4 }
  0x35   : > { %v270_v56 = vor.u32 %v269_v48, %v266_v47  ;;  %v285_v57 = vrot.slane %v283_v41, 5  ;;  %v691_v59 = vrot.slane %v2043_v24, 5  ;;  %v432_v61 = vshrl.u32 %v2054_v43, 16 }
  0x36   : > { %v430_v62 = vsel %vm1943_vm4, %v425_v51, %v429_v30  ;;  %v280_v63 = vor.u32 %v279_v54, %v275_v53  ;;  %v435_v5 = vshll.u32 %v2054_v43, 16  ;;  %v441_v6 = vshll.u32 %v2063_v50, 16 }
  0x37   : > { %1618 = vmatmul.msk.bf16.gmra.mxu2 %vm481_vm3, %v2058_v44  ;;  %v470_v7 = vunpack.c.l.b16 %v430_v62  ;;  %v271_v8 = vrot.slane %v270_v56, 4  ;;  %v434_v10 = vrot.slane %v432_v61, 4  ;;  %v445_v13 = vshrl.u32 %v2063_v50, 16 }
  0x38   : > { %v281_v19 = vrot.slane %v280_v63, 4  ;;  %v437_v20 = vrot.slane %v435_v5, 5  ;;  %v443_v22 = vrot.slane %v441_v6, 5  ;;  %v451_v24 = vshll.u32 %v2067_v60, 16 }
  0x39   : > { %v2078_v25 = vpack.c.b16 %v470_v7, %v469_v52  ;;  %v276_v26 = vsel %vm1943_vm4, %v271_v8, %v275_v53  ;;  %v447_v30 = vrot.slane %v445_v13, 4  ;;  %v1662_v41 = vrot.slane %v2035_v14, 9  ;;  %v1745_v14 = vld [vmem:[%s1905_s27] sm:$0xff] }
  0x3a   : > { %v286_v33 = vsel %vm1943_vm4, %v281_v19, %v285_v57  ;;  %v457_v34 = vunpack.c.l.b16 %v276_v26  ;;  %v438_v35 = vor.u32 %v437_v20, %v434_v10  ;;  %v453_v36 = vrot.slane %v451_v24, 5  ;;  %v1746_v26 = vld [vmem:[%s1905_s27 + $0xc] sm:$0xff] }
  0x3b   : > { %1620 = vmatmul.msk.bf16.gmra.mxu3 %vm481_vm3, %v2078_v25  ;;  %v458_v37 = vunpack.c.l.b16 %v286_v33  ;;  %v448_v40 = vor.u32 %v447_v30, %v443_v22  ;;  %v688_v48 = vrot.slane %v2040_v23, 5  ;;  %v871_v51 = vsel %vm506_vm0, %v1679_v31, 0 }
  0x3c   : > { %v439_v45 = vrot.slane %v438_v35, 4  ;;  %v971_v52 = vsel %vm506_vm0, %v1692_v32, 0  ;;  %880 = vmatpush.bf16.msrb.mxu3 %v871_v51  ;;  %v695_v10 = vrot.slane %v1911_v3, 5  ;;  %v1663_v19 = vrot.slane %v1908_v2, 9 }
  0x3d   : > { %v473_v53 = vpack.c.b16 %v458_v37, %v457_v34  ;;  %v449_v54 = vrot.slane %v448_v40, 4  ;;  %980 = vmatpush.bf16.msrb.mxu0 %v971_v52  ;;  %v689_v56 = vsel %vm2093_vm7, %v1662_v41, %v688_v48  ;;  %v690_v57 = vrot.slane %v688_v48, 4 }
  0x3e   : > { %v744_v61 = vunpack.c.l.b16 %v689_v56  ;;  %v444_v62 = vsel %vm1943_vm4, %v439_v45, %v443_v22  ;;  %v697_v20 = vrot.slane %v695_v10, 4  ;;  %v698_v22 = vrot.slane %v1914_v4, 5  ;;  %v2149_v45 = vld [vmem:[%s1905_s27 + $0x18] sm:$0xff] }
  0x3f   : > { %1614 = vmatmul.msk.bf16.vlgmr.msra.gmra.mxu0 %vm481_vm3, %v473_v53  ;;  %v454_v23 = vsel %vm1943_vm4, %v449_v54, %v453_v36  ;;  %v692_v63 = vsel %vm2093_vm7, %v690_v57, %v691_v59  ;;  %v471_v6 = vunpack.c.l.b16 %v444_v62  ;;  %v696_v59 = vsel %vm2093_vm7, %v1663_v19, %v695_v10  ;;  %v1711_v19 = vld [vmem:[%s2577_s1 + $0xc] sm:$0x3] }
  0x40   : > { %v745_v5 = vunpack.c.l.b16 %v692_v63  ;;  %v472_v7 = vunpack.c.l.b16 %v454_v23  ;;  %v699_v24 = vsel %vm2093_vm7, %v697_v20, %v698_v22  ;;  %v746_v3 = vunpack.c.l.b16 %v696_v59 }
  0x41   : > { %v747_v30 = vunpack.c.l.b16 %v699_v24  ;;  %v709_v2 = vrot.slane %v1925_v11, 5  ;;  %v1665_v31 = vrot.slane %v1921_v9, 9  ;;  %v712_v32 = vrot.slane %v1928_v12, 5 }
  0x42   : > { %v760_v8 = vpack.c.b16 %v745_v5, %v744_v61  ;;  %v2112_v13 = vpack.c.b16 %v472_v7, %v471_v6  ;;  %v702_v33 = vrot.slane %v1967_v58, 5  ;;  %v1664_v37 = vrot.slane %v1959_v46, 9 }
  0x43   : > { %1654 = vmatmul.msk.bf16.vlgmr.msrb.gmra.mxu1 %vm481_vm3, %v1745_v14  ;;  %v2128_v4 = vpack.c.b16 %v747_v30, %v746_v3  ;;  %v711_v34 = vrot.slane %v709_v2, 4  ;;  %v710_v35 = vsel %vm2093_vm7, %v1665_v31, %v709_v2  ;;  %v705_v40 = vrot.slane %v1973_v0, 5  ;;  %v1734_v30 = vld [vmem:[%s2577_s1 + $0x10] sm:$0x3]  ;;  %v2234_v2 = vld [vmem:[%s1905_s27 + $0x48] sm:$0xff] }
  0x44   : > { %v750_v36 = vunpack.c.l.b16 %v710_v35  ;;  %v704_v9 = vrot.slane %v702_v33, 4  ;;  %v703_v58 = vsel %vm2093_vm7, %v1664_v37, %v702_v33  ;;  %v716_v46 = vrot.slane %v1986_v16, 5 }
  0x45   : > { %v748_v48 = vunpack.c.l.b16 %v703_v58  ;;  %v1666_v52 = vrot.slane %v1976_v1, 9  ;;  %v719_v53 = vrot.slane %v1992_v21, 5  ;;  %v2171_v1 = vld [vmem:[%s1905_s27 + $0x24] sm:$0xff]  ;;  %v2182_v21 = vld [vmem:[%s1905_s27 + $0x30] sm:$0xff]  ;;  %v723_v62 = vrot.slane %v1939_v27, 5 }
  0x46   : > { %v706_v41 = vsel %vm2093_vm7, %v704_v9, %v705_v40  ;;  %v718_v54 = vrot.slane %v716_v46, 4  ;;  %v1667_v23 = vrot.slane %v1932_v18, 9  ;;  %v726_v5 = vrot.slane %v1950_v38, 5 }
  0x47   : > { %1671 = vmatmul.msk.bf16.vlgmr.msrb.gmra.mxu2 %vm481_vm3, %v760_v8  ;;  %v749_v51 = vunpack.c.l.b16 %v706_v41  ;;  %v717_v56 = vsel %vm2093_vm7, %v1666_v52, %v716_v46  ;;  %v725_v63 = vrot.slane %v723_v62, 4  ;;  %v2200_v8 = vld [vmem:[%s1905_s27 + $0x3c] sm:$0xff]  ;;  %v730_v38 = vrot.slane %v2009_v42, 5  ;;  %v1724_v42 = vld [vmem:[%s2577_s1 + $0xe] sm:$0x3] }
  0x48   : > { %v720_v57 = vsel %vm2093_vm7, %v718_v54, %v719_v53  ;;  %v752_v14 = vunpack.c.l.b16 %v717_v56  ;;  %v724_v6 = vsel %vm2093_vm7, %v1667_v23, %v723_v62  ;;  %v1133_v20 = vsel %vm506_vm0, %v1711_v19, 0 }
  0x49   : > { %v2156_v0 = vpack.c.b16 %v749_v51, %v748_v48  ;;  %v753_v16 = vunpack.c.l.b16 %v720_v57  ;;  %v727_v7 = vsel %vm2093_vm7, %v725_v63, %v726_v5  ;;  %v754_v27 = vunpack.c.l.b16 %v724_v6  ;;  %1142 = vmatpush.bf16.msra.mxu2 %v1133_v20  ;;  %v2264_v57 = vld [vmem:[%s1905_s27 + $0x68] sm:$0x1]  ;;  %v2278_v5 = vld [vmem:[%s1905_s27 + $0x54] sm:$0xff] }
  0x4a   : > { %v755_v10 = vunpack.c.l.b16 %v727_v7  ;;  %v1668_v22 = vrot.slane %v1999_v29, 9  ;;  %v732_v59 = vrot.slane %v730_v38, 4  ;;  %v733_v24 = vrot.slane %v2013_v49, 5  ;;  %v1702_v49 = vld [vmem:[%s2577_s1 + $0xa] sm:$0x3] }
  0x4b   : > { %1621 = vmatmul.msk.bf16.gmra.mxu3 %vm481_vm3, %v2112_v13  ;;  %v2166_v61 = vpack.c.b16 %v753_v16, %v752_v14  ;;  %v1233_v29 = vsel %vm506_vm0, %v1724_v42, 0  ;;  %v1055_v33 = vsel %vm506_vm0, %v1702_v49, 0  ;;  %v737_v37 = vrot.slane %v2063_v50, 5 }
  0x4c   : > { %v2206_v18 = vpack.c.b16 %v755_v10, %v754_v27  ;;  %v734_v3 = vsel %vm2093_vm7, %v732_v59, %v733_v24  ;;  %1242 = vmatpush.bf16.msra.mxu3 %v1233_v29  ;;  %1064 = vmatpush.bf16.msra.mxu1 %v1055_v33  ;;  %v1669_v48 = vrot.slane %v2054_v43, 9  ;;  %v740_v46 = vrot.slane %v2067_v60, 5 }
  0x4d   : > { %v739_v51 = vrot.slane %v737_v37, 4  ;;  %v958_v23 = vshll.u32 %v2264_v57, 16 }
  0x4e   : > { %v738_v43 = vsel %vm2093_vm7, %v1669_v48, %v737_v37 }
  0x4f   : > { %1693 = vmatmul.msk.bf16.vlgmr.msrb.gmra.mxu0 %vm481_vm3, %v1962_v55  ;;  %v713_v55 = vsel %vm2093_vm7, %v711_v34, %v712_v32  ;;  %v757_v32 = vunpack.c.l.b16 %v734_v3  ;;  %v1317_v34 = vsel %vm506_vm0, %v1734_v30, 0  ;;  %v741_v16 = vsel %vm2093_vm7, %v739_v51, %v740_v46 }
  0x50   : > { %v751_v11 = vunpack.c.l.b16 %v713_v55  ;;  %1326 = vmatpush.bf16.msra.mxu0 %v1317_v34  ;;  %v2243_v55 = vld [vmem:[%s1905_s27 + $0x60] sm:$0xf]  ;;  %v758_v6 = vunpack.c.l.b16 %v738_v43  ;;  %v759_v7 = vunpack.c.l.b16 %v741_v16  ;;  %v960_v19 = vrot.slane %v958_v23, 5 }
  0x51   : > { %v939_v9 = vshrl.u32 %v2243_v55, 16  ;;  %v942_v40 = vshll.u32 %v2243_v55, 16 }
  0x52   : > { %v2141_v12 = vpack.c.b16 %v751_v11, %v750_v36  ;;  %v2246_v36 = vld [vmem:[%s1905_s27 + $0x64] sm:$0xf] }
  0x53   : > { %1655 = vmatmul.msk.bf16.gmra.mxu1 %vm481_vm3, %v1746_v26  ;;  %v948_v58 = vshll.u32 %v2246_v36, 16  ;;  %v952_v41 = vshrl.u32 %v2246_v36, 16  ;;  %v941_v50 = vrot.slane %v939_v9, 4  ;;  %v944_v53 = vrot.slane %v942_v40, 5 }
  0x55   : > { %v950_v54 = vrot.slane %v948_v58, 5  ;;  %v954_v56 = vrot.slane %v952_v41, 4  ;;  %v945_v60 = vor.u32 %v944_v53, %v941_v50  ;;  %v2313_v58 = vld [vmem:[%s1905_s27 + $0x60] sm:$0xff] }
  0x57   : > { %1672 = vmatmul.msk.bf16.gmra.mxu2 %vm481_vm3, %v2128_v4  ;;  %v955_v62 = vor.u32 %v954_v56, %v950_v54  ;;  %v946_v10 = vrot.slane %v945_v60, 4 }
  0x59   : > { %v951_v59 = vsel %vm1943_vm4, %v946_v10, %v950_v54 }
  0x5b   : > { %1684 = vmatmul.msk.bf16.vlgmr.msrb.gmra.mxu3 %vm481_vm3, %v1746_v26  ;;  %v731_v26 = vsel %vm2093_vm7, %v1668_v22, %v730_v38  ;;  %v956_v38 = vrot.slane %v955_v62, 4  ;;  %v2286_v22 = vpack.c.b16 %v759_v7, %v758_v6 }
  0x5c   : > { %v756_v31 = vunpack.c.l.b16 %v731_v26  ;;  %v964_v26 = vunpack.c.l.b16 %v951_v59 }
  0x5d   : > { %v961_v24 = vsel %vm1943_vm4, %v956_v38, %v960_v19 }
  0x5e   : > { %v2250_v11 = vpack.c.b16 %v757_v32, %v756_v31  ;;  %v965_v3 = vunpack.c.l.b16 %v961_v24 }
  0x5f   : > { %1694 = vmatmul.msk.bf16.gmra.mxu0 %vm481_vm3, %v2037_v15 }
  0x60   : > { %v2300_v30 = vpack.c.b16 %v965_v3, %v964_v26 }
  0x63   : > { %1656 = vmatmul.msk.bf16.gmra.mxu1 %vm481_vm3, %v2149_v45 }
  0x67   : > { %1673 = vmatmul.msk.bf16.gmra.mxu2 %vm481_vm3, %v2156_v0 }
  0x6b   : > { %1685 = vmatmul.msk.bf16.gmra.mxu3 %vm481_vm3, %v2149_v45 }
  0x6f   : > { %1695 = vmatmul.msk.bf16.gmra.mxu0 %vm481_vm3, %v1988_v17 }
  0x73   : > { %1657 = vmatmul.msk.bf16.gmra.mxu1 %vm481_vm3, %v2171_v1 }
  0x77   : > { %1674 = vmatmul.msk.bf16.gmra.mxu2 %vm481_vm3, %v2141_v12 }
  0x7b   : > { %1686 = vmatmul.msk.bf16.gmra.mxu3 %vm481_vm3, %v2171_v1 }
  0x7f   : > { %1696 = vmatmul.msk.bf16.gmra.mxu0 %vm481_vm3, %v2058_v44 }
  0x83   : > { %1658 = vmatmul.msk.bf16.gmra.mxu1 %vm481_vm3, %v2182_v21 }
  0x87   : > { %1675 = vmatmul.msk.bf16.gmra.mxu2 %vm481_vm3, %v2166_v61 }
  0x8b   : > { %1687 = vmatmul.msk.bf16.gmra.mxu3 %vm481_vm3, %v2182_v21 }
  0x8f   : > { %1697 = vmatmul.msk.bf16.gmra.mxu0 %vm481_vm3, %v2005_v39 }
  0x93   : > { %1659 = vmatmul.msk.bf16.gmra.mxu1 %vm481_vm3, %v2200_v8 }
  0x97   : > { %1676 = vmatmul.msk.bf16.gmra.mxu2 %vm481_vm3, %v2206_v18 }
  0x9b   : > { %1688 = vmatmul.msk.bf16.gmra.mxu3 %vm481_vm3, %v2200_v8 }
  0x9f   : > { %1698 = vmatmul.msk.bf16.gmra.mxu0 %vm481_vm3, %v2078_v25 }
  0xa0   : > { %v2240_v35 = vpop.f32.mrf.mxu1 }
  0xa3   : > { %1660 = vmatmul.msk.bf16.gmra.mxu1 %vm481_vm3, %v2234_v2 }
  0xa7   : > { %1677 = vmatmul.msk.bf16.gmra.mxu2 %vm481_vm3, %v2250_v11 }
  0xa8   : > { %v2261_v52 = vpop.f32.mrf.mxu1 }
  0xaa   : > { %v2266_v14 = vpop.f32.mrf.mxu2 }
  0xab   : > { %1689 = vmatmul.msk.bf16.gmra.mxu3 %vm481_vm3, %v2234_v2 }
  0xae   : > { %v2275_v63 = vpop.f32.mrf.mxu3 }
  0xaf   : > { %1699 = vmatmul.msk.bf16.gmra.mxu0 %vm481_vm3, %v2112_v13 }
  0xb0   : > { %v529_v27 = vpop.f32.mrf.mxu1 }
  0xb2   : > { %v2282_v20 = vpop.f32.mrf.mxu2 }
  0xb3   : > { %1661 = vmatmul.msk.bf16.gmra.mxu1 %vm481_vm3, %v2278_v5 }
  0xb6   : > { %v2292_v42 = vpop.f32.mrf.mxu3 }
  0xb7   : > { %1678 = vmatmul.msk.bf16.gmra.mxu2 %vm481_vm3, %v2286_v22 }
  0xb8   : > { %v531_v29 = vpop.f32.mrf.mxu1 }
  0xba   : > { %v2296_v49 = vpop.f32.mrf.mxu2 }
  0xbb   : > { %1690 = vmatmul.msk.bf16.gmra.mxu3 %vm481_vm3, %v2278_v5 }
  0xbc   : > { %v519_v31 = vpop.f32.mrf.mxu0 }
  0xbe   : > { %v2302_v32 = vpop.f32.mrf.mxu3 }
  0xbf   : > { %1700 = vmatmul.msk.bf16.gmra.mxu0 %vm481_vm3, %v2300_v30 }
  0xc0   : > { %v635_v33 = vpop.f32.mrf.mxu1 }
  0xc1   : > { %v636_v34 = vadd.f32 %v635_v33, %v519_v31 }
  0xc2   : > { %v2306_v37 = vpop.f32.mrf.mxu2 }
  0xc3   : > { %1703 = vmatmul.msk.bf16.vlgmr.msra.gmra.mxu1 %vm481_vm3, %v2128_v4 }
  0xc4   : > { %v521_v9 = vpop.f32.mrf.mxu0 }
  0xc6   : > { %v2310_v40 = vpop.f32.mrf.mxu3 }
  0xc7   : > { %1716 = vmatmul.msk.bf16.vlgmr.msra.gmra.mxu2 %vm481_vm3, %v2149_v45 }
  0xc8   : > { %v637_v41 = vpop.f32.mrf.mxu1 }
  0xc9   : > { %v638_v48 = vadd.f32 %v637_v41, %v521_v9 }
  0xca   : > { %v804_v51 = vpop.f32.mrf.mxu2 }
  0xcb   : > { %1691 = vmatmul.msk.bf16.gmra.mxu3 %vm481_vm3, %v2313_v58  ;;  %v844_v46 = vadd.f32 %v804_v51, %v636_v34 }
  0xcc   : > { %v982_v50 = vpop.f32.mrf.mxu0 }
  0xce   : > { %v2319_v53 = vpop.f32.mrf.mxu3 }
  0xcf   : > { %1735 = vmatmul.msk.bf16.vlgmr.msra.gmra.mxu0 %vm481_vm3, %v2156_v0 }
  0xd0   : > { %v640_v4 = vpop.f32.mrf.mxu1 }
  0xd1   : > { %v641_v54 = vadd.f32 %v640_v4, %v2240_v35 }
  0xd2   : > { %v806_v56 = vpop.f32.mrf.mxu2 }
  0xd3   : > { %v845_v43 = vadd.f32 %v806_v56, %v638_v48  ;;  %1704 = vmatmul.msk.bf16.gmra.mxu1 %vm481_vm3, %v2156_v0 }
  0xd4   : > { %v984_v45 = vpop.f32.mrf.mxu0 }
  0xd6   : > { %v2326_v16 = vpop.f32.mrf.mxu3 }
  0xd7   : > { %1717 = vmatmul.msk.bf16.gmra.mxu2 %vm481_vm3, %v2171_v1 }
  0xd8   : > { %v642_v60 = vpop.f32.mrf.mxu1 }
  0xd9   : > { %v643_v62 = vadd.f32 %v642_v60, %v2261_v52 }
  0xda   : > { %v809_v23 = vpop.f32.mrf.mxu2 }
  0xdb   : > { %1725 = vmatmul.msk.bf16.vlgmr.msra.gmra.mxu3 %vm481_vm3, %v2037_v15  ;;  %v846_v6 = vadd.f32 %v809_v23, %v641_v54 }
  0xdc   : > { %v987_v35 = vpop.f32.mrf.mxu0 }
  0xde   : > { %v882_v7 = vpop.f32.mrf.mxu3 }
  0xdf   : > { %v922_v10 = vadd.f32 %v882_v7, %v844_v46  ;;  %1736 = vmatmul.msk.bf16.gmra.mxu0 %vm481_vm3, %v2141_v12 }
  0xe0   : > { %v645_v0 = vpop.f32.mrf.mxu1 }
  0xe1   : > { %v646_v38 = vadd.f32 %v645_v0, %v529_v27  ;;  %v2335_v19 = vadd.f32 %v982_v50, %v922_v10 }
  0xe2   : > { %v811_v59 = vpop.f32.mrf.mxu2 }
  0xe3   : > { %v847_v1 = vadd.f32 %v811_v59, %v643_v62  ;;  %1705 = vmatmul.msk.bf16.gmra.mxu1 %vm481_vm3, %v2141_v12 }
  0xe4   : > { %v989_v52 = vpop.f32.mrf.mxu0 }
  0xe6   : > { %v884_v24 = vpop.f32.mrf.mxu3 }
  0xe7   : > { %v923_v26 = vadd.f32 %v884_v24, %v845_v43  ;;  %1718 = vmatmul.msk.bf16.gmra.mxu2 %vm481_vm3, %v2182_v21 }
  0xe8   : > { %v647_v15 = vpop.f32.mrf.mxu1 }
  0xe9   : > { %v648_v3 = vadd.f32 %v647_v15, %v531_v29  ;;  %v2341_v31 = vadd.f32 %v984_v45, %v923_v26 }
  0xea   : > { %v814_v33 = vpop.f32.mrf.mxu2 }
  0xeb   : > { %1726 = vmatmul.msk.bf16.gmra.mxu3 %vm481_vm3, %v1988_v17  ;;  %v848_v27 = vadd.f32 %v814_v33, %v646_v38 }
  0xec   : > { %v992_v34 = vpop.f32.mrf.mxu0 }
  0xee   : > { %v887_v9 = vpop.f32.mrf.mxu3 }
  0xef   : > { %v924_v41 = vadd.f32 %v887_v9, %v846_v6  ;;  %1737 = vmatmul.msk.bf16.gmra.mxu0 %vm481_vm3, %v2166_v61 }
  0xf0   : > { %v650_v12 = vpop.f32.mrf.mxu1 }
  0xf1   : > { %v651_v48 = vadd.f32 %v650_v12, %v2266_v14  ;;  %v2348_v51 = vadd.f32 %v987_v35, %v924_v41 }
  0xf2   : > { %v816_v21 = vpop.f32.mrf.mxu2 }
  0xf3   : > { %v849_v29 = vadd.f32 %v816_v21, %v648_v3  ;;  %1706 = vmatmul.msk.bf16.gmra.mxu1 %vm481_vm3, %v2166_v61 }
  0xf4   : > { %v994_v46 = vpop.f32.mrf.mxu0 }
  0xf6   : > { %v889_v50 = vpop.f32.mrf.mxu3 }
  0xf7   : > { %v925_v17 = vadd.f32 %v889_v50, %v847_v1  ;;  %1719 = vmatmul.msk.bf16.gmra.mxu2 %vm481_vm3, %v2200_v8 }
  0xf8   : > { %v652_v4 = vpop.f32.mrf.mxu1 }
  0xf9   : > { %v653_v54 = vadd.f32 %v652_v4, %v2282_v20  ;;  %v2355_v56 = vadd.f32 %v989_v52, %v925_v17 }
  0xfa   : > { %v819_v43 = vpop.f32.mrf.mxu2 }
  0xfb   : > { %1727 = vmatmul.msk.bf16.gmra.mxu3 %vm481_vm3, %v2058_v44  ;;  %v850_v14 = vadd.f32 %v819_v43, %v651_v48 }
  0xfc   : > { %v997_v45 = vpop.f32.mrf.mxu0 }
  0xfe   : > { %v892_v60 = vpop.f32.mrf.mxu3 }
  0xff   : > { %v926_v62 = vadd.f32 %v892_v60, %v848_v27  ;;  %1738 = vmatmul.msk.bf16.gmra.mxu0 %vm481_vm3, %v2206_v18 }
 0x100   : > { %v655_v61 = vpop.f32.mrf.mxu1 }
 0x101   : > { %v2361_v23 = vadd.f32 %v992_v34, %v926_v62  ;;  %v656_v9 = vadd.f32 %v655_v61, %v2296_v49 }
 0x102   : > { %v821_v8 = vpop.f32.mrf.mxu2 }
 0x103   : > { %v851_v6 = vadd.f32 %v821_v8, %v653_v54  ;;  %1707 = vmatmul.msk.bf16.gmra.mxu1 %vm481_vm3, %v2206_v18 }
 0x104   : > { %v999_v20 = vpop.f32.mrf.mxu0 }
 0x106   : > { %v894_v35 = vpop.f32.mrf.mxu3 }
 0x107   : > { %v927_v7 = vadd.f32 %v894_v35, %v849_v29  ;;  %1720 = vmatmul.msk.bf16.gmra.mxu2 %vm481_vm3, %v2234_v2  ;;  %v256_v35 = vld [vmem:[%s1905_s27 + $0x6c] sm:$0xf] }
 0x108   : > { %v657_v44 = vpop.f32.mrf.mxu1 }
 0x109   : > { %v658_v10 = vadd.f32 %v657_v44, %v2306_v37  ;;  %v2368_v0 = vadd.f32 %v994_v46, %v927_v7  ;;  %v1701_v46 = vrot.slane %v2243_v55, 9 }
 0x10a   : > { %v824_v38 = vpop.f32.mrf.mxu2 }
 0x10b   : > { %1728 = vmatmul.msk.bf16.gmra.mxu3 %vm481_vm3, %v2005_v39  ;;  %v852_v48 = vadd.f32 %v824_v38, %v656_v9  ;;  %v1201_v38 = vshrl.u32 %v256_v35, 16 }
 0x10c   : > { %v1002_v59 = vpop.f32.mrf.mxu0 }
 0x10e   : > { %v897_v1 = vpop.f32.mrf.mxu3 }
 0x10f   : > { %v928_v52 = vadd.f32 %v897_v1, %v850_v14  ;;  %1739 = vmatmul.msk.bf16.gmra.mxu0 %vm481_vm3, %v2250_v11 }
 0x110   : > { %v660_v18 = vpop.f32.mrf.mxu1 }
 0x111   : > { %v2374_v24 = vadd.f32 %v997_v45, %v928_v52  ;;  %v661_v33 = vadd.f32 %v660_v18, %v2275_v63  ;;  %v1044_v63 = vrot.slane %v2264_v57, 5  ;;  %v1733_v18 = vrot.slane %v256_v35, 9 }
 0x112   : > { %v826_v26 = vpop.f32.mrf.mxu2 }
 0x113   : > { %v853_v2 = vadd.f32 %v826_v26, %v658_v10  ;;  %1708 = vmatmul.msk.bf16.gmra.mxu1 %vm481_vm3, %v2250_v11  ;;  %v1041_v11 = vrot.slane %v2246_v36, 5  ;;  %v258_v10 = vld [vmem:[%s1905_s27 + $0x74] sm:$0x1] }
 0x114   : > { %v1004_v37 = vpop.f32.mrf.mxu0 }
 0x115   : > { %v1043_v50 = vrot.slane %v1041_v11, 4  ;;  %v1042_v54 = vsel %vm2093_vm7, %v1701_v46, %v1041_v11 }
 0x116   : > { %v899_v15 = vpop.f32.mrf.mxu3 }
 0x117   : > { %v929_v3 = vadd.f32 %v899_v15, %v851_v6  ;;  %1721 = vmatmul.msk.bf16.gmra.mxu2 %vm481_vm3, %v2278_v5  ;;  %v1045_v57 = vsel %vm2093_vm7, %v1043_v50, %v1044_v63  ;;  %v257_v6 = vld [vmem:[%s1905_s27 + $0x70] sm:$0xf] }
 0x118   : > { %v662_v39 = vpop.f32.mrf.mxu1  ;;  %v1049_v14 = vunpack.c.l.b16 %v1045_v57  ;;  %v1303_v7 = vrot.slane %v257_v6, 5  ;;  %v1214_v52 = vshrl.u32 %v257_v6, 16 }
 0x119   : > { %v2381_v27 = vadd.f32 %v999_v20, %v929_v3  ;;  %v663_v49 = vadd.f32 %v662_v39, %v2292_v42  ;;  %v1048_v42 = vunpack.c.l.b16 %v1042_v54  ;;  %v1754_v39 = vld [vmem:[%s1905_s27 + $0x6c] sm:$0xff]  ;;  %s1610_s27 = sshll.u32 %s217_s26, 3 }
 0x11a   : > { %v829_v34 = vpop.f32.mrf.mxu2  ;;  %v1305_v26 = vrot.slane %v1303_v7, 4  ;;  %v1216_v11 = vrot.slane %v1214_v52, 4  ;;  %s2447_s30 = scalar_lea.vmem %s2578_s2, %s1610_s27 }
 0x11b   : > { %1729 = vmatmul.msk.bf16.gmra.mxu3 %vm481_vm3, %v2078_v25  ;;  %v854_v41 = vadd.f32 %v829_v34, %v661_v33  ;;  %v1050_v8 = vpack.c.b16 %v1049_v14, %v1048_v42  ;;  %v1203_v33 = vrot.slane %v1201_v38, 4 }
 0x11c   : > { %v1007_v12 = vpop.f32.mrf.mxu0 }
 0x11e   : > { %v902_v21 = vpop.f32.mrf.mxu3 }
 0x11f   : > { %v930_v29 = vadd.f32 %v902_v21, %v852_v48  ;;  %1740 = vmatmul.msk.bf16.gmra.mxu0 %vm481_vm3, %v2286_v22  ;;  %v1304_v48 = vsel %vm2093_vm7, %v1733_v18, %v1303_v7 }
 0x120   : > { %v665_v5 = vpop.f32.mrf.mxu1 }
 0x121   : > { %v2392_v17 = vadd.f32 %v1002_v59, %v930_v29  ;;  %v1210_v59 = vshll.u32 %v257_v6, 16 }
 0x122   : > { %v831_v25 = vpop.f32.mrf.mxu2 }
 0x123   : > { %v855_v4 = vadd.f32 %v831_v25, %v663_v49  ;;  %1709 = vmatmul.msk.bf16.gmra.mxu1 %vm481_vm3, %v2286_v22  ;;  %v666_v22 = vadd.f32 %v665_v5, %v2302_v32  ;;  %v1204_v32 = vshll.u32 %v256_v35, 16  ;;  %v1220_v49 = vshll.u32 %v258_v10, 16 }
 0x124   : > { %v1009_v36 = vpop.f32.mrf.mxu0 }
 0x125   : > { %v1206_v34 = vrot.slane %v1204_v32, 5  ;;  %v1222_v14 = vrot.slane %v1220_v49, 5 }
 0x126   : > { %v904_v55 = vpop.f32.mrf.mxu3 }
 0x127   : > { %v931_v43 = vadd.f32 %v904_v55, %v853_v2  ;;  %1722 = vmatmul.msk.bf16.gmra.mxu2 %vm481_vm3, %v2313_v58  ;;  %v1207_v46 = vor.u32 %v1206_v34, %v1203_v33 }
 0x128   : > { %v667_v45 = vpop.f32.mrf.mxu1 }
 0x129   : > { %v2403_v60 = vadd.f32 %v1004_v37, %v931_v43  ;;  %v668_v2 = vadd.f32 %v667_v45, %v2310_v40 }
 0x12a   : > { %v834_v62 = vpop.f32.mrf.mxu2 }
 0x12b   : > { %1730 = vmatmul.msk.bf16.gmra.mxu3 %vm481_vm3, %v2112_v13  ;;  %v856_v61 = vadd.f32 %v834_v62, %v666_v22  ;;  %v1306_v13 = vrot.slane %v258_v10, 5 }
 0x12c   : > { %v1012_v20 = vpop.f32.mrf.mxu0 }
 0x12d   : > { %v1307_v21 = vsel %vm2093_vm7, %v1305_v26, %v1306_v13 }
 0x12e   : > { %v907_v44 = vpop.f32.mrf.mxu3  ;;  %v1311_v63 = vunpack.c.l.b16 %v1307_v21 }
 0x12f   : > { %v932_v58 = vadd.f32 %v907_v44, %v854_v41  ;;  %1741 = vmatmul.msk.bf16.gmra.mxu0 %vm481_vm3, %v1050_v8  ;;  %v1212_v41 = vrot.slane %v1210_v59, 5 }
 0x130   : > { %v670_v1 = vpop.f32.mrf.mxu1 }
 0x131   : > { %v2412_v37 = vadd.f32 %v1007_v12, %v932_v58  ;;  %v1310_v12 = vunpack.c.l.b16 %v1304_v48  ;;  %v1217_v50 = vor.u32 %v1216_v11, %v1212_v41  ;;  %v671_v25 = vadd.f32 %v670_v1, %v2319_v53 }
 0x132   : > { %v836_v15 = vpop.f32.mrf.mxu2 }
 0x133   : > { %v857_v3 = vadd.f32 %v836_v15, %v668_v2  ;;  %1710 = vmatmul.msk.bf16.gmra.mxu1 %vm481_vm3, %v1050_v8  ;;  %v1312_v55 = vpack.c.b16 %v1311_v63, %v1310_v12  ;;  %v1218_v42 = vrot.slane %v1217_v50, 4 }
 0x134   : > { %v1014_v9 = vpop.f32.mrf.mxu0 }
 0x136   : > { %v909_v29 = vpop.f32.mrf.mxu3 }
 0x137   : > { %v933_v40 = vadd.f32 %v909_v29, %v855_v4  ;;  %1723 = vmatmul.msk.bf16.gmra.mxu2 %vm481_vm3, %v1754_v39  ;;  %v1208_v4 = vrot.slane %v1207_v46, 4 }
 0x138   : > { %v672_v5 = vpop.f32.mrf.mxu1 }
 0x139   : > { %v2422_v54 = vadd.f32 %v1009_v36, %v933_v40  ;;  %v1213_v53 = vsel %vm1943_vm4, %v1208_v4, %v1212_v41  ;;  %v1223_v36 = vsel %vm1943_vm4, %v1218_v42, %v1222_v14  ;;  %v673_v8 = vadd.f32 %v672_v5, %v2326_v16 }
 0x13a   : > { %v839_v57 = vpop.f32.mrf.mxu2  ;;  %v1226_v7 = vunpack.c.l.b16 %v1213_v53  ;;  %v1227_v44 = vunpack.c.l.b16 %v1223_v36 }
 0x13b   : > { %1731 = vmatmul.msk.bf16.gmra.mxu3 %vm481_vm3, %v2300_v30  ;;  %v858_v47 = vadd.f32 %v839_v57, %v671_v25 }
 0x13c   : > { %v1017_v43 = vpop.f32.mrf.mxu0  ;;  %v1228_v38 = vpack.c.b16 %v1227_v44, %v1226_v7 }
 0x13e   : > { %v912_v45 = vpop.f32.mrf.mxu3 }
 0x13f   : > { %v934_v22 = vadd.f32 %v912_v45, %v856_v61  ;;  %1742 = vmatmul.msk.bf16.gmra.mxu0 %vm481_vm3, %v1312_v55 }
 0x140   : > { %v1066_v62 = vpop.f32.mrf.mxu1 }
 0x141   : > { %v2432_v30 = vadd.f32 %v1012_v20, %v934_v22  ;;  %v1106_v34 = vadd.f32 %v1066_v62, %v2335_v19 }
 0x142   : > { %v841_v6 = vpop.f32.mrf.mxu2 }
 0x143   : > { %v859_v35 = vadd.f32 %v841_v6, %v673_v8 }
 0x144   : > { %v1019_v58 = vpop.f32.mrf.mxu0 }
 0x146   : > { %v914_v10 = vpop.f32.mrf.mxu3 }
 0x147   : > { %v935_v61 = vadd.f32 %v914_v10, %v857_v3 }
 0x148   : > { %v1068_v32 = vpop.f32.mrf.mxu1 }
 0x149   : > { %v2434_v59 = vadd.f32 %v1014_v9, %v935_v61  ;;  %v1107_v12 = vadd.f32 %v1068_v32, %v2341_v31 }
 0x14a   : > { %v1144_v1 = vpop.f32.mrf.mxu2 }
 0x14b   : > { %1732 = vmatmul.msk.bf16.gmra.mxu3 %vm481_vm3, %v1228_v38  ;;  %v1184_v41 = vadd.f32 %v1144_v1, %v1106_v34 }
 0x14c   : > { %v1328_v28 = vpop.f32.mrf.mxu0 }
 0x14e   : > { %v917_v16 = vpop.f32.mrf.mxu3 }
 0x14f   : > { %v936_v20 = vadd.f32 %v917_v16, %v858_v47 }
 0x150   : > { %v1071_v52 = vpop.f32.mrf.mxu1 }
 0x151   : > { %v2437_v18 = vadd.f32 %v1017_v43, %v936_v20  ;;  %v1108_v25 = vadd.f32 %v1071_v52, %v2348_v51 }
 0x152   : > { %v1146_v26 = vpop.f32.mrf.mxu2 }
 0x153   : > { %v1185_v63 = vadd.f32 %v1146_v26, %v1107_v12 }
 0x154   : > { %v1330_v13 = vpop.f32.mrf.mxu0 }
 0x156   : > { %v919_v2 = vpop.f32.mrf.mxu3 }
 0x157   : > { %v937_v15 = vadd.f32 %v919_v2, %v859_v35 }
 0x158   : > { %v1073_v3 = vpop.f32.mrf.mxu1 }
 0x159   : > { %v2441_v39 = vadd.f32 %v1019_v58, %v937_v15  ;;  %v1109_v14 = vadd.f32 %v1073_v3, %v2355_v56 }
 0x15a   : > { %v1149_v33 = vpop.f32.mrf.mxu2 }
 0x15b   : > { %v1186_v31 = vadd.f32 %v1149_v33, %v1108_v25 }
 0x15c   : > { %v1333_v9 = vpop.f32.mrf.mxu0 }
 0x15e   : > { %v1244_v11 = vpop.f32.mrf.mxu3 }
 0x15f   : > { %v1284_v48 = vadd.f32 %v1244_v11, %v1184_v41 }
 0x160   : > { %v1076_v40 = vpop.f32.mrf.mxu1 }
 0x161   : > { %v2449_v21 = vadd.f32 %v1328_v28, %v1284_v48  ;;  %v1110_v6 = vadd.f32 %v1076_v40, %v2361_v23 }
 0x162   : > { %v1151_v29 = vpop.f32.mrf.mxu2 }
 0x163   : > { %1385 = vst.msk [vmem:[%s2447_s30] sm:$0xff] %vm1384_vm8, %v2449_v21  ;;  %v1187_v22 = vadd.f32 %v1151_v29, %v1109_v14 }
 0x164   : > { %v1335_v19 = vpop.f32.mrf.mxu0 }
 0x166   : > { %v1246_v5 = vpop.f32.mrf.mxu3 }
 0x167   : > { %v1285_v46 = vadd.f32 %v1246_v5, %v1185_v63 }
 0x168   : > { %v1078_v57 = vpop.f32.mrf.mxu1 }
 0x169   : > { %v2455_v50 = vadd.f32 %v1330_v13, %v1285_v46  ;;  %v1111_v38 = vadd.f32 %v1078_v57, %v2368_v0 }
 0x16a   : > { %v1154_v49 = vpop.f32.mrf.mxu2 }
 0x16b   : > { %1386 = vst.msk [vmem:[%s2447_s30 + $0x8] sm:$0xff] %vm1384_vm8, %v2455_v50  ;;  %v1188_v35 = vadd.f32 %v1154_v49, %v1110_v6 }
 0x16c   : > { %v1338_v47 = vpop.f32.mrf.mxu0 }
 0x16e   : > { %v1249_v55 = vpop.f32.mrf.mxu3 }
 0x16f   : > { %v1286_v43 = vadd.f32 %v1249_v55, %v1186_v31 }
 0x170   : > { %v1081_v62 = vpop.f32.mrf.mxu1 }
 0x171   : > { %v2461_v4 = vadd.f32 %v1333_v9, %v1286_v43  ;;  %v1112_v52 = vadd.f32 %v1081_v62, %v2374_v24 }
 0x172   : > { %v1156_v42 = vpop.f32.mrf.mxu2 }
 0x173   : > { %1387 = vst.msk [vmem:[%s2447_s30 + $0x10] sm:$0xff] %vm1384_vm8, %v2461_v4  ;;  %v1189_v32 = vadd.f32 %v1156_v42, %v1111_v38 }
 0x174   : > { %v1340_v45 = vpop.f32.mrf.mxu0 }
 0x176   : > { %v1251_v51 = vpop.f32.mrf.mxu3 }
 0x177   : > { %v1287_v53 = vadd.f32 %v1251_v51, %v1187_v22 }
 0x178   : > { %v1083_v58 = vpop.f32.mrf.mxu1 }
 0x179   : > { %v2467_v36 = vadd.f32 %v1335_v19, %v1287_v53  ;;  %v1113_v33 = vadd.f32 %v1083_v58, %v2381_v27 }
 0x17a   : > { %v1159_v8 = vpop.f32.mrf.mxu2 }
 0x17b   : > { %1388 = vst.msk [vmem:[%s2447_s30 + $0x18] sm:$0xff] %vm1384_vm8, %v2467_v36  ;;  %v1190_v13 = vadd.f32 %v1159_v8, %v1112_v52 }
 0x17c   : > { %v1343_v7 = vpop.f32.mrf.mxu0 }
 0x17e   : > { %v1254_v56 = vpop.f32.mrf.mxu3 }
 0x17f   : > { %v1288_v44 = vadd.f32 %v1254_v56, %v1188_v35 }
 0x180   : > { %v1086_v20 = vpop.f32.mrf.mxu1 }
 0x181   : > { %v2473_v10 = vadd.f32 %v1338_v47, %v1288_v44  ;;  %v1114_v29 = vadd.f32 %v1086_v20, %v2392_v17 }
 0x182   : > { %v1161_v61 = vpop.f32.mrf.mxu2 }
 0x183   : > { %1389 = vst.msk [vmem:[%s2447_s30 + $0x20] sm:$0xff] %vm1384_vm8, %v2473_v10  ;;  %v1191_v9 = vadd.f32 %v1161_v61, %v1113_v33 }
 0x184   : > { %v1345_v28 = vpop.f32.mrf.mxu0 }
 0x186   : > { %v1256_v23 = vpop.f32.mrf.mxu3 }
 0x187   : > { %v1289_v1 = vadd.f32 %v1256_v23, %v1189_v32 }
 0x188   : > { %v1088_v34 = vpop.f32.mrf.mxu1 }
 0x189   : > { %v2479_v16 = vadd.f32 %v1340_v45, %v1289_v1  ;;  %v1115_v49 = vadd.f32 %v1088_v34, %v2403_v60 }
 0x18a   : > { %v1164_v26 = vpop.f32.mrf.mxu2 }
 0x18b   : > { %1390 = vst.msk [vmem:[%s2447_s30 + $0x28] sm:$0xff] %vm1384_vm8, %v2479_v16  ;;  %v1192_v12 = vadd.f32 %v1164_v26, %v1114_v29 }
 0x18c   : > { %v1348_v3 = vpop.f32.mrf.mxu0 }
 0x18e   : > { %v1259_v0 = vpop.f32.mrf.mxu3 }
 0x18f   : > { %v1290_v2 = vadd.f32 %v1259_v0, %v1190_v13 }
 0x190   : > { %v1091_v27 = vpop.f32.mrf.mxu1 }
 0x191   : > { %v2485_v15 = vadd.f32 %v1343_v7, %v1290_v2  ;;  %v1116_v42 = vadd.f32 %v1091_v27, %v2412_v37 }
 0x192   : > { %v1166_v24 = vpop.f32.mrf.mxu2 }
 0x193   : > { %1391 = vst.msk [vmem:[%s2447_s30 + $0x30] sm:$0xff] %vm1384_vm8, %v2485_v15  ;;  %v1193_v25 = vadd.f32 %v1166_v24, %v1115_v49 }
 0x194   : > { %v1350_v40 = vpop.f32.mrf.mxu0 }
 0x196   : > { %v1261_v41 = vpop.f32.mrf.mxu3 }
 0x197   : > { %v1291_v11 = vadd.f32 %v1261_v41, %v1191_v9 }
 0x198   : > { %v1093_v31 = vpop.f32.mrf.mxu1 }
 0x199   : > { %v2491_v48 = vadd.f32 %v1345_v28, %v1291_v11  ;;  %v1117_v53 = vadd.f32 %v1093_v31, %v2422_v54  ;;  %v1429_v31 = vmul.f32 %v2485_v15, %v2485_v15 }
 0x19a   : > { %v1169_v5 = vpop.f32.mrf.mxu2 }
 0x19b   : > { %1392 = vst.msk [vmem:[%s2447_s30 + $0x38] sm:$0xff] %vm1384_vm8, %v2491_v48  ;;  %v1194_v14 = vadd.f32 %v1169_v5, %v1116_v42 }
 0x19c   : > { %v1353_v57 = vpop.f32.mrf.mxu0 }
 0x19e   : > { %v1264_v19 = vpop.f32.mrf.mxu3 }
 0x19f   : > { %v1292_v63 = vadd.f32 %v1264_v19, %v1192_v12 }
 0x1a0   : > { %v1096_v62 = vpop.f32.mrf.mxu1 }
 0x1a1   : > { %v2497_v46 = vadd.f32 %v1348_v3, %v1292_v63  ;;  %v1118_v44 = vadd.f32 %v1096_v62, %v2432_v30 }
 0x1a2   : > { %v1171_v43 = vpop.f32.mrf.mxu2 }
 0x1a3   : > { %1393 = vst.msk [vmem:[%s2447_s30 + $0x40] sm:$0xff] %vm1384_vm8, %v2497_v46  ;;  %v1195_v6 = vadd.f32 %v1171_v43, %v1117_v53  ;;  %v1841_v43 = vmov 1.0  }
 0x1a4   : > { %v1355_v22 = vpop.f32.mrf.mxu0 }
 0x1a6   : > { %v1266_v17 = vpop.f32.mrf.mxu3 }
 0x1a7   : > { %v1293_v47 = vadd.f32 %v1266_v17, %v1193_v25 }
 0x1a8   : > { %v1098_v58 = vpop.f32.mrf.mxu1 }
 0x1a9   : > { %v2503_v55 = vadd.f32 %v1350_v40, %v1293_v47  ;;  %v1119_v1 = vadd.f32 %v1098_v58, %v2434_v59  ;;  %v1430_v47 = vmul.f32 %v2491_v48, %v2491_v48 }
 0x1aa   : > { %v1174_v8 = vpop.f32.mrf.mxu2 }
 0x1ab   : > { %1394 = vst.msk [vmem:[%s2447_s30 + $0x48] sm:$0xff] %vm1384_vm8, %v2503_v55  ;;  %v1196_v61 = vadd.f32 %v1174_v8, %v1118_v44  ;;  %v1432_v17 = vmul.f32 %v2503_v55, %v2503_v55 }
 0x1ac   : > { %v1358_v7 = vpop.f32.mrf.mxu0 }
 0x1ae   : > { %v1269_v60 = vpop.f32.mrf.mxu3 }
 0x1af   : > { %v1294_v45 = vadd.f32 %v1269_v60, %v1194_v14 }
 0x1b0   : > { %v1101_v52 = vpop.f32.mrf.mxu1 }
 0x1b1   : > { %v1378_v51 = vadd.f32 %v1353_v57, %v1294_v45  ;;  %v1120_v2 = vadd.f32 %v1101_v52, %v2437_v18  ;;  %v1431_v57 = vmul.f32 %v2497_v46, %v2497_v46 }
 0x1b2   : > { %v1176_v38 = vpop.f32.mrf.mxu2 }
 0x1b3   : > { %1395 = vst.msk [vmem:[%s2447_s30 + $0x50] sm:$0xff] %vm1384_vm8, %v1378_v51  ;;  %v1197_v20 = vadd.f32 %v1176_v38, %v1119_v1  ;;  %v1433_v25 = vmul.f32 %v1378_v51, %v1378_v51 }
 0x1b4   : > { %v1360_v28 = vpop.f32.mrf.mxu0 }
 0x1b6   : > { %v1271_v35 = vpop.f32.mrf.mxu3 }
 0x1b7   : > { %v1295_v56 = vadd.f32 %v1271_v35, %v1195_v6 }
 0x1b8   : > { %v1103_v59 = vpop.f32.mrf.mxu1 }
 0x1b9   : > { %v1379_v37 = vadd.f32 %v1355_v22, %v1295_v56  ;;  %v1121_v11 = vadd.f32 %v1103_v59, %v2441_v39 }
 0x1ba   : > { %v1179_v30 = vpop.f32.mrf.mxu2 }
 0x1bb   : > { %1396 = vst.msk [vmem:[%s2447_s30 + $0x58] sm:$0xff] %vm1384_vm8, %v1379_v37  ;;  %v1198_v3 = vadd.f32 %v1179_v30, %v1120_v2  ;;  %v1434_v49 = vmul.f32 %v1379_v37, %v1379_v37 }
 0x1bc   : > { %v1363_v33 = vpop.f32.mrf.mxu0 }
 0x1be   : > { %v1274_v32 = vpop.f32.mrf.mxu3 }
 0x1bf   : > { %v1296_v23 = vadd.f32 %v1274_v32, %v1196_v61 }
 0x1c1   : > { %v1380_v54 = vadd.f32 %v1358_v7, %v1296_v23 }
 0x1c2   : > { %v1181_v41 = vpop.f32.mrf.mxu2 }
 0x1c3   : > { %1397 = vst.msk [vmem:[%s2447_s30 + $0x60] sm:$0xff] %vm1384_vm8, %v1380_v54  ;;  %v1199_v29 = vadd.f32 %v1181_v41, %v1121_v11  ;;  %v1435_v39 = vmul.f32 %v1380_v54, %v1380_v54 }
 0x1c4   : > { %v1365_v27 = vpop.f32.mrf.mxu0 }
 0x1c6   : > { %v1276_v26 = vpop.f32.mrf.mxu3 }
 0x1c7   : > { %v1297_v13 = vadd.f32 %v1276_v26, %v1197_v20 }
 0x1c9   : > { %v1381_v0 = vadd.f32 %v1360_v28, %v1297_v13 }
 0x1cb   : > { %1398 = vst.msk [vmem:[%s2447_s30 + $0x68] sm:$0xff] %vm1384_vm8, %v1381_v0  ;;  %v1436_v5 = vmul.f32 %v1381_v0, %v1381_v0 }
 0x1ce   : > { %v1279_v34 = vpop.f32.mrf.mxu3 }
 0x1cf   : > { %v1298_v9 = vadd.f32 %v1279_v34, %v1198_v3 }
 0x1d1   : > { %v1382_v24 = vadd.f32 %v1363_v33, %v1298_v9 }
 0x1d3   : > { %1399 = vst.msk [vmem:[%s2447_s30 + $0x70] sm:$0xff] %vm1384_vm8, %v1382_v24  ;;  %v1437_v63 = vmul.f32 %v1382_v24, %v1382_v24 }
 0x1d6   : > { %v1281_v40 = vpop.f32.mrf.mxu3 }
 0x1d7   : > { %v1299_v12 = vadd.f32 %v1281_v40, %v1199_v29 }
 0x1d9   : > { %v1383_v19 = vadd.f32 %v1365_v27, %v1299_v12 }
 0x1db   : > { %1400 = vst.msk [vmem:[%s2447_s30 + $0x78] sm:$0xff] %vm1384_vm8, %v1383_v19  ;;  %v1438_v18 = vmul.f32 %v1383_v19, %v1383_v19  ;;  %1401 = vmatpush.msrb.mxu1 %v1383_v19 }
 0x1dd   : > { %1402 = vmatpush.msrb.mxu1 %v1382_v24  ;;  %1439 = vmatpush.msrb.mxu2 %v1438_v18 }
 0x1df   : > { %1403 = vmatpush.msrb.mxu1 %v1381_v0  ;;  %1440 = vmatpush.msrb.mxu2 %v1437_v63 }
 0x1e1   : > { %1404 = vmatpush.msrb.mxu1 %v1380_v54  ;;  %1441 = vmatpush.msrb.mxu2 %v1436_v5 }
 0x1e3   : > { %1405 = vmatpush.msrb.mxu1 %v1379_v37  ;;  %1442 = vmatpush.msrb.mxu2 %v1435_v39 }
 0x1e5   : > { %1406 = vmatpush.msrb.mxu1 %v1378_v51  ;;  %1443 = vmatpush.msrb.mxu2 %v1434_v49 }
 0x1e7   : > { %1407 = vmatpush.msrb.mxu1 %v2503_v55  ;;  %1444 = vmatpush.msrb.mxu2 %v1433_v25  ;;  %v1428_v55 = vmul.f32 %v2479_v16, %v2479_v16 }
 0x1e9   : > { %1408 = vmatpush.msrb.mxu1 %v2497_v46  ;;  %1445 = vmatpush.msrb.mxu2 %v1432_v17  ;;  %v1427_v46 = vmul.f32 %v2473_v10, %v2473_v10 }
 0x1eb   : > { %1409 = vmatpush.msrb.mxu1 %v2491_v48  ;;  %1446 = vmatpush.msrb.mxu2 %v1431_v57  ;;  %v1423_v48 = vmul.f32 %v2449_v21, %v2449_v21 }
 0x1ed   : > { %1410 = vmatpush.msrb.mxu1 %v2485_v15  ;;  %1447 = vmatpush.msrb.mxu2 %v1430_v47  ;;  %v1426_v15 = vmul.f32 %v2467_v36, %v2467_v36 }
 0x1ef   : > { %1411 = vmatpush.msrb.mxu1 %v2479_v16  ;;  %1448 = vmatpush.msrb.mxu2 %v1429_v31  ;;  %v1425_v16 = vmul.f32 %v2461_v4, %v2461_v4 }
 0x1f1   : > { %1412 = vmatpush.msrb.mxu1 %v2473_v10  ;;  %1449 = vmatpush.msrb.mxu2 %v1428_v55  ;;  %v1424_v10 = vmul.f32 %v2455_v50, %v2455_v50 }
 0x1f3   : > { %1413 = vmatpush.msrb.mxu1 %v2467_v36  ;;  %1450 = vmatpush.msrb.mxu2 %v1427_v46 }
 0x1f5   : > { %1414 = vmatpush.msrb.mxu1 %v2461_v4  ;;  %1451 = vmatpush.msrb.mxu2 %v1426_v15 }
 0x1f7   : > { %1415 = vmatpush.msrb.mxu1 %v2455_v50  ;;  %1452 = vmatpush.msrb.mxu2 %v1425_v16 }
 0x1f9   : > { %1416 = vmatpush.msrb.mxu1 %v2449_v21  ;;  %1453 = vmatpush.msrb.mxu2 %v1424_v10 }
 0x1fa   : > { %1417 = vmatmul.f32.vlgmr.msrb.gmra.mxu1 %v1841_v43 }
 0x1fb   : > { %1454 = vmatpush.msrb.mxu2 %v1423_v48 }
 0x1fc   : > { %1455 = vmatmul.f32.vlgmr.msrb.gmra.mxu2 %v1841_v43 }
 0x277   : > { %v1418_v4 = vpop.f32.mrf.mxu1 }
 0x278   : > { %1422 = vst.msk [vmem:[%s227_s9] sm:$0x1] %vm1421_vm9, %v1418_v4 }
 0x27f   : > { %v1456_v50 = vpop.f32.mrf.mxu2 }
 0x280   : > { %1459 = vst.msk [vmem:[%s227_s9 + $0x1] sm:$0x1] %vm1421_vm9, %v1456_v50 }
 0x281 PF: > { %s14_s16 = sadd.s32 1, %s1839_s16   ;;  %s2584_s12 = smov %s1831_s14 }
 0x282   : > { %p11_p7 = scmp.ge.s32.totalorder %s14_s16, 6   ;;  %s2585_s13 = smov %s1835_s15 }
 0x283   : > { %s2586_s14 = smov %s2589_s17  ;;  %s2587_s15 = smov %s2593_s18 }
 0x284   :  { %13 = sbr.rel (!%p11_p7) target bundleno = 3 (0x3), region = 78 }

// kernel: layer_forward.6
= control target key start
LH: loop header
LB: loop body
LE: loop exit
PB: predicated region body
PF: predicated region fallthrough
CT: control target
= control target key end

     0   :  { %s1861_s12 = smov 0   ;;  %s1863_s13 = smov 0   ;;  %s2575_s0 = inlined_call_operand.vmem [shape: bf16[2,2,10,18,8], index: 0, kind: input, shape index: {}]   ;;  %s2576_s1 = inlined_call_operand.vmem [shape: bf16[9,8,8], index: 1, kind: input, shape index: {}]   ;;  %s2577_s2 = inlined_call_operand.vmem [shape: f32[2,2,128,8], index: 2, kind: output, shape index: {0}]   ;;  %s2578_s3 = inlined_call_operand.vmem [shape: f32[2,2,2,8], index: 3, kind: output, shape index: {1}]  }
   0x1   :  { %s1865_s14 = smov 0   ;;  %s1867_s15 = smov 0  }
   0x2   :  { %s1869_s16 = smov 0  }
   0x3 LB: > { %s23_s17 = sadd.s32 1, %s1830_s14  ;;  %s26_s18 = sadd.s32 1, %s1834_s15  ;;  %s1838_s16 = sphi %s1869_s16, %s14_s16   ;;  %s1834_s15 = sphi %s1867_s15, %s2586_s15   ;;  %s1830_s14 = sphi %s1865_s14, %s2585_s14   ;;  %s1826_s13 = sphi %s1863_s13, %s2584_s13   ;;  %s1822_s12 = sphi %s1861_s12, %s2583_s12  }
   0x4   : > { %p24_p0 = scmp.ge.s32.totalorder %s23_s17, 2  ;;  %p1605_p1 = scmp.ge.s32.totalorder %s1838_s16, 1 }
   0x5   : > { %p162_p2 = scmp.lt.s32.totalorder %s1838_s16, 5 }
   0x6   : > { %s2588_s17 = smov (%p24_p0, %s23_s17), 0  ;;  %s2590_s18 = smov (!%p24_p0, %s26_s18), %s1834_s15 }
   0x7   : > { %p163_p3 = pnand %p1605_p1, %p162_p2  ;;  %p28_p4 = scmp.ge.s32.totalorder %s2590_s18, 2 }
   0x8   : > { %p202_p5 = scmp.lt.s32.totalorder (!%p163_p3), %s1826_s13, 1  ;;  %p204_p6 = scmp.lt.s32.totalorder (!%p163_p3), %s1822_s12, 1 }
   0x9   : > { %s2592_s18 = smov (%p28_p4, %s2590_s18), 0  ;;  %166 = sbr.rel (%p163_p3) target bundleno = 641 (0x281), region = 28 }
   0xe   : > { %v1612_v0 = vld [vmem:[%s2576_s1 + $0x4] sm:$0xf]  ;;  %vm506_vm0 = vcmask 1043456   ;;  %s2594_s13 = smov (!%p202_p5, %s1826_s13), 1  ;;  %s2596_s12 = smov (!%p204_p6, %s1822_s12), 1  ;;  %vm481_vm3 = vcmask 64512  }
   0xf   : > { %v508_v1 = vsel %vm506_vm0, %v1612_v0, 0  ;;  %s1758_s21 = smul.u32 60, %s2594_s13  ;;  %vm260_vm1 = vsmask.f32 3328  ;;  %vm261_vm2 = vsmask.f32 7440 }
  0x10   : > { %1754 = vmatpush.bf16.msra.mxu1 %v508_v1  ;;  %1755 = vmatpush.bf16.msra.mxu2 %v508_v1  ;;  %s1757_s22 = smul.u32 30, %s2596_s12  ;;  %vm1942_vm4 = vmor %vm260_vm1, %vm261_vm2  ;;  %vm683_vm5 = vcmask 1042432   ;;  %vm684_vm6 = vcmask 1046532   ;;  %s1608_s25 = sshll.u32 %s2594_s13, 5  ;;  %vm1420_vm8 = vcmask 57344  }
  0x11   : > { %1756 = vmatpush.bf16.msra.mxu3 %v508_v1  ;;  %517 = vmatpush.bf16.msra.mxu0 %v508_v1  ;;  %vm2092_vm7 = vmor %vm683_vm5, %vm684_vm6  ;;  %s1610_s4 = sshll.u32 %s2594_s13, 1 }
  0x12   : > { %s208_s23 = sadd.s32 %s1758_s21, %s1757_s22  ;;  %s225_s5 = sadd.s32 %s1610_s4, %s2596_s12 }
  0x13   : > { %s1606_s24 = sshll.u32 %s208_s23, 2  ;;  %s1611_s6 = sshll.u32 %s225_s5, 1 }
  0x14   : > { %s1904_s27 = scalar_lea.vmem %s2575_s0, %s1606_s24  ;;  %s1607_s24 = sshll.u32 %s2596_s12, 4 }
  0x15   : > { %v1907_v2 = vld [vmem:[%s1904_s27 + $0xc] sm:$0xf]  ;;  %v1910_v3 = vld [vmem:[%s1904_s27 + $0x10] sm:$0xf]  ;;  %v1913_v4 = vld [vmem:[%s1904_s27 + $0x14] sm:$0x1]  ;;  %s217_s26 = sadd.s32 %s1608_s25, %s1607_s24  ;;  %s227_s9 = scalar_lea.vmem %s2578_s3, %s1611_s6 }
  0x16   : > { %v288_v5 = vshrl.u32 %v1907_v2, 16  ;;  %v291_v6 = vshll.u32 %v1907_v2, 16  ;;  %v297_v7 = vshll.u32 %v1910_v3, 16  ;;  %v301_v8 = vshrl.u32 %v1910_v3, 16  ;;  %v1920_v9 = vld [vmem:[%s1904_s27 + $0x24] sm:$0xf] }
  0x17   : > { %v307_v10 = vshll.u32 %v1913_v4, 16  ;;  %v1924_v11 = vld [vmem:[%s1904_s27 + $0x28] sm:$0xf]  ;;  %v1927_v12 = vld [vmem:[%s1904_s27 + $0x2c] sm:$0x1]  ;;  %v336_v13 = vshrl.u32 %v1920_v9, 16 }
  0x18   : > { %v290_v14 = vrot.slane %v288_v5, 4  ;;  %v293_v15 = vrot.slane %v291_v6, 5  ;;  %v299_v16 = vrot.slane %v297_v7, 5  ;;  %v303_v17 = vrot.slane %v301_v8, 4  ;;  %v1931_v18 = vld [vmem:[%s1904_s27 + $0x3c] sm:$0xf] }
  0x19   : > { %v309_v19 = vrot.slane %v307_v10, 5  ;;  %v338_v20 = vrot.slane %v336_v13, 4  ;;  %v339_v21 = vshll.u32 %v1920_v9, 16  ;;  %v345_v22 = vshll.u32 %v1924_v11, 16  ;;  %v1938_v27 = vld [vmem:[%s1904_s27 + $0x40] sm:$0xf] }
  0x1a   : > { %v294_v23 = vor.u32 %v293_v15, %v290_v14  ;;  %v304_v24 = vor.u32 %v303_v17, %v299_v16  ;;  %v349_v25 = vshrl.u32 %v1924_v11, 16  ;;  %v355_v26 = vshll.u32 %v1927_v12, 16  ;;  %v1949_v38 = vld [vmem:[%s1904_s27 + $0x44] sm:$0x1]  ;;  %v1958_v46 = vld [vmem:[%s1904_s27 + $0x18] sm:$0xf] }
  0x1b   : > { %v341_v29 = vrot.slane %v339_v21, 5  ;;  %v347_v30 = vrot.slane %v345_v22, 5  ;;  %v384_v31 = vshrl.u32 %v1931_v18, 16  ;;  %v387_v32 = vshll.u32 %v1931_v18, 16  ;;  %v1966_v58 = vld [vmem:[%s1904_s27 + $0x1c] sm:$0xf] }
  0x1c   : > { %v295_v33 = vrot.slane %v294_v23, 4  ;;  %v305_v34 = vrot.slane %v304_v24, 4  ;;  %v351_v35 = vrot.slane %v349_v25, 4  ;;  %v357_v36 = vrot.slane %v355_v26, 5  ;;  %v1972_v0 = vld [vmem:[%s1904_s27 + $0x20] sm:$0x1] }
  0x1d   : > { %v342_v37 = vor.u32 %v341_v29, %v338_v20  ;;  %v386_v39 = vrot.slane %v384_v31, 4  ;;  %v389_v40 = vrot.slane %v387_v32, 5  ;;  %v393_v41 = vshll.u32 %v1938_v27, 16  ;;  %v1975_v1 = vld [vmem:[%s1904_s27 + $0x30] sm:$0xf] }
  0x1e   : > { %v300_v42 = vsel %vm1942_vm4, %v295_v33, %v299_v16  ;;  %v310_v43 = vsel %vm1942_vm4, %v305_v34, %v309_v19  ;;  %v352_v44 = vor.u32 %v351_v35, %v347_v30  ;;  %v397_v45 = vshrl.u32 %v1938_v27, 16  ;;  %v1985_v16 = vld [vmem:[%s1904_s27 + $0x34] sm:$0xf]  ;;  %v1991_v21 = vld [vmem:[%s1904_s27 + $0x38] sm:$0x1] }
  0x1f   : > { %v459_v47 = vunpack.c.l.b16 %v300_v42  ;;  %v460_v48 = vunpack.c.l.b16 %v310_v43  ;;  %v343_v49 = vrot.slane %v342_v37, 4  ;;  %v390_v50 = vor.u32 %v389_v40, %v386_v39  ;;  %v1998_v29 = vld [vmem:[%s1904_s27 + $0x48] sm:$0xf]  ;;  %v2008_v42 = vld [vmem:[%s1904_s27 + $0x4c] sm:$0xf] }
  0x20   : > { %v353_v51 = vrot.slane %v352_v44, 4  ;;  %v395_v52 = vrot.slane %v393_v41, 5  ;;  %v399_v53 = vrot.slane %v397_v45, 4  ;;  %v403_v54 = vshll.u32 %v1949_v38, 16 }
  0x21   : > { %v1961_v55 = vpack.c.b16 %v460_v48, %v459_v47  ;;  %v348_v56 = vsel %vm1942_vm4, %v343_v49, %v347_v30  ;;  %v391_v57 = vrot.slane %v390_v50, 4  ;;  %v312_v59 = vshrl.u32 %v1958_v46, 16  ;;  %v2012_v49 = vld [vmem:[%s1904_s27 + $0x50] sm:$0x1] }
  0x22   : > { %v358_v60 = vsel %vm1942_vm4, %v353_v51, %v357_v36  ;;  %v463_v61 = vunpack.c.l.b16 %v348_v56  ;;  %v400_v62 = vor.u32 %v399_v53, %v395_v52  ;;  %v405_v63 = vrot.slane %v403_v54, 5  ;;  %v259_v54 = vld [vmem:[%s2576_s1] sm:$0xf] }
  0x23   : > { %1614 = vmatmul.msk.bf16.vlgmr.msra.gmra.mxu1 %vm481_vm3, %v1961_v55  ;;  %v464_v5 = vunpack.c.l.b16 %v358_v60  ;;  %v396_v6 = vsel %vm1942_vm4, %v391_v57, %v395_v52  ;;  %v314_v7 = vrot.slane %v312_v59, 4  ;;  %v315_v8 = vshll.u32 %v1958_v46, 16 }
  0x24   : > { %v401_v10 = vrot.slane %v400_v62, 4  ;;  %v467_v13 = vunpack.c.l.b16 %v396_v6  ;;  %v321_v14 = vshll.u32 %v1966_v58, 16  ;;  %v325_v15 = vshrl.u32 %v1966_v58, 16  ;;  %v1669_v6 = vld [vmem:[%s2576_s1 + $0x8] sm:$0xf] }
  0x25   : > { %v1987_v17 = vpack.c.b16 %v464_v5, %v463_v61  ;;  %v317_v19 = vrot.slane %v315_v8, 5  ;;  %v331_v20 = vshll.u32 %v1972_v0, 16  ;;  %v360_v22 = vshrl.u32 %v1975_v1, 16 }
  0x26   : > { %v406_v23 = vsel %vm1942_vm4, %v401_v10, %v405_v63  ;;  %v323_v24 = vrot.slane %v321_v14, 5  ;;  %v327_v25 = vrot.slane %v325_v15, 4  ;;  %v363_v26 = vshll.u32 %v1975_v1, 16  ;;  %v2034_v14 = vld [vmem:[%s1904_s27] sm:$0xf] }
  0x27   : > { %1616 = vmatmul.msk.bf16.vlgmr.msra.gmra.mxu2 %vm481_vm3, %v1987_v17  ;;  %v468_v30 = vunpack.c.l.b16 %v406_v23  ;;  %v318_v31 = vor.u32 %v317_v19, %v314_v7  ;;  %v333_v32 = vrot.slane %v331_v20, 5  ;;  %v362_v33 = vrot.slane %v360_v22, 4  ;;  %v2039_v23 = vld [vmem:[%s1904_s27 + $0x4] sm:$0xf] }
  0x28   : > { %v328_v34 = vor.u32 %v327_v25, %v323_v24  ;;  %v365_v35 = vrot.slane %v363_v26, 5  ;;  %v369_v36 = vshll.u32 %v1985_v16, 16  ;;  %v373_v37 = vshrl.u32 %v1985_v16, 16 }
  0x29   : > { %v2004_v39 = vpack.c.b16 %v468_v30, %v467_v13  ;;  %v319_v40 = vrot.slane %v318_v31, 4  ;;  %v379_v41 = vshll.u32 %v1991_v21, 16  ;;  %v408_v43 = vshrl.u32 %v1998_v29, 16 }
  0x2a   : > { %v329_v44 = vrot.slane %v328_v34, 4  ;;  %v366_v45 = vor.u32 %v365_v35, %v362_v33  ;;  %v371_v47 = vrot.slane %v369_v36, 5  ;;  %v375_v48 = vrot.slane %v373_v37, 4 }
  0x2b   : > { %1618 = vmatmul.msk.bf16.vlgmr.msra.gmra.mxu3 %vm481_vm3, %v2004_v39  ;;  %v324_v50 = vsel %vm1942_vm4, %v319_v40, %v323_v24  ;;  %v381_v51 = vrot.slane %v379_v41, 5  ;;  %v410_v52 = vrot.slane %v408_v43, 4  ;;  %v411_v53 = vshll.u32 %v1998_v29, 16  ;;  %v2042_v24 = vld [vmem:[%s1904_s27 + $0x8] sm:$0x1] }
  0x2c   : > { %v334_v56 = vsel %vm1942_vm4, %v329_v44, %v333_v32  ;;  %v461_v57 = vunpack.c.l.b16 %v324_v50  ;;  %v367_v59 = vrot.slane %v366_v45, 4  ;;  %v376_v60 = vor.u32 %v375_v48, %v371_v47  ;;  %v2053_v43 = vld [vmem:[%s1904_s27 + $0x54] sm:$0xf]  ;;  %v2062_v50 = vld [vmem:[%s1904_s27 + $0x58] sm:$0xf] }
  0x2d   : > { %v462_v61 = vunpack.c.l.b16 %v334_v56  ;;  %v413_v62 = vrot.slane %v411_v53, 5  ;;  %v417_v63 = vshll.u32 %v2008_v42, 16  ;;  %v421_v5 = vshrl.u32 %v2008_v42, 16 }
  0x2e   : > { %v372_v7 = vsel %vm1942_vm4, %v367_v59, %v371_v47  ;;  %v377_v8 = vrot.slane %v376_v60, 4  ;;  %v427_v10 = vshll.u32 %v2012_v49, 16  ;;  %v624_v13 = vsel %vm506_vm0, %v259_v54, 0  ;;  %v2066_v60 = vld [vmem:[%s1904_s27 + $0x5c] sm:$0x1] }
  0x2f   : > { %v2036_v15 = vpack.c.b16 %v462_v61, %v461_v57  ;;  %v465_v19 = vunpack.c.l.b16 %v372_v7  ;;  %v414_v20 = vor.u32 %v413_v62, %v410_v52  ;;  %v419_v22 = vrot.slane %v417_v63, 5  ;;  %633 = vmatpush.bf16.msrb.mxu1 %v624_v13 }
  0x30   : > { %v382_v25 = vsel %vm1942_vm4, %v377_v8, %v381_v51  ;;  %v423_v26 = vrot.slane %v421_v5, 4  ;;  %v429_v30 = vrot.slane %v427_v10, 5  ;;  %v793_v31 = vsel %vm506_vm0, %v1669_v6, 0 }
  0x31   : > { %v466_v32 = vunpack.c.l.b16 %v382_v25  ;;  %v415_v33 = vrot.slane %v414_v20, 4  ;;  %802 = vmatpush.bf16.msrb.mxu2 %v793_v31  ;;  %v264_v34 = vshrl.u32 %v2034_v14, 16  ;;  %v267_v35 = vshll.u32 %v2034_v14, 16  ;;  %v1678_v31 = vld [vmem:[%s2576_s1 + $0xc] sm:$0xf] }
  0x32   : > { %v424_v36 = vor.u32 %v423_v26, %v419_v22  ;;  %v273_v37 = vshll.u32 %v2039_v23, 16  ;;  %v277_v40 = vshrl.u32 %v2039_v23, 16  ;;  %v283_v41 = vshll.u32 %v2042_v24, 16 }
  0x33   : > { %1615 = vmatmul.msk.bf16.gmra.mxu1 %vm481_vm3, %v2036_v15  ;;  %v2057_v44 = vpack.c.b16 %v466_v32, %v465_v19  ;;  %v420_v45 = vsel %vm1942_vm4, %v415_v33, %v419_v22  ;;  %v266_v47 = vrot.slane %v264_v34, 4  ;;  %v269_v48 = vrot.slane %v267_v35, 5  ;;  %v1691_v32 = vld [vmem:[%s2576_s1 + $0x10] sm:$0xf] }
  0x34   : > { %v425_v51 = vrot.slane %v424_v36, 4  ;;  %v469_v52 = vunpack.c.l.b16 %v420_v45  ;;  %v275_v53 = vrot.slane %v273_v37, 5  ;;  %v279_v54 = vrot.slane %v277_v40, 4 }
  0x35   : > { %v270_v56 = vor.u32 %v269_v48, %v266_v47  ;;  %v285_v57 = vrot.slane %v283_v41, 5  ;;  %v691_v59 = vrot.slane %v2042_v24, 5  ;;  %v432_v61 = vshrl.u32 %v2053_v43, 16 }
  0x36   : > { %v430_v62 = vsel %vm1942_vm4, %v425_v51, %v429_v30  ;;  %v280_v63 = vor.u32 %v279_v54, %v275_v53  ;;  %v435_v5 = vshll.u32 %v2053_v43, 16  ;;  %v441_v6 = vshll.u32 %v2062_v50, 16 }
  0x37   : > { %1617 = vmatmul.msk.bf16.gmra.mxu2 %vm481_vm3, %v2057_v44  ;;  %v470_v7 = vunpack.c.l.b16 %v430_v62  ;;  %v271_v8 = vrot.slane %v270_v56, 4  ;;  %v434_v10 = vrot.slane %v432_v61, 4  ;;  %v445_v13 = vshrl.u32 %v2062_v50, 16 }
  0x38   : > { %v281_v19 = vrot.slane %v280_v63, 4  ;;  %v437_v20 = vrot.slane %v435_v5, 5  ;;  %v443_v22 = vrot.slane %v441_v6, 5  ;;  %v451_v24 = vshll.u32 %v2066_v60, 16 }
  0x39   : > { %v2077_v25 = vpack.c.b16 %v470_v7, %v469_v52  ;;  %v276_v26 = vsel %vm1942_vm4, %v271_v8, %v275_v53  ;;  %v447_v30 = vrot.slane %v445_v13, 4  ;;  %v1661_v41 = vrot.slane %v2034_v14, 9  ;;  %v1744_v14 = vld [vmem:[%s1904_s27] sm:$0xff] }
  0x3a   : > { %v286_v33 = vsel %vm1942_vm4, %v281_v19, %v285_v57  ;;  %v457_v34 = vunpack.c.l.b16 %v276_v26  ;;  %v438_v35 = vor.u32 %v437_v20, %v434_v10  ;;  %v453_v36 = vrot.slane %v451_v24, 5  ;;  %v1745_v26 = vld [vmem:[%s1904_s27 + $0xc] sm:$0xff] }
  0x3b   : > { %1619 = vmatmul.msk.bf16.gmra.mxu3 %vm481_vm3, %v2077_v25  ;;  %v458_v37 = vunpack.c.l.b16 %v286_v33  ;;  %v448_v40 = vor.u32 %v447_v30, %v443_v22  ;;  %v688_v48 = vrot.slane %v2039_v23, 5  ;;  %v871_v51 = vsel %vm506_vm0, %v1678_v31, 0 }
  0x3c   : > { %v439_v45 = vrot.slane %v438_v35, 4  ;;  %v971_v52 = vsel %vm506_vm0, %v1691_v32, 0  ;;  %880 = vmatpush.bf16.msrb.mxu3 %v871_v51  ;;  %v695_v10 = vrot.slane %v1910_v3, 5  ;;  %v1662_v19 = vrot.slane %v1907_v2, 9 }
  0x3d   : > { %v473_v53 = vpack.c.b16 %v458_v37, %v457_v34  ;;  %v449_v54 = vrot.slane %v448_v40, 4  ;;  %980 = vmatpush.bf16.msrb.mxu0 %v971_v52  ;;  %v689_v56 = vsel %vm2092_vm7, %v1661_v41, %v688_v48  ;;  %v690_v57 = vrot.slane %v688_v48, 4 }
  0x3e   : > { %v744_v61 = vunpack.c.l.b16 %v689_v56  ;;  %v444_v62 = vsel %vm1942_vm4, %v439_v45, %v443_v22  ;;  %v697_v20 = vrot.slane %v695_v10, 4  ;;  %v698_v22 = vrot.slane %v1913_v4, 5  ;;  %v2148_v45 = vld [vmem:[%s1904_s27 + $0x18] sm:$0xff] }
  0x3f   : > { %1613 = vmatmul.msk.bf16.vlgmr.msra.gmra.mxu0 %vm481_vm3, %v473_v53  ;;  %v454_v23 = vsel %vm1942_vm4, %v449_v54, %v453_v36  ;;  %v692_v63 = vsel %vm2092_vm7, %v690_v57, %v691_v59  ;;  %v471_v6 = vunpack.c.l.b16 %v444_v62  ;;  %v696_v59 = vsel %vm2092_vm7, %v1662_v19, %v695_v10  ;;  %v1710_v19 = vld [vmem:[%s2576_s1 + $0x18] sm:$0xf] }
  0x40   : > { %v745_v5 = vunpack.c.l.b16 %v692_v63  ;;  %v472_v7 = vunpack.c.l.b16 %v454_v23  ;;  %v699_v24 = vsel %vm2092_vm7, %v697_v20, %v698_v22  ;;  %v746_v3 = vunpack.c.l.b16 %v696_v59 }
  0x41   : > { %v747_v30 = vunpack.c.l.b16 %v699_v24  ;;  %v709_v2 = vrot.slane %v1924_v11, 5  ;;  %v1664_v31 = vrot.slane %v1920_v9, 9  ;;  %v712_v32 = vrot.slane %v1927_v12, 5 }
  0x42   : > { %v760_v8 = vpack.c.b16 %v745_v5, %v744_v61  ;;  %v2111_v13 = vpack.c.b16 %v472_v7, %v471_v6  ;;  %v702_v33 = vrot.slane %v1966_v58, 5  ;;  %v1663_v37 = vrot.slane %v1958_v46, 9 }
  0x43   : > { %1653 = vmatmul.msk.bf16.vlgmr.msrb.gmra.mxu1 %vm481_vm3, %v1744_v14  ;;  %v2127_v4 = vpack.c.b16 %v747_v30, %v746_v3  ;;  %v711_v34 = vrot.slane %v709_v2, 4  ;;  %v710_v35 = vsel %vm2092_vm7, %v1664_v31, %v709_v2  ;;  %v705_v40 = vrot.slane %v1972_v0, 5  ;;  %v1733_v30 = vld [vmem:[%s2576_s1 + $0x20] sm:$0xf]  ;;  %v2233_v2 = vld [vmem:[%s1904_s27 + $0x48] sm:$0xff] }
  0x44   : > { %v750_v36 = vunpack.c.l.b16 %v710_v35  ;;  %v704_v9 = vrot.slane %v702_v33, 4  ;;  %v703_v58 = vsel %vm2092_vm7, %v1663_v37, %v702_v33  ;;  %v716_v46 = vrot.slane %v1985_v16, 5 }
  0x45   : > { %v748_v48 = vunpack.c.l.b16 %v703_v58  ;;  %v1665_v52 = vrot.slane %v1975_v1, 9  ;;  %v719_v53 = vrot.slane %v1991_v21, 5  ;;  %v2170_v1 = vld [vmem:[%s1904_s27 + $0x24] sm:$0xff]  ;;  %v2181_v21 = vld [vmem:[%s1904_s27 + $0x30] sm:$0xff]  ;;  %v723_v62 = vrot.slane %v1938_v27, 5 }
  0x46   : > { %v706_v41 = vsel %vm2092_vm7, %v704_v9, %v705_v40  ;;  %v718_v54 = vrot.slane %v716_v46, 4  ;;  %v1666_v23 = vrot.slane %v1931_v18, 9  ;;  %v726_v5 = vrot.slane %v1949_v38, 5 }
  0x47   : > { %1670 = vmatmul.msk.bf16.vlgmr.msrb.gmra.mxu2 %vm481_vm3, %v760_v8  ;;  %v749_v51 = vunpack.c.l.b16 %v706_v41  ;;  %v717_v56 = vsel %vm2092_vm7, %v1665_v52, %v716_v46  ;;  %v725_v63 = vrot.slane %v723_v62, 4  ;;  %v2199_v8 = vld [vmem:[%s1904_s27 + $0x3c] sm:$0xff]  ;;  %v730_v38 = vrot.slane %v2008_v42, 5 }
  0x48   : > { %v720_v57 = vsel %vm2092_vm7, %v718_v54, %v719_v53  ;;  %v752_v14 = vunpack.c.l.b16 %v717_v56  ;;  %v724_v6 = vsel %vm2092_vm7, %v1666_v23, %v723_v62  ;;  %v1133_v20 = vsel %vm506_vm0, %v1710_v19, 0  ;;  %v1723_v42 = vld [vmem:[%s2576_s1 + $0x1c] sm:$0xf] }
  0x49   : > { %v2155_v0 = vpack.c.b16 %v749_v51, %v748_v48  ;;  %v753_v16 = vunpack.c.l.b16 %v720_v57  ;;  %v727_v7 = vsel %vm2092_vm7, %v725_v63, %v726_v5  ;;  %v754_v27 = vunpack.c.l.b16 %v724_v6  ;;  %1142 = vmatpush.bf16.msra.mxu2 %v1133_v20  ;;  %v2263_v57 = vld [vmem:[%s1904_s27 + $0x68] sm:$0x1]  ;;  %v2277_v5 = vld [vmem:[%s1904_s27 + $0x54] sm:$0xff] }
  0x4a   : > { %v755_v10 = vunpack.c.l.b16 %v727_v7  ;;  %v1667_v22 = vrot.slane %v1998_v29, 9  ;;  %v732_v59 = vrot.slane %v730_v38, 4  ;;  %v733_v24 = vrot.slane %v2012_v49, 5  ;;  %v1701_v49 = vld [vmem:[%s2576_s1 + $0x14] sm:$0xf] }
  0x4b   : > { %1620 = vmatmul.msk.bf16.gmra.mxu3 %vm481_vm3, %v2111_v13  ;;  %v2165_v61 = vpack.c.b16 %v753_v16, %v752_v14  ;;  %v1233_v29 = vsel %vm506_vm0, %v1723_v42, 0  ;;  %v1055_v33 = vsel %vm506_vm0, %v1701_v49, 0  ;;  %v737_v37 = vrot.slane %v2062_v50, 5 }
  0x4c   : > { %v2205_v18 = vpack.c.b16 %v755_v10, %v754_v27  ;;  %v734_v3 = vsel %vm2092_vm7, %v732_v59, %v733_v24  ;;  %1242 = vmatpush.bf16.msra.mxu3 %v1233_v29  ;;  %1064 = vmatpush.bf16.msra.mxu1 %v1055_v33  ;;  %v1668_v48 = vrot.slane %v2053_v43, 9  ;;  %v740_v46 = vrot.slane %v2066_v60, 5 }
  0x4d   : > { %v739_v51 = vrot.slane %v737_v37, 4  ;;  %v958_v23 = vshll.u32 %v2263_v57, 16 }
  0x4e   : > { %v738_v43 = vsel %vm2092_vm7, %v1668_v48, %v737_v37 }
  0x4f   : > { %1692 = vmatmul.msk.bf16.vlgmr.msrb.gmra.mxu0 %vm481_vm3, %v1961_v55  ;;  %v713_v55 = vsel %vm2092_vm7, %v711_v34, %v712_v32  ;;  %v757_v32 = vunpack.c.l.b16 %v734_v3  ;;  %v1317_v34 = vsel %vm506_vm0, %v1733_v30, 0  ;;  %v741_v16 = vsel %vm2092_vm7, %v739_v51, %v740_v46 }
  0x50   : > { %v751_v11 = vunpack.c.l.b16 %v713_v55  ;;  %1326 = vmatpush.bf16.msra.mxu0 %v1317_v34  ;;  %v2242_v55 = vld [vmem:[%s1904_s27 + $0x60] sm:$0xf]  ;;  %v758_v6 = vunpack.c.l.b16 %v738_v43  ;;  %v759_v7 = vunpack.c.l.b16 %v741_v16  ;;  %v960_v19 = vrot.slane %v958_v23, 5 }
  0x51   : > { %v939_v9 = vshrl.u32 %v2242_v55, 16  ;;  %v942_v40 = vshll.u32 %v2242_v55, 16 }
  0x52   : > { %v2140_v12 = vpack.c.b16 %v751_v11, %v750_v36  ;;  %v2245_v36 = vld [vmem:[%s1904_s27 + $0x64] sm:$0xf] }
  0x53   : > { %1654 = vmatmul.msk.bf16.gmra.mxu1 %vm481_vm3, %v1745_v26  ;;  %v948_v58 = vshll.u32 %v2245_v36, 16  ;;  %v952_v41 = vshrl.u32 %v2245_v36, 16  ;;  %v941_v50 = vrot.slane %v939_v9, 4  ;;  %v944_v53 = vrot.slane %v942_v40, 5 }
  0x55   : > { %v950_v54 = vrot.slane %v948_v58, 5  ;;  %v954_v56 = vrot.slane %v952_v41, 4  ;;  %v945_v60 = vor.u32 %v944_v53, %v941_v50  ;;  %v2312_v58 = vld [vmem:[%s1904_s27 + $0x60] sm:$0xff] }
  0x57   : > { %1671 = vmatmul.msk.bf16.gmra.mxu2 %vm481_vm3, %v2127_v4  ;;  %v955_v62 = vor.u32 %v954_v56, %v950_v54  ;;  %v946_v10 = vrot.slane %v945_v60, 4 }
  0x59   : > { %v951_v59 = vsel %vm1942_vm4, %v946_v10, %v950_v54 }
  0x5b   : > { %1683 = vmatmul.msk.bf16.vlgmr.msrb.gmra.mxu3 %vm481_vm3, %v1745_v26  ;;  %v731_v26 = vsel %vm2092_vm7, %v1667_v22, %v730_v38  ;;  %v956_v38 = vrot.slane %v955_v62, 4  ;;  %v2285_v22 = vpack.c.b16 %v759_v7, %v758_v6 }
  0x5c   : > { %v756_v31 = vunpack.c.l.b16 %v731_v26  ;;  %v964_v26 = vunpack.c.l.b16 %v951_v59 }
  0x5d   : > { %v961_v24 = vsel %vm1942_vm4, %v956_v38, %v960_v19 }
  0x5e   : > { %v2249_v11 = vpack.c.b16 %v757_v32, %v756_v31  ;;  %v965_v3 = vunpack.c.l.b16 %v961_v24 }
  0x5f   : > { %1693 = vmatmul.msk.bf16.gmra.mxu0 %vm481_vm3, %v2036_v15 }
  0x60   : > { %v2299_v30 = vpack.c.b16 %v965_v3, %v964_v26 }
  0x63   : > { %1655 = vmatmul.msk.bf16.gmra.mxu1 %vm481_vm3, %v2148_v45 }
  0x67   : > { %1672 = vmatmul.msk.bf16.gmra.mxu2 %vm481_vm3, %v2155_v0 }
  0x6b   : > { %1684 = vmatmul.msk.bf16.gmra.mxu3 %vm481_vm3, %v2148_v45 }
  0x6f   : > { %1694 = vmatmul.msk.bf16.gmra.mxu0 %vm481_vm3, %v1987_v17 }
  0x73   : > { %1656 = vmatmul.msk.bf16.gmra.mxu1 %vm481_vm3, %v2170_v1 }
  0x77   : > { %1673 = vmatmul.msk.bf16.gmra.mxu2 %vm481_vm3, %v2140_v12 }
  0x7b   : > { %1685 = vmatmul.msk.bf16.gmra.mxu3 %vm481_vm3, %v2170_v1 }
  0x7f   : > { %1695 = vmatmul.msk.bf16.gmra.mxu0 %vm481_vm3, %v2057_v44 }
  0x83   : > { %1657 = vmatmul.msk.bf16.gmra.mxu1 %vm481_vm3, %v2181_v21 }
  0x87   : > { %1674 = vmatmul.msk.bf16.gmra.mxu2 %vm481_vm3, %v2165_v61 }
  0x8b   : > { %1686 = vmatmul.msk.bf16.gmra.mxu3 %vm481_vm3, %v2181_v21 }
  0x8f   : > { %1696 = vmatmul.msk.bf16.gmra.mxu0 %vm481_vm3, %v2004_v39 }
  0x93   : > { %1658 = vmatmul.msk.bf16.gmra.mxu1 %vm481_vm3, %v2199_v8 }
  0x97   : > { %1675 = vmatmul.msk.bf16.gmra.mxu2 %vm481_vm3, %v2205_v18 }
  0x9b   : > { %1687 = vmatmul.msk.bf16.gmra.mxu3 %vm481_vm3, %v2199_v8 }
  0x9f   : > { %1697 = vmatmul.msk.bf16.gmra.mxu0 %vm481_vm3, %v2077_v25 }
  0xa0   : > { %v2239_v35 = vpop.f32.mrf.mxu1 }
  0xa3   : > { %1659 = vmatmul.msk.bf16.gmra.mxu1 %vm481_vm3, %v2233_v2 }
  0xa7   : > { %1676 = vmatmul.msk.bf16.gmra.mxu2 %vm481_vm3, %v2249_v11 }
  0xa8   : > { %v2260_v52 = vpop.f32.mrf.mxu1 }
  0xaa   : > { %v2265_v14 = vpop.f32.mrf.mxu2 }
  0xab   : > { %1688 = vmatmul.msk.bf16.gmra.mxu3 %vm481_vm3, %v2233_v2 }
  0xae   : > { %v2274_v63 = vpop.f32.mrf.mxu3 }
  0xaf   : > { %1698 = vmatmul.msk.bf16.gmra.mxu0 %vm481_vm3, %v2111_v13 }
  0xb0   : > { %v529_v27 = vpop.f32.mrf.mxu1 }
  0xb2   : > { %v2281_v20 = vpop.f32.mrf.mxu2 }
  0xb3   : > { %1660 = vmatmul.msk.bf16.gmra.mxu1 %vm481_vm3, %v2277_v5 }
  0xb6   : > { %v2291_v42 = vpop.f32.mrf.mxu3 }
  0xb7   : > { %1677 = vmatmul.msk.bf16.gmra.mxu2 %vm481_vm3, %v2285_v22 }
  0xb8   : > { %v531_v29 = vpop.f32.mrf.mxu1 }
  0xba   : > { %v2295_v49 = vpop.f32.mrf.mxu2 }
  0xbb   : > { %1689 = vmatmul.msk.bf16.gmra.mxu3 %vm481_vm3, %v2277_v5 }
  0xbc   : > { %v519_v31 = vpop.f32.mrf.mxu0 }
  0xbe   : > { %v2301_v32 = vpop.f32.mrf.mxu3 }
  0xbf   : > { %1699 = vmatmul.msk.bf16.gmra.mxu0 %vm481_vm3, %v2299_v30 }
  0xc0   : > { %v635_v33 = vpop.f32.mrf.mxu1 }
  0xc1   : > { %v636_v34 = vadd.f32 %v635_v33, %v519_v31 }
  0xc2   : > { %v2305_v37 = vpop.f32.mrf.mxu2 }
  0xc3   : > { %1702 = vmatmul.msk.bf16.vlgmr.msra.gmra.mxu1 %vm481_vm3, %v2127_v4 }
  0xc4   : > { %v521_v9 = vpop.f32.mrf.mxu0 }
  0xc6   : > { %v2309_v40 = vpop.f32.mrf.mxu3 }
  0xc7   : > { %1715 = vmatmul.msk.bf16.vlgmr.msra.gmra.mxu2 %vm481_vm3, %v2148_v45 }
  0xc8   : > { %v637_v41 = vpop.f32.mrf.mxu1 }
  0xc9   : > { %v638_v48 = vadd.f32 %v637_v41, %v521_v9 }
  0xca   : > { %v804_v51 = vpop.f32.mrf.mxu2 }
  0xcb   : > { %1690 = vmatmul.msk.bf16.gmra.mxu3 %vm481_vm3, %v2312_v58  ;;  %v844_v46 = vadd.f32 %v804_v51, %v636_v34 }
  0xcc   : > { %v982_v50 = vpop.f32.mrf.mxu0 }
  0xce   : > { %v2318_v53 = vpop.f32.mrf.mxu3 }
  0xcf   : > { %1734 = vmatmul.msk.bf16.vlgmr.msra.gmra.mxu0 %vm481_vm3, %v2155_v0 }
  0xd0   : > { %v640_v4 = vpop.f32.mrf.mxu1 }
  0xd1   : > { %v641_v54 = vadd.f32 %v640_v4, %v2239_v35 }
  0xd2   : > { %v806_v56 = vpop.f32.mrf.mxu2 }
  0xd3   : > { %v845_v43 = vadd.f32 %v806_v56, %v638_v48  ;;  %1703 = vmatmul.msk.bf16.gmra.mxu1 %vm481_vm3, %v2155_v0 }
  0xd4   : > { %v984_v45 = vpop.f32.mrf.mxu0 }
  0xd6   : > { %v2325_v16 = vpop.f32.mrf.mxu3 }
  0xd7   : > { %1716 = vmatmul.msk.bf16.gmra.mxu2 %vm481_vm3, %v2170_v1 }
  0xd8   : > { %v642_v60 = vpop.f32.mrf.mxu1 }
  0xd9   : > { %v643_v62 = vadd.f32 %v642_v60, %v2260_v52 }
  0xda   : > { %v809_v23 = vpop.f32.mrf.mxu2 }
  0xdb   : > { %1724 = vmatmul.msk.bf16.vlgmr.msra.gmra.mxu3 %vm481_vm3, %v2036_v15  ;;  %v846_v6 = vadd.f32 %v809_v23, %v641_v54 }
  0xdc   : > { %v987_v35 = vpop.f32.mrf.mxu0 }
  0xde   : > { %v882_v7 = vpop.f32.mrf.mxu3 }
  0xdf   : > { %v922_v10 = vadd.f32 %v882_v7, %v844_v46  ;;  %1735 = vmatmul.msk.bf16.gmra.mxu0 %vm481_vm3, %v2140_v12 }
  0xe0   : > { %v645_v0 = vpop.f32.mrf.mxu1 }
  0xe1   : > { %v646_v38 = vadd.f32 %v645_v0, %v529_v27  ;;  %v2334_v19 = vadd.f32 %v982_v50, %v922_v10 }
  0xe2   : > { %v811_v59 = vpop.f32.mrf.mxu2 }
  0xe3   : > { %v847_v1 = vadd.f32 %v811_v59, %v643_v62  ;;  %1704 = vmatmul.msk.bf16.gmra.mxu1 %vm481_vm3, %v2140_v12 }
  0xe4   : > { %v989_v52 = vpop.f32.mrf.mxu0 }
  0xe6   : > { %v884_v24 = vpop.f32.mrf.mxu3 }
  0xe7   : > { %v923_v26 = vadd.f32 %v884_v24, %v845_v43  ;;  %1717 = vmatmul.msk.bf16.gmra.mxu2 %vm481_vm3, %v2181_v21 }
  0xe8   : > { %v647_v15 = vpop.f32.mrf.mxu1 }
  0xe9   : > { %v648_v3 = vadd.f32 %v647_v15, %v531_v29  ;;  %v2340_v31 = vadd.f32 %v984_v45, %v923_v26 }
  0xea   : > { %v814_v33 = vpop.f32.mrf.mxu2 }
  0xeb   : > { %1725 = vmatmul.msk.bf16.gmra.mxu3 %vm481_vm3, %v1987_v17  ;;  %v848_v27 = vadd.f32 %v814_v33, %v646_v38 }
  0xec   : > { %v992_v34 = vpop.f32.mrf.mxu0 }
  0xee   : > { %v887_v9 = vpop.f32.mrf.mxu3 }
  0xef   : > { %v924_v41 = vadd.f32 %v887_v9, %v846_v6  ;;  %1736 = vmatmul.msk.bf16.gmra.mxu0 %vm481_vm3, %v2165_v61 }
  0xf0   : > { %v650_v12 = vpop.f32.mrf.mxu1 }
  0xf1   : > { %v651_v48 = vadd.f32 %v650_v12, %v2265_v14  ;;  %v2347_v51 = vadd.f32 %v987_v35, %v924_v41 }
  0xf2   : > { %v816_v21 = vpop.f32.mrf.mxu2 }
  0xf3   : > { %v849_v29 = vadd.f32 %v816_v21, %v648_v3  ;;  %1705 = vmatmul.msk.bf16.gmra.mxu1 %vm481_vm3, %v2165_v61 }
  0xf4   : > { %v994_v46 = vpop.f32.mrf.mxu0 }
  0xf6   : > { %v889_v50 = vpop.f32.mrf.mxu3 }
  0xf7   : > { %v925_v17 = vadd.f32 %v889_v50, %v847_v1  ;;  %1718 = vmatmul.msk.bf16.gmra.mxu2 %vm481_vm3, %v2199_v8 }
  0xf8   : > { %v652_v4 = vpop.f32.mrf.mxu1 }
  0xf9   : > { %v653_v54 = vadd.f32 %v652_v4, %v2281_v20  ;;  %v2354_v56 = vadd.f32 %v989_v52, %v925_v17 }
  0xfa   : > { %v819_v43 = vpop.f32.mrf.mxu2 }
  0xfb   : > { %1726 = vmatmul.msk.bf16.gmra.mxu3 %vm481_vm3, %v2057_v44  ;;  %v850_v14 = vadd.f32 %v819_v43, %v651_v48 }
  0xfc   : > { %v997_v45 = vpop.f32.mrf.mxu0 }
  0xfe   : > { %v892_v60 = vpop.f32.mrf.mxu3 }
  0xff   : > { %v926_v62 = vadd.f32 %v892_v60, %v848_v27  ;;  %1737 = vmatmul.msk.bf16.gmra.mxu0 %vm481_vm3, %v2205_v18 }
 0x100   : > { %v655_v61 = vpop.f32.mrf.mxu1 }
 0x101   : > { %v2360_v23 = vadd.f32 %v992_v34, %v926_v62  ;;  %v656_v9 = vadd.f32 %v655_v61, %v2295_v49 }
 0x102   : > { %v821_v8 = vpop.f32.mrf.mxu2 }
 0x103   : > { %v851_v6 = vadd.f32 %v821_v8, %v653_v54  ;;  %1706 = vmatmul.msk.bf16.gmra.mxu1 %vm481_vm3, %v2205_v18 }
 0x104   : > { %v999_v20 = vpop.f32.mrf.mxu0 }
 0x106   : > { %v894_v35 = vpop.f32.mrf.mxu3 }
 0x107   : > { %v927_v7 = vadd.f32 %v894_v35, %v849_v29  ;;  %1719 = vmatmul.msk.bf16.gmra.mxu2 %vm481_vm3, %v2233_v2  ;;  %v256_v35 = vld [vmem:[%s1904_s27 + $0x6c] sm:$0xf] }
 0x108   : > { %v657_v44 = vpop.f32.mrf.mxu1 }
 0x109   : > { %v658_v10 = vadd.f32 %v657_v44, %v2305_v37  ;;  %v2367_v0 = vadd.f32 %v994_v46, %v927_v7  ;;  %v1700_v46 = vrot.slane %v2242_v55, 9 }
 0x10a   : > { %v824_v38 = vpop.f32.mrf.mxu2 }
 0x10b   : > { %1727 = vmatmul.msk.bf16.gmra.mxu3 %vm481_vm3, %v2004_v39  ;;  %v852_v48 = vadd.f32 %v824_v38, %v656_v9  ;;  %v1201_v38 = vshrl.u32 %v256_v35, 16 }
 0x10c   : > { %v1002_v59 = vpop.f32.mrf.mxu0 }
 0x10e   : > { %v897_v1 = vpop.f32.mrf.mxu3 }
 0x10f   : > { %v928_v52 = vadd.f32 %v897_v1, %v850_v14  ;;  %1738 = vmatmul.msk.bf16.gmra.mxu0 %vm481_vm3, %v2249_v11 }
 0x110   : > { %v660_v18 = vpop.f32.mrf.mxu1 }
 0x111   : > { %v2373_v24 = vadd.f32 %v997_v45, %v928_v52  ;;  %v661_v33 = vadd.f32 %v660_v18, %v2274_v63  ;;  %v1044_v63 = vrot.slane %v2263_v57, 5  ;;  %v1732_v18 = vrot.slane %v256_v35, 9 }
 0x112   : > { %v826_v26 = vpop.f32.mrf.mxu2 }
 0x113   : > { %v853_v2 = vadd.f32 %v826_v26, %v658_v10  ;;  %1707 = vmatmul.msk.bf16.gmra.mxu1 %vm481_vm3, %v2249_v11  ;;  %v1041_v11 = vrot.slane %v2245_v36, 5  ;;  %v258_v10 = vld [vmem:[%s1904_s27 + $0x74] sm:$0x1] }
 0x114   : > { %v1004_v37 = vpop.f32.mrf.mxu0 }
 0x115   : > { %v1043_v50 = vrot.slane %v1041_v11, 4  ;;  %v1042_v54 = vsel %vm2092_vm7, %v1700_v46, %v1041_v11 }
 0x116   : > { %v899_v15 = vpop.f32.mrf.mxu3 }
 0x117   : > { %v929_v3 = vadd.f32 %v899_v15, %v851_v6  ;;  %1720 = vmatmul.msk.bf16.gmra.mxu2 %vm481_vm3, %v2277_v5  ;;  %v1045_v57 = vsel %vm2092_vm7, %v1043_v50, %v1044_v63  ;;  %v257_v6 = vld [vmem:[%s1904_s27 + $0x70] sm:$0xf] }
 0x118   : > { %v662_v39 = vpop.f32.mrf.mxu1  ;;  %v1049_v14 = vunpack.c.l.b16 %v1045_v57  ;;  %v1303_v7 = vrot.slane %v257_v6, 5  ;;  %v1214_v52 = vshrl.u32 %v257_v6, 16 }
 0x119   : > { %v2380_v27 = vadd.f32 %v999_v20, %v929_v3  ;;  %v663_v49 = vadd.f32 %v662_v39, %v2291_v42  ;;  %v1048_v42 = vunpack.c.l.b16 %v1042_v54  ;;  %v1753_v39 = vld [vmem:[%s1904_s27 + $0x6c] sm:$0xff]  ;;  %s1609_s27 = sshll.u32 %s217_s26, 3 }
 0x11a   : > { %v829_v34 = vpop.f32.mrf.mxu2  ;;  %v1305_v26 = vrot.slane %v1303_v7, 4  ;;  %v1216_v11 = vrot.slane %v1214_v52, 4  ;;  %s2446_s30 = scalar_lea.vmem %s2577_s2, %s1609_s27 }
 0x11b   : > { %1728 = vmatmul.msk.bf16.gmra.mxu3 %vm481_vm3, %v2077_v25  ;;  %v854_v41 = vadd.f32 %v829_v34, %v661_v33  ;;  %v1050_v8 = vpack.c.b16 %v1049_v14, %v1048_v42  ;;  %v1203_v33 = vrot.slane %v1201_v38, 4 }
 0x11c   : > { %v1007_v12 = vpop.f32.mrf.mxu0 }
 0x11e   : > { %v902_v21 = vpop.f32.mrf.mxu3 }
 0x11f   : > { %v930_v29 = vadd.f32 %v902_v21, %v852_v48  ;;  %1739 = vmatmul.msk.bf16.gmra.mxu0 %vm481_vm3, %v2285_v22  ;;  %v1304_v48 = vsel %vm2092_vm7, %v1732_v18, %v1303_v7 }
 0x120   : > { %v665_v5 = vpop.f32.mrf.mxu1 }
 0x121   : > { %v2391_v17 = vadd.f32 %v1002_v59, %v930_v29  ;;  %v1210_v59 = vshll.u32 %v257_v6, 16 }
 0x122   : > { %v831_v25 = vpop.f32.mrf.mxu2 }
 0x123   : > { %v855_v4 = vadd.f32 %v831_v25, %v663_v49  ;;  %1708 = vmatmul.msk.bf16.gmra.mxu1 %vm481_vm3, %v2285_v22  ;;  %v666_v22 = vadd.f32 %v665_v5, %v2301_v32  ;;  %v1204_v32 = vshll.u32 %v256_v35, 16  ;;  %v1220_v49 = vshll.u32 %v258_v10, 16 }
 0x124   : > { %v1009_v36 = vpop.f32.mrf.mxu0 }
 0x125   : > { %v1206_v34 = vrot.slane %v1204_v32, 5  ;;  %v1222_v14 = vrot.slane %v1220_v49, 5 }
 0x126   : > { %v904_v55 = vpop.f32.mrf.mxu3 }
 0x127   : > { %v931_v43 = vadd.f32 %v904_v55, %v853_v2  ;;  %1721 = vmatmul.msk.bf16.gmra.mxu2 %vm481_vm3, %v2312_v58  ;;  %v1207_v46 = vor.u32 %v1206_v34, %v1203_v33 }
 0x128   : > { %v667_v45 = vpop.f32.mrf.mxu1 }
 0x129   : > { %v2402_v60 = vadd.f32 %v1004_v37, %v931_v43  ;;  %v668_v2 = vadd.f32 %v667_v45, %v2309_v40 }
 0x12a   : > { %v834_v62 = vpop.f32.mrf.mxu2 }
 0x12b   : > { %1729 = vmatmul.msk.bf16.gmra.mxu3 %vm481_vm3, %v2111_v13  ;;  %v856_v61 = vadd.f32 %v834_v62, %v666_v22  ;;  %v1306_v13 = vrot.slane %v258_v10, 5 }
 0x12c   : > { %v1012_v20 = vpop.f32.mrf.mxu0 }
 0x12d   : > { %v1307_v21 = vsel %vm2092_vm7, %v1305_v26, %v1306_v13 }
 0x12e   : > { %v907_v44 = vpop.f32.mrf.mxu3  ;;  %v1311_v63 = vunpack.c.l.b16 %v1307_v21 }
 0x12f   : > { %v932_v58 = vadd.f32 %v907_v44, %v854_v41  ;;  %1740 = vmatmul.msk.bf16.gmra.mxu0 %vm481_vm3, %v1050_v8  ;;  %v1212_v41 = vrot.slane %v1210_v59, 5 }
 0x130   : > { %v670_v1 = vpop.f32.mrf.mxu1 }
 0x131   : > { %v2411_v37 = vadd.f32 %v1007_v12, %v932_v58  ;;  %v1310_v12 = vunpack.c.l.b16 %v1304_v48  ;;  %v1217_v50 = vor.u32 %v1216_v11, %v1212_v41  ;;  %v671_v25 = vadd.f32 %v670_v1, %v2318_v53 }
 0x132   : > { %v836_v15 = vpop.f32.mrf.mxu2 }
 0x133   : > { %v857_v3 = vadd.f32 %v836_v15, %v668_v2  ;;  %1709 = vmatmul.msk.bf16.gmra.mxu1 %vm481_vm3, %v1050_v8  ;;  %v1312_v55 = vpack.c.b16 %v1311_v63, %v1310_v12  ;;  %v1218_v42 = vrot.slane %v1217_v50, 4 }
 0x134   : > { %v1014_v9 = vpop.f32.mrf.mxu0 }
 0x136   : > { %v909_v29 = vpop.f32.mrf.mxu3 }
 0x137   : > { %v933_v40 = vadd.f32 %v909_v29, %v855_v4  ;;  %1722 = vmatmul.msk.bf16.gmra.mxu2 %vm481_vm3, %v1753_v39  ;;  %v1208_v4 = vrot.slane %v1207_v46, 4 }
 0x138   : > { %v672_v5 = vpop.f32.mrf.mxu1 }
 0x139   : > { %v2421_v54 = vadd.f32 %v1009_v36, %v933_v40  ;;  %v1213_v53 = vsel %vm1942_vm4, %v1208_v4, %v1212_v41  ;;  %v1223_v36 = vsel %vm1942_vm4, %v1218_v42, %v1222_v14  ;;  %v673_v8 = vadd.f32 %v672_v5, %v2325_v16 }
 0x13a   : > { %v839_v57 = vpop.f32.mrf.mxu2  ;;  %v1226_v7 = vunpack.c.l.b16 %v1213_v53  ;;  %v1227_v44 = vunpack.c.l.b16 %v1223_v36 }
 0x13b   : > { %1730 = vmatmul.msk.bf16.gmra.mxu3 %vm481_vm3, %v2299_v30  ;;  %v858_v47 = vadd.f32 %v839_v57, %v671_v25 }
 0x13c   : > { %v1017_v43 = vpop.f32.mrf.mxu0  ;;  %v1228_v38 = vpack.c.b16 %v1227_v44, %v1226_v7 }
 0x13e   : > { %v912_v45 = vpop.f32.mrf.mxu3 }
 0x13f   : > { %v934_v22 = vadd.f32 %v912_v45, %v856_v61  ;;  %1741 = vmatmul.msk.bf16.gmra.mxu0 %vm481_vm3, %v1312_v55 }
 0x140   : > { %v1066_v62 = vpop.f32.mrf.mxu1 }
 0x141   : > { %v2431_v30 = vadd.f32 %v1012_v20, %v934_v22  ;;  %v1106_v34 = vadd.f32 %v1066_v62, %v2334_v19 }
 0x142   : > { %v841_v6 = vpop.f32.mrf.mxu2 }
 0x143   : > { %v859_v35 = vadd.f32 %v841_v6, %v673_v8 }
 0x144   : > { %v1019_v58 = vpop.f32.mrf.mxu0 }
 0x146   : > { %v914_v10 = vpop.f32.mrf.mxu3 }
 0x147   : > { %v935_v61 = vadd.f32 %v914_v10, %v857_v3 }
 0x148   : > { %v1068_v32 = vpop.f32.mrf.mxu1 }
 0x149   : > { %v2433_v59 = vadd.f32 %v1014_v9, %v935_v61  ;;  %v1107_v12 = vadd.f32 %v1068_v32, %v2340_v31 }
 0x14a   : > { %v1144_v1 = vpop.f32.mrf.mxu2 }
 0x14b   : > { %1731 = vmatmul.msk.bf16.gmra.mxu3 %vm481_vm3, %v1228_v38  ;;  %v1184_v41 = vadd.f32 %v1144_v1, %v1106_v34 }
 0x14c   : > { %v1328_v28 = vpop.f32.mrf.mxu0 }
 0x14e   : > { %v917_v16 = vpop.f32.mrf.mxu3 }
 0x14f   : > { %v936_v20 = vadd.f32 %v917_v16, %v858_v47 }
 0x150   : > { %v1071_v52 = vpop.f32.mrf.mxu1 }
 0x151   : > { %v2436_v18 = vadd.f32 %v1017_v43, %v936_v20  ;;  %v1108_v25 = vadd.f32 %v1071_v52, %v2347_v51 }
 0x152   : > { %v1146_v26 = vpop.f32.mrf.mxu2 }
 0x153   : > { %v1185_v63 = vadd.f32 %v1146_v26, %v1107_v12 }
 0x154   : > { %v1330_v13 = vpop.f32.mrf.mxu0 }
 0x156   : > { %v919_v2 = vpop.f32.mrf.mxu3 }
 0x157   : > { %v937_v15 = vadd.f32 %v919_v2, %v859_v35 }
 0x158   : > { %v1073_v3 = vpop.f32.mrf.mxu1 }
 0x159   : > { %v2440_v39 = vadd.f32 %v1019_v58, %v937_v15  ;;  %v1109_v14 = vadd.f32 %v1073_v3, %v2354_v56 }
 0x15a   : > { %v1149_v33 = vpop.f32.mrf.mxu2 }
 0x15b   : > { %v1186_v31 = vadd.f32 %v1149_v33, %v1108_v25 }
 0x15c   : > { %v1333_v9 = vpop.f32.mrf.mxu0 }
 0x15e   : > { %v1244_v11 = vpop.f32.mrf.mxu3 }
 0x15f   : > { %v1284_v48 = vadd.f32 %v1244_v11, %v1184_v41 }
 0x160   : > { %v1076_v40 = vpop.f32.mrf.mxu1 }
 0x161   : > { %v2448_v21 = vadd.f32 %v1328_v28, %v1284_v48  ;;  %v1110_v6 = vadd.f32 %v1076_v40, %v2360_v23 }
 0x162   : > { %v1151_v29 = vpop.f32.mrf.mxu2 }
 0x163   : > { %1384 = vst.msk [vmem:[%s2446_s30] sm:$0xff] %vm481_vm3, %v2448_v21  ;;  %v1187_v22 = vadd.f32 %v1151_v29, %v1109_v14 }
 0x164   : > { %v1335_v19 = vpop.f32.mrf.mxu0 }
 0x166   : > { %v1246_v5 = vpop.f32.mrf.mxu3 }
 0x167   : > { %v1285_v46 = vadd.f32 %v1246_v5, %v1185_v63 }
 0x168   : > { %v1078_v57 = vpop.f32.mrf.mxu1 }
 0x169   : > { %v2454_v50 = vadd.f32 %v1330_v13, %v1285_v46  ;;  %v1111_v38 = vadd.f32 %v1078_v57, %v2367_v0 }
 0x16a   : > { %v1154_v49 = vpop.f32.mrf.mxu2 }
 0x16b   : > { %1385 = vst.msk [vmem:[%s2446_s30 + $0x8] sm:$0xff] %vm481_vm3, %v2454_v50  ;;  %v1188_v35 = vadd.f32 %v1154_v49, %v1110_v6 }
 0x16c   : > { %v1338_v47 = vpop.f32.mrf.mxu0 }
 0x16e   : > { %v1249_v55 = vpop.f32.mrf.mxu3 }
 0x16f   : > { %v1286_v43 = vadd.f32 %v1249_v55, %v1186_v31 }
 0x170   : > { %v1081_v62 = vpop.f32.mrf.mxu1 }
 0x171   : > { %v2460_v4 = vadd.f32 %v1333_v9, %v1286_v43  ;;  %v1112_v52 = vadd.f32 %v1081_v62, %v2373_v24 }
 0x172   : > { %v1156_v42 = vpop.f32.mrf.mxu2 }
 0x173   : > { %1386 = vst.msk [vmem:[%s2446_s30 + $0x10] sm:$0xff] %vm481_vm3, %v2460_v4  ;;  %v1189_v32 = vadd.f32 %v1156_v42, %v1111_v38 }
 0x174   : > { %v1340_v45 = vpop.f32.mrf.mxu0 }
 0x176   : > { %v1251_v51 = vpop.f32.mrf.mxu3 }
 0x177   : > { %v1287_v53 = vadd.f32 %v1251_v51, %v1187_v22 }
 0x178   : > { %v1083_v58 = vpop.f32.mrf.mxu1 }
 0x179   : > { %v2466_v36 = vadd.f32 %v1335_v19, %v1287_v53  ;;  %v1113_v33 = vadd.f32 %v1083_v58, %v2380_v27 }
 0x17a   : > { %v1159_v8 = vpop.f32.mrf.mxu2 }
 0x17b   : > { %1387 = vst.msk [vmem:[%s2446_s30 + $0x18] sm:$0xff] %vm481_vm3, %v2466_v36  ;;  %v1190_v13 = vadd.f32 %v1159_v8, %v1112_v52 }
 0x17c   : > { %v1343_v7 = vpop.f32.mrf.mxu0 }
 0x17e   : > { %v1254_v56 = vpop.f32.mrf.mxu3 }
 0x17f   : > { %v1288_v44 = vadd.f32 %v1254_v56, %v1188_v35 }
 0x180   : > { %v1086_v20 = vpop.f32.mrf.mxu1 }
 0x181   : > { %v2472_v10 = vadd.f32 %v1338_v47, %v1288_v44  ;;  %v1114_v29 = vadd.f32 %v1086_v20, %v2391_v17 }
 0x182   : > { %v1161_v61 = vpop.f32.mrf.mxu2 }
 0x183   : > { %1388 = vst.msk [vmem:[%s2446_s30 + $0x20] sm:$0xff] %vm481_vm3, %v2472_v10  ;;  %v1191_v9 = vadd.f32 %v1161_v61, %v1113_v33 }
 0x184   : > { %v1345_v28 = vpop.f32.mrf.mxu0 }
 0x186   : > { %v1256_v23 = vpop.f32.mrf.mxu3 }
 0x187   : > { %v1289_v1 = vadd.f32 %v1256_v23, %v1189_v32 }
 0x188   : > { %v1088_v34 = vpop.f32.mrf.mxu1 }
 0x189   : > { %v2478_v16 = vadd.f32 %v1340_v45, %v1289_v1  ;;  %v1115_v49 = vadd.f32 %v1088_v34, %v2402_v60 }
 0x18a   : > { %v1164_v26 = vpop.f32.mrf.mxu2 }
 0x18b   : > { %1389 = vst.msk [vmem:[%s2446_s30 + $0x28] sm:$0xff] %vm481_vm3, %v2478_v16  ;;  %v1192_v12 = vadd.f32 %v1164_v26, %v1114_v29 }
 0x18c   : > { %v1348_v3 = vpop.f32.mrf.mxu0 }
 0x18e   : > { %v1259_v0 = vpop.f32.mrf.mxu3 }
 0x18f   : > { %v1290_v2 = vadd.f32 %v1259_v0, %v1190_v13 }
 0x190   : > { %v1091_v27 = vpop.f32.mrf.mxu1 }
 0x191   : > { %v2484_v15 = vadd.f32 %v1343_v7, %v1290_v2  ;;  %v1116_v42 = vadd.f32 %v1091_v27, %v2411_v37 }
 0x192   : > { %v1166_v24 = vpop.f32.mrf.mxu2 }
 0x193   : > { %1390 = vst.msk [vmem:[%s2446_s30 + $0x30] sm:$0xff] %vm481_vm3, %v2484_v15  ;;  %v1193_v25 = vadd.f32 %v1166_v24, %v1115_v49 }
 0x194   : > { %v1350_v40 = vpop.f32.mrf.mxu0 }
 0x196   : > { %v1261_v41 = vpop.f32.mrf.mxu3 }
 0x197   : > { %v1291_v11 = vadd.f32 %v1261_v41, %v1191_v9 }
 0x198   : > { %v1093_v31 = vpop.f32.mrf.mxu1 }
 0x199   : > { %v2490_v48 = vadd.f32 %v1345_v28, %v1291_v11  ;;  %v1117_v53 = vadd.f32 %v1093_v31, %v2421_v54  ;;  %v1428_v31 = vmul.f32 %v2484_v15, %v2484_v15 }
 0x19a   : > { %v1169_v5 = vpop.f32.mrf.mxu2 }
 0x19b   : > { %1391 = vst.msk [vmem:[%s2446_s30 + $0x38] sm:$0xff] %vm481_vm3, %v2490_v48  ;;  %v1194_v14 = vadd.f32 %v1169_v5, %v1116_v42 }
 0x19c   : > { %v1353_v57 = vpop.f32.mrf.mxu0 }
 0x19e   : > { %v1264_v19 = vpop.f32.mrf.mxu3 }
 0x19f   : > { %v1292_v63 = vadd.f32 %v1264_v19, %v1192_v12 }
 0x1a0   : > { %v1096_v62 = vpop.f32.mrf.mxu1 }
 0x1a1   : > { %v2496_v46 = vadd.f32 %v1348_v3, %v1292_v63  ;;  %v1118_v44 = vadd.f32 %v1096_v62, %v2431_v30 }
 0x1a2   : > { %v1171_v43 = vpop.f32.mrf.mxu2 }
 0x1a3   : > { %1392 = vst.msk [vmem:[%s2446_s30 + $0x40] sm:$0xff] %vm481_vm3, %v2496_v46  ;;  %v1195_v6 = vadd.f32 %v1171_v43, %v1117_v53  ;;  %v1840_v43 = vmov 1.0  }
 0x1a4   : > { %v1355_v22 = vpop.f32.mrf.mxu0 }
 0x1a6   : > { %v1266_v17 = vpop.f32.mrf.mxu3 }
 0x1a7   : > { %v1293_v47 = vadd.f32 %v1266_v17, %v1193_v25 }
 0x1a8   : > { %v1098_v58 = vpop.f32.mrf.mxu1 }
 0x1a9   : > { %v2502_v55 = vadd.f32 %v1350_v40, %v1293_v47  ;;  %v1119_v1 = vadd.f32 %v1098_v58, %v2433_v59  ;;  %v1429_v47 = vmul.f32 %v2490_v48, %v2490_v48 }
 0x1aa   : > { %v1174_v8 = vpop.f32.mrf.mxu2 }
 0x1ab   : > { %1393 = vst.msk [vmem:[%s2446_s30 + $0x48] sm:$0xff] %vm481_vm3, %v2502_v55  ;;  %v1196_v61 = vadd.f32 %v1174_v8, %v1118_v44  ;;  %v1431_v17 = vmul.f32 %v2502_v55, %v2502_v55 }
 0x1ac   : > { %v1358_v7 = vpop.f32.mrf.mxu0 }
 0x1ae   : > { %v1269_v60 = vpop.f32.mrf.mxu3 }
 0x1af   : > { %v1294_v45 = vadd.f32 %v1269_v60, %v1194_v14 }
 0x1b0   : > { %v1101_v52 = vpop.f32.mrf.mxu1 }
 0x1b1   : > { %v1378_v51 = vadd.f32 %v1353_v57, %v1294_v45  ;;  %v1120_v2 = vadd.f32 %v1101_v52, %v2436_v18  ;;  %v1430_v57 = vmul.f32 %v2496_v46, %v2496_v46 }
 0x1b2   : > { %v1176_v38 = vpop.f32.mrf.mxu2 }
 0x1b3   : > { %1394 = vst.msk [vmem:[%s2446_s30 + $0x50] sm:$0xff] %vm481_vm3, %v1378_v51  ;;  %v1197_v20 = vadd.f32 %v1176_v38, %v1119_v1  ;;  %v1432_v25 = vmul.f32 %v1378_v51, %v1378_v51 }
 0x1b4   : > { %v1360_v28 = vpop.f32.mrf.mxu0 }
 0x1b6   : > { %v1271_v35 = vpop.f32.mrf.mxu3 }
 0x1b7   : > { %v1295_v56 = vadd.f32 %v1271_v35, %v1195_v6 }
 0x1b8   : > { %v1103_v59 = vpop.f32.mrf.mxu1 }
 0x1b9   : > { %v1379_v37 = vadd.f32 %v1355_v22, %v1295_v56  ;;  %v1121_v11 = vadd.f32 %v1103_v59, %v2440_v39 }
 0x1ba   : > { %v1179_v30 = vpop.f32.mrf.mxu2 }
 0x1bb   : > { %1395 = vst.msk [vmem:[%s2446_s30 + $0x58] sm:$0xff] %vm481_vm3, %v1379_v37  ;;  %v1198_v3 = vadd.f32 %v1179_v30, %v1120_v2  ;;  %v1433_v49 = vmul.f32 %v1379_v37, %v1379_v37 }
 0x1bc   : > { %v1363_v33 = vpop.f32.mrf.mxu0 }
 0x1be   : > { %v1274_v32 = vpop.f32.mrf.mxu3 }
 0x1bf   : > { %v1296_v23 = vadd.f32 %v1274_v32, %v1196_v61 }
 0x1c1   : > { %v1380_v54 = vadd.f32 %v1358_v7, %v1296_v23 }
 0x1c2   : > { %v1181_v41 = vpop.f32.mrf.mxu2 }
 0x1c3   : > { %1396 = vst.msk [vmem:[%s2446_s30 + $0x60] sm:$0xff] %vm481_vm3, %v1380_v54  ;;  %v1199_v29 = vadd.f32 %v1181_v41, %v1121_v11  ;;  %v1434_v39 = vmul.f32 %v1380_v54, %v1380_v54 }
 0x1c4   : > { %v1365_v27 = vpop.f32.mrf.mxu0 }
 0x1c6   : > { %v1276_v26 = vpop.f32.mrf.mxu3 }
 0x1c7   : > { %v1297_v13 = vadd.f32 %v1276_v26, %v1197_v20 }
 0x1c9   : > { %v1381_v0 = vadd.f32 %v1360_v28, %v1297_v13 }
 0x1cb   : > { %1397 = vst.msk [vmem:[%s2446_s30 + $0x68] sm:$0xff] %vm481_vm3, %v1381_v0  ;;  %v1435_v5 = vmul.f32 %v1381_v0, %v1381_v0 }
 0x1ce   : > { %v1279_v34 = vpop.f32.mrf.mxu3 }
 0x1cf   : > { %v1298_v9 = vadd.f32 %v1279_v34, %v1198_v3 }
 0x1d1   : > { %v1382_v24 = vadd.f32 %v1363_v33, %v1298_v9 }
 0x1d3   : > { %1398 = vst.msk [vmem:[%s2446_s30 + $0x70] sm:$0xff] %vm481_vm3, %v1382_v24  ;;  %v1436_v63 = vmul.f32 %v1382_v24, %v1382_v24 }
 0x1d6   : > { %v1281_v40 = vpop.f32.mrf.mxu3 }
 0x1d7   : > { %v1299_v12 = vadd.f32 %v1281_v40, %v1199_v29 }
 0x1d9   : > { %v1383_v19 = vadd.f32 %v1365_v27, %v1299_v12 }
 0x1db   : > { %1399 = vst.msk [vmem:[%s2446_s30 + $0x78] sm:$0xff] %vm481_vm3, %v1383_v19  ;;  %v1437_v18 = vmul.f32 %v1383_v19, %v1383_v19  ;;  %1400 = vmatpush.msrb.mxu1 %v1383_v19 }
 0x1dd   : > { %1401 = vmatpush.msrb.mxu1 %v1382_v24  ;;  %1438 = vmatpush.msrb.mxu2 %v1437_v18 }
 0x1df   : > { %1402 = vmatpush.msrb.mxu1 %v1381_v0  ;;  %1439 = vmatpush.msrb.mxu2 %v1436_v63 }
 0x1e1   : > { %1403 = vmatpush.msrb.mxu1 %v1380_v54  ;;  %1440 = vmatpush.msrb.mxu2 %v1435_v5 }
 0x1e3   : > { %1404 = vmatpush.msrb.mxu1 %v1379_v37  ;;  %1441 = vmatpush.msrb.mxu2 %v1434_v39 }
 0x1e5   : > { %1405 = vmatpush.msrb.mxu1 %v1378_v51  ;;  %1442 = vmatpush.msrb.mxu2 %v1433_v49 }
 0x1e7   : > { %1406 = vmatpush.msrb.mxu1 %v2502_v55  ;;  %1443 = vmatpush.msrb.mxu2 %v1432_v25  ;;  %v1427_v55 = vmul.f32 %v2478_v16, %v2478_v16 }
 0x1e9   : > { %1407 = vmatpush.msrb.mxu1 %v2496_v46  ;;  %1444 = vmatpush.msrb.mxu2 %v1431_v17  ;;  %v1426_v46 = vmul.f32 %v2472_v10, %v2472_v10 }
 0x1eb   : > { %1408 = vmatpush.msrb.mxu1 %v2490_v48  ;;  %1445 = vmatpush.msrb.mxu2 %v1430_v57  ;;  %v1422_v48 = vmul.f32 %v2448_v21, %v2448_v21 }
 0x1ed   : > { %1409 = vmatpush.msrb.mxu1 %v2484_v15  ;;  %1446 = vmatpush.msrb.mxu2 %v1429_v47  ;;  %v1425_v15 = vmul.f32 %v2466_v36, %v2466_v36 }
 0x1ef   : > { %1410 = vmatpush.msrb.mxu1 %v2478_v16  ;;  %1447 = vmatpush.msrb.mxu2 %v1428_v31  ;;  %v1424_v16 = vmul.f32 %v2460_v4, %v2460_v4 }
 0x1f1   : > { %1411 = vmatpush.msrb.mxu1 %v2472_v10  ;;  %1448 = vmatpush.msrb.mxu2 %v1427_v55  ;;  %v1423_v10 = vmul.f32 %v2454_v50, %v2454_v50 }
 0x1f3   : > { %1412 = vmatpush.msrb.mxu1 %v2466_v36  ;;  %1449 = vmatpush.msrb.mxu2 %v1426_v46 }
 0x1f5   : > { %1413 = vmatpush.msrb.mxu1 %v2460_v4  ;;  %1450 = vmatpush.msrb.mxu2 %v1425_v15 }
 0x1f7   : > { %1414 = vmatpush.msrb.mxu1 %v2454_v50  ;;  %1451 = vmatpush.msrb.mxu2 %v1424_v16 }
 0x1f9   : > { %1415 = vmatpush.msrb.mxu1 %v2448_v21  ;;  %1452 = vmatpush.msrb.mxu2 %v1423_v10 }
 0x1fa   : > { %1416 = vmatmul.f32.vlgmr.msrb.gmra.mxu1 %v1840_v43 }
 0x1fb   : > { %1453 = vmatpush.msrb.mxu2 %v1422_v48 }
 0x1fc   : > { %1454 = vmatmul.f32.vlgmr.msrb.gmra.mxu2 %v1840_v43 }
 0x277   : > { %v1417_v4 = vpop.f32.mrf.mxu1 }
 0x278   : > { %1421 = vst.msk [vmem:[%s227_s9] sm:$0x1] %vm1420_vm8, %v1417_v4 }
 0x27f   : > { %v1455_v50 = vpop.f32.mrf.mxu2 }
 0x280   : > { %1458 = vst.msk [vmem:[%s227_s9 + $0x1] sm:$0x1] %vm1420_vm8, %v1455_v50 }
 0x281 PF: > { %s14_s16 = sadd.s32 1, %s1838_s16   ;;  %s2583_s12 = smov %s1830_s14 }
 0x282   : > { %p11_p7 = scmp.ge.s32.totalorder %s14_s16, 6   ;;  %s2584_s13 = smov %s1834_s15 }
 0x283   : > { %s2585_s14 = smov %s2588_s17  ;;  %s2586_s15 = smov %s2592_s18 }
 0x284   :  { %13 = sbr.rel (!%p11_p7) target bundleno = 3 (0x3), region = 78 }

</bundles_post_ra>
